<compile_context>
chip_gen: v7x
topology: tpu7x:2x2x1
jax: 0.10.0
libtpu: 0.0.40
codegen_flags: <defaults>
</compile_context>

<pallas_src>
import math
import jax
import jax.numpy as jnp
from jax import lax
from jax.experimental import pallas as pl
from jax.experimental.pallas import tpu as pltpu

# ---------------- model config (small, consistent with the module) ----------
PREFIX_LENGTH = 4          # <= 10  -> MLP projection path (as in the PyTorch code)
PREFIX_SIZE   = 16         # "prefix_size" (CLIP feature dim)
D_MODEL       = 32         # gpt_embedding_size
N_HEAD        = 2
N_LAYER       = 2
VOCAB         = 128
MAX_POS       = 64
SEQ_LEN       = 8
BATCH         = 2
LN_EPS        = 1e-5

HEAD_DIM    = D_MODEL // N_HEAD
HIDDEN_CLIP = D_MODEL * PREFIX_LENGTH // 2
LANES       = 128


def _round_up(x, m):
    return ((x + m - 1) // m) * m


def _vmem():
    return pl.BlockSpec(memory_space=pltpu.MemorySpace.VMEM)


# ---------------- packed-buffer layouts (static, shared by wrapper & kernel) --
def _weight_layout():
    """All matmul weights stacked along sublanes in one bf16 (rows, 128) buffer."""
    items = [("clip_w1", PREFIX_SIZE, HIDDEN_CLIP),
             ("clip_w2", HIDDEN_CLIP, PREFIX_LENGTH * D_MODEL)]
    for li in range(N_LAYER):
        for hi in range(N_HEAD):
            items.append((f"wq_{li}_{hi}", D_MODEL, HEAD_DIM))
            items.append((f"wk_{li}_{hi}", D_MODEL, HEAD_DIM))
            items.append((f"wv_{li}_{hi}", D_MODEL, HEAD_DIM))
        for hi in range(N_HEAD):
            items.append((f"wo_{li}_{hi}", HEAD_DIM, D_MODEL))
        items.append((f"wfc_{li}", D_MODEL, 4 * D_MODEL))
        items.append((f"wpr_{li}", 4 * D_MODEL, D_MODEL))
    items.append(("wte_t", D_MODEL, VOCAB))

    layout, ordered, off = {}, [], 0
    for name, r, c in items:
        rp = _round_up(r, 16)              # bf16 sublane tile = 16 -> aligned slices
        layout[name] = (off, r, c)
        ordered.append((name, r, c, rp))
        off += rp
    return layout, ordered, _round_up(off, 16)


def _vector_layout():
    """All biases / LN params: one f32 row (<=128 lanes) each in one buffer."""
    items = [("clip_b1", HIDDEN_CLIP), ("clip_b2", PREFIX_LENGTH * D_MODEL)]
    for li in range(N_LAYER):
        items += [(f"ln1_g_{li}", D_MODEL), (f"ln1_b_{li}", D_MODEL)]
        for hi in range(N_HEAD):
            items += [(f"bq_{li}_{hi}", HEAD_DIM), (f"bk_{li}_{hi}", HEAD_DIM),
                      (f"bv_{li}_{hi}", HEAD_DIM)]
        items += [(f"bo_{li}", D_MODEL), (f"ln2_g_{li}", D_MODEL),
                  (f"ln2_b_{li}", D_MODEL), (f"bfc_{li}", 4 * D_MODEL),
                  (f"bpr_{li}", D_MODEL)]
    items += [("ln_f_g", D_MODEL), ("ln_f_b", D_MODEL)]
    layout = {name: (i, c) for i, (name, c) in enumerate(items)}
    return layout, items, _round_up(len(items), 8)


W_OFF, W_ITEMS, W_ROWS = _weight_layout()
V_OFF, V_ITEMS, V_ROWS = _vector_layout()


# ---------------- in-kernel math helpers (trace-time functions) -------------
def _layernorm(x, g, b):
    mu = jnp.mean(x, axis=-1, keepdims=True)
    var = jnp.mean(jnp.square(x - mu), axis=-1, keepdims=True)
    return (x - mu) * lax.rsqrt(var + LN_EPS) * g + b


def _gelu_new(x):
    # GPT-2 "gelu_new" (tanh approximation)
    return 0.5 * x * (1.0 + jnp.tanh(math.sqrt(2.0 / math.pi) * (x + 0.044715 * x * x * x)))


# ---------------- fused forward kernel ---------------------------------------
def _build_kernel(B, Tp):
    R = B * Tp
    L = PREFIX_LENGTH
    hd = HEAD_DIM
    scale = 1.0 / math.sqrt(hd)
    bf = jnp.bfloat16

    def kernel(prefix_ref, base_ref, w_ref, v_ref, logits_ref):
        def wget(name):                               # static sublane-aligned slice
            off, r, c = W_OFF[name]
            return w_ref[off:off + r, 0:c]

        def vget(name):                               # one (1, c) bias/LN row
            row, c = V_OFF[name]
            return v_ref[row:row + 1, 0:c]

        # additive causal mask, built once for the whole fused kernel
        rowi = lax.broadcasted_iota(jnp.int32, (Tp, Tp), 0)
        coli = lax.broadcasted_iota(jnp.int32, (Tp, Tp), 1)
        mask_add = jnp.where(coli <= rowi, 0.0, -1e9).astype(jnp.float32)

        # ---- clip_project MLP: Linear -> Tanh -> Linear ----------------------
        ph = jnp.tanh(jnp.dot(prefix_ref[...].astype(bf), wget("clip_w1"),
                              preferred_element_type=jnp.float32) + vget("clip_b1"))
        pp = jnp.dot(ph.astype(bf), wget("clip_w2"),
                     preferred_element_type=jnp.float32) + vget("clip_b2")   # (B, L*D)

        # prefix rows -> padded (B, Tp, D) -> flat (R, D); base already has
        # wpe + text embeddings (and zero pad rows) from the wrapper.
        pp3 = jnp.stack([pp[:, l * D_MODEL:(l + 1) * D_MODEL] for l in range(L)],
                        axis=1)                                               # (B, L, D)
        pref3 = jnp.concatenate(
            [pp3, jnp.zeros((B, Tp - L, D_MODEL), jnp.float32)], axis=1)     # (B, Tp, D)
        x = base_ref[...] + pref3.reshape(R, D_MODEL)                        # (R, D) f32

        # ---- transformer blocks (static unroll over N_LAYER) -----------------
        for li in range(N_LAYER):
            # attention (per-head weights pre-split in wrapper -> no activation
            # lane slicing; head-concat fused into per-head output-proj dots)
            hln = _layernorm(x, vget(f"ln1_g_{li}"), vget(f"ln1_b_{li}"))
            hln_b = hln.astype(bf)
            attn = jnp.zeros((R, D_MODEL), jnp.float32)
            for hi in range(N_HEAD):
                q = jnp.dot(hln_b, wget(f"wq_{li}_{hi}"),
                            preferred_element_type=jnp.float32) + vget(f"bq_{li}_{hi}")
                k = jnp.dot(hln_b, wget(f"wk_{li}_{hi}"),
                            preferred_element_type=jnp.float32) + vget(f"bk_{li}_{hi}")
                v = jnp.dot(hln_b, wget(f"wv_{li}_{hi}"),
                            preferred_element_type=jnp.float32) + vget(f"bv_{li}_{hi}")
                q3 = q.reshape(B, Tp, hd).astype(bf)        # free leading-dim reshapes
                k3 = k.reshape(B, Tp, hd).astype(bf)
                v3 = v.reshape(B, Tp, hd).astype(bf)
                s = jnp.einsum('bqd,bkd->bqk', q3, k3,
                               preferred_element_type=jnp.float32) * scale + mask_add
                s = s - jnp.max(s, axis=-1, keepdims=True)  # keep: numerical safety
                p = jnp.exp(s)
                p = p * pl.reciprocal(jnp.sum(p, axis=-1, keepdims=True), approx=True)
                ctx = jnp.einsum('bqk,bkd->bqd', p.astype(bf), v3,
                                 preferred_element_type=jnp.float32)          # (B, Tp, hd)
                attn = attn + jnp.dot(ctx.reshape(R, hd).astype(bf),
                                      wget(f"wo_{li}_{hi}"),
                                      preferred_element_type=jnp.float32)
            x = x + attn + vget(f"bo_{li}")

            # MLP
            h2 = _layernorm(x, vget(f"ln2_g_{li}"), vget(f"ln2_b_{li}"))
            f = _gelu_new(jnp.dot(h2.astype(bf), wget(f"wfc_{li}"),
                                  preferred_element_type=jnp.float32) + vget(f"bfc_{li}"))
            x = x + jnp.dot(f.astype(bf), wget(f"wpr_{li}"),
                            preferred_element_type=jnp.float32) + vget(f"bpr_{li}")

        # ---- final LN + tied lm_head (wte pre-transposed to (D, V)) ----------
        hf = _layernorm(x, vget("ln_f_g"), vget("ln_f_b"))
        # single lane-dense, sublane-aligned (R, V) = (32, 128) full-block store
        logits_ref[...] = jnp.dot(hf.astype(bf), wget("wte_t"),
                                  preferred_element_type=jnp.float32)

    return kernel


# ---------------- wrapper-side weight packing (free layout plumbing) ---------
def _pack_buffers(params):
    hd = HEAD_DIM
    w_parts = {"clip_w1": params["clip_w1"], "clip_w2": params["clip_w2"],
               "wte_t": params["wte"].T}
    v_parts = {"clip_b1": params["clip_b1"], "clip_b2": params["clip_b2"],
               "ln_f_g": params["ln_f_g"], "ln_f_b": params["ln_f_b"]}
    for li, blk in enumerate(params["blocks"]):
        wqkv = blk["w_qkv"]
        bqkv = blk["b_qkv"].reshape(-1)
        for hi in range(N_HEAD):
            w_parts[f"wq_{li}_{hi}"] = wqkv[:, 0 * D_MODEL + hi * hd: 0 * D_MODEL + (hi + 1) * hd]
            w_parts[f"wk_{li}_{hi}"] = wqkv[:, 1 * D_MODEL + hi * hd: 1 * D_MODEL + (hi + 1) * hd]
            w_parts[f"wv_{li}_{hi}"] = wqkv[:, 2 * D_MODEL + hi * hd: 2 * D_MODEL + (hi + 1) * hd]
            w_parts[f"wo_{li}_{hi}"] = blk["w_o"][hi * hd:(hi + 1) * hd, :]
            v_parts[f"bq_{li}_{hi}"] = bqkv[0 * D_MODEL + hi * hd: 0 * D_MODEL + (hi + 1) * hd]
            v_parts[f"bk_{li}_{hi}"] = bqkv[1 * D_MODEL + hi * hd: 1 * D_MODEL + (hi + 1) * hd]
            v_parts[f"bv_{li}_{hi}"] = bqkv[2 * D_MODEL + hi * hd: 2 * D_MODEL + (hi + 1) * hd]
        w_parts[f"wfc_{li}"] = blk["w_fc"]
        w_parts[f"wpr_{li}"] = blk["w_pr"]
        v_parts[f"ln1_g_{li}"] = blk["ln1_g"]
        v_parts[f"ln1_b_{li}"] = blk["ln1_b"]
        v_parts[f"bo_{li}"] = blk["b_o"]
        v_parts[f"ln2_g_{li}"] = blk["ln2_g"]
        v_parts[f"ln2_b_{li}"] = blk["ln2_b"]
        v_parts[f"bfc_{li}"] = blk["b_fc"]
        v_parts[f"bpr_{li}"] = blk["b_pr"]

    w_rows = []
    for name, r, c, rp in W_ITEMS:
        a = w_parts[name].astype(jnp.bfloat16)
        w_rows.append(jnp.pad(a, ((0, rp - r), (0, LANES - c))))
    w_buf = jnp.concatenate(w_rows, axis=0)
    if w_buf.shape[0] < W_ROWS:
        w_buf = jnp.pad(w_buf, ((0, W_ROWS - w_buf.shape[0]), (0, 0)))

    v_rows = []
    for name, c in V_ITEMS:
        vv = v_parts[name].reshape(-1).astype(jnp.float32)
        v_rows.append(jnp.pad(vv, (0, LANES - c))[None, :])
    v_buf = jnp.concatenate(v_rows, axis=0)
    if v_buf.shape[0] < V_ROWS:
        v_buf = jnp.pad(v_buf, ((0, V_ROWS - v_buf.shape[0]), (0, 0)))
    return w_buf, v_buf


# ---------------- full forward (ClipCaptionModel.forward) --------------------
def clip_caption_forward(params, tokens, prefix):
    B, S = tokens.shape
    T = PREFIX_LENGTH + S
    Tp = _round_up(T, 8)                       # pad rows per batch to sublane multiple

    wte, wpe = params["wte"], params["wpe"]
    # embedding_text = self.gpt.transformer.wte(tokens)  (gather: plain-JAX glue)
    embedding_text = jnp.take(wte, tokens, axis=0)                  # (B, S, D)

    # base rows = position embeddings + text embeddings at rows [L:T); zero pad rows.
    pos = wpe[:Tp]                                                  # (Tp, D)
    emb_pad = jnp.concatenate(
        [jnp.zeros((B, PREFIX_LENGTH, D_MODEL), jnp.float32),
         embedding_text.astype(jnp.float32),
         jnp.zeros((B, Tp - T, D_MODEL), jnp.float32)], axis=1)     # (B, Tp, D)
    base = (emb_pad + pos[None, :, :]).reshape(B * Tp, D_MODEL)     # (B*Tp, D)

    w_buf, v_buf = _pack_buffers(params)                            # 2 packed DMAs

    kernel = _build_kernel(B, Tp)
    out = pl.pallas_call(
        kernel,
        out_shape=jax.ShapeDtypeStruct((B * Tp, VOCAB), jnp.float32),
        in_specs=[_vmem()] * 4,
        out_specs=_vmem(),
    )(prefix, base, w_buf, v_buf)

    # TODO(synk): labels-branch (cross-entropy loss with dummy prefix tokens) and
    # attention_mask are not exercised here (forward runs with mask=None, labels=None).
    return out.reshape(B, Tp, VOCAB)[:, :T, :]                      # drop pad rows


# ---------------- deterministic parameter init --------------------------------
def init_params(key):
    ks = jax.random.split(key, 32)
    it = iter(ks)

    def nrm(shape, scale=0.02):
        return (scale * jax.random.normal(next(it), shape)).astype(jnp.float32)

    hidden = HIDDEN_CLIP
    out_dim = D_MODEL * PREFIX_LENGTH
    params = {
        "wte": nrm((VOCAB, D_MODEL)),
        "wpe": nrm((MAX_POS, D_MODEL)),
        "clip_w1": nrm((PREFIX_SIZE, hidden)),
        "clip_b1": jnp.zeros((1, hidden), jnp.float32),
        "clip_w2": nrm((hidden, out_dim)),
        "clip_b2": jnp.zeros((1, out_dim), jnp.float32),
        "ln_f_g": jnp.ones((1, D_MODEL), jnp.float32),
        "ln_f_b": jnp.zeros((1, D_MODEL), jnp.float32),
        "blocks": [],
    }
    for _ in range(N_LAYER):
        params["blocks"].append({
            "ln1_g": jnp.ones((1, D_MODEL), jnp.float32),
            "ln1_b": jnp.zeros((1, D_MODEL), jnp.float32),
            "w_qkv": nrm((D_MODEL, 3 * D_MODEL)),
            "b_qkv": jnp.zeros((1, 3 * D_MODEL), jnp.float32),
            "w_o": nrm((D_MODEL, D_MODEL)),
            "b_o": jnp.zeros((1, D_MODEL), jnp.float32),
            "ln2_g": jnp.ones((1, D_MODEL), jnp.float32),
            "ln2_b": jnp.zeros((1, D_MODEL), jnp.float32),
            "w_fc": nrm((D_MODEL, 4 * D_MODEL)),
            "b_fc": jnp.zeros((1, 4 * D_MODEL), jnp.float32),
            "w_pr": nrm((4 * D_MODEL, D_MODEL)),
            "b_pr": jnp.zeros((1, D_MODEL), jnp.float32),
        })
    return params


if __name__ == "__main__":
    key = jax.random.PRNGKey(0)
    k_param, k_tok, k_pre = jax.random.split(key, 3)

    params = init_params(k_param)
    tokens = jax.random.randint(k_tok, (BATCH, SEQ_LEN), 0, VOCAB, dtype=jnp.int32)
    prefix = jax.random.normal(k_pre, (BATCH, PREFIX_SIZE), dtype=jnp.float32)

    logits = clip_caption_forward(params, tokens, prefix)
    logits = jax.block_until_ready(logits)

    expected_T = PREFIX_LENGTH + SEQ_LEN
    assert logits.shape == (BATCH, expected_T, VOCAB), logits.shape
    assert bool(jnp.all(jnp.isfinite(logits)))
    print("KERNEL_OK")
</pallas_src>

<mosaic_0001>
module attributes {stable_mosaic.version = 11 : i64} {
  func.func @kernel(%arg0: memref<2x16xf32, #tpu.memory_space<vmem>>, %arg1: memref<32x32xf32, #tpu.memory_space<vmem>>, %arg2: memref<880x128xbf16, #tpu.memory_space<vmem>>, %arg3: memref<32x128xf32, #tpu.memory_space<vmem>>, %arg4: memref<32x128xf32, #tpu.memory_space<vmem>>) attributes {dimension_semantics = [], scalar_prefetch = 0 : i64, scratch_operands = 0 : i64, tpu.core_type = #tpu.core_type<tc>} {
    %0 = tpu.iota {dimensions = array<i32: 0>} : vector<16x16xi32>
    %1 = tpu.iota {dimensions = array<i32: 1>} : vector<16x16xi32>
    %2 = arith.cmpi sle, %1, %0 : vector<16x16xi32>
    %cst = arith.constant 0.000000e+00 : f32
    %cst_0 = arith.constant -1.000000e+09 : f32
    %3 = vector.broadcast %cst : f32 to vector<16x16xf32>
    %4 = vector.broadcast %cst_0 : f32 to vector<16x16xf32>
    %5 = arith.select %2, %3, %4 : vector<16x16xi1>, vector<16x16xf32>
    %c0 = arith.constant 0 : index
    %c0_1 = arith.constant 0 : index
    %6 = vector.load %arg0[%c0, %c0_1] : memref<2x16xf32, #tpu.memory_space<vmem>>, vector<2x16xf32>
    %7 = arith.truncf %6 : vector<2x16xf32> to vector<2x16xbf16>
    %c0_2 = arith.constant 0 : index
    %c0_3 = arith.constant 0 : index
    %8 = vector.load %arg2[%c0_2, %c0_3] : memref<880x128xbf16, #tpu.memory_space<vmem>>, vector<16x64xbf16>
    %cst_4 = arith.constant dense<0.000000e+00> : vector<2x64xf32>
    %9 = tpu.matmul %7, %8, %cst_4 {dimension_numbers = #tpu.dot_dimension_numbers<[1], [0], [0], [1], [0, 0, 1, 1], [], []>} : vector<2x16xbf16>, vector<16x64xbf16>, vector<2x64xf32> -> vector<2x64xf32>
    %c0_5 = arith.constant 0 : index
    %c0_6 = arith.constant 0 : index
    %10 = vector.load %arg3[%c0_5, %c0_6] : memref<32x128xf32, #tpu.memory_space<vmem>>, vector<1x64xf32>
    %11 = vector.broadcast %10 : vector<1x64xf32> to vector<2x64xf32>
    %12 = arith.addf %9, %11 : vector<2x64xf32>
    %13 = math.tanh %12 : vector<2x64xf32>
    %14 = arith.truncf %13 : vector<2x64xf32> to vector<2x64xbf16>
    %c16 = arith.constant 16 : index
    %c0_7 = arith.constant 0 : index
    %15 = vector.load %arg2[%c16, %c0_7] : memref<880x128xbf16, #tpu.memory_space<vmem>>, vector<64x128xbf16>
    %cst_8 = arith.constant dense<0.000000e+00> : vector<2x128xf32>
    %16 = tpu.matmul %14, %15, %cst_8 {dimension_numbers = #tpu.dot_dimension_numbers<[1], [0], [0], [1], [0, 0, 1, 1], [], []>} : vector<2x64xbf16>, vector<64x128xbf16>, vector<2x128xf32> -> vector<2x128xf32>
    %c1 = arith.constant 1 : index
    %c0_9 = arith.constant 0 : index
    %17 = vector.load %arg3[%c1, %c0_9] : memref<32x128xf32, #tpu.memory_space<vmem>>, vector<1x128xf32>
    %18 = vector.broadcast %17 : vector<1x128xf32> to vector<2x128xf32>
    %19 = arith.addf %16, %18 : vector<2x128xf32>
    %20 = vector.extract_strided_slice %19 {offsets = [0, 0], sizes = [2, 32], strides = [1, 1]} : vector<2x128xf32> to vector<2x32xf32>
    %21 = vector.extract_strided_slice %19 {offsets = [0, 32], sizes = [2, 32], strides = [1, 1]} : vector<2x128xf32> to vector<2x32xf32>
    %22 = vector.extract_strided_slice %19 {offsets = [0, 64], sizes = [2, 32], strides = [1, 1]} : vector<2x128xf32> to vector<2x32xf32>
    %23 = vector.extract_strided_slice %19 {offsets = [0, 96], sizes = [2, 32], strides = [1, 1]} : vector<2x128xf32> to vector<2x32xf32>
    %24 = vector.shape_cast %20 : vector<2x32xf32> to vector<2x1x32xf32>
    %25 = vector.shape_cast %21 : vector<2x32xf32> to vector<2x1x32xf32>
    %26 = vector.shape_cast %22 : vector<2x32xf32> to vector<2x1x32xf32>
    %27 = vector.shape_cast %23 : vector<2x32xf32> to vector<2x1x32xf32>
    %28 = tpu.concatenate %24, %25, %26, %27 in 1 : vector<2x1x32xf32>, vector<2x1x32xf32>, vector<2x1x32xf32>, vector<2x1x32xf32> -> vector<2x4x32xf32>
    %cst_10 = arith.constant 0.000000e+00 : f32
    %29 = vector.broadcast %cst_10 : f32 to vector<2x12x32xf32>
    %30 = tpu.concatenate %28, %29 in 1 : vector<2x4x32xf32>, vector<2x12x32xf32> -> vector<2x16x32xf32>
    %c0_11 = arith.constant 0 : index
    %c0_12 = arith.constant 0 : index
    %31 = vector.load %arg1[%c0_11, %c0_12] : memref<32x32xf32, #tpu.memory_space<vmem>>, vector<32x32xf32>
    %32 = vector.shape_cast %30 : vector<2x16x32xf32> to vector<32x32xf32>
    %33 = arith.addf %31, %32 : vector<32x32xf32>
    %c2 = arith.constant 2 : index
    %c0_13 = arith.constant 0 : index
    %34 = vector.load %arg3[%c2, %c0_13] : memref<32x128xf32, #tpu.memory_space<vmem>>, vector<1x32xf32>
    %c3 = arith.constant 3 : index
    %c0_14 = arith.constant 0 : index
    %35 = vector.load %arg3[%c3, %c0_14] : memref<32x128xf32, #tpu.memory_space<vmem>>, vector<1x32xf32>
    %cst_15 = arith.constant dense<0.000000e+00> : vector<32xf32>
    %36 = vector.multi_reduction <add>, %33, %cst_15 [1] : vector<32x32xf32> to vector<32xf32>
    %37 = vector.shape_cast %36 : vector<32xf32> to vector<32x1xf32>
    %cst_16 = arith.constant 3.200000e+01 : f32
    %38 = vector.broadcast %cst_16 : f32 to vector<32x1xf32>
    %39 = arith.divf %37, %38 : vector<32x1xf32>
    %40 = vector.broadcast %39 : vector<32x1xf32> to vector<32x32xf32>
    %41 = arith.subf %33, %40 : vector<32x32xf32>
    %42 = arith.mulf %41, %41 : vector<32x32xf32>
    %cst_17 = arith.constant dense<0.000000e+00> : vector<32xf32>
    %43 = vector.multi_reduction <add>, %42, %cst_17 [1] : vector<32x32xf32> to vector<32xf32>
    %44 = vector.shape_cast %43 : vector<32xf32> to vector<32x1xf32>
    %cst_18 = arith.constant 3.200000e+01 : f32
    %45 = vector.broadcast %cst_18 : f32 to vector<32x1xf32>
    %46 = arith.divf %44, %45 : vector<32x1xf32>
    %47 = vector.broadcast %39 : vector<32x1xf32> to vector<32x32xf32>
    %48 = arith.subf %33, %47 : vector<32x32xf32>
    %cst_19 = arith.constant 9.99999974E-6 : f32
    %49 = vector.broadcast %cst_19 : f32 to vector<32x1xf32>
    %50 = arith.addf %46, %49 : vector<32x1xf32>
    %51 = math.rsqrt %50 : vector<32x1xf32>
    %52 = vector.broadcast %51 : vector<32x1xf32> to vector<32x32xf32>
    %53 = arith.mulf %48, %52 : vector<32x32xf32>
    %54 = vector.broadcast %34 : vector<1x32xf32> to vector<32x32xf32>
    %55 = arith.mulf %53, %54 : vector<32x32xf32>
    %56 = vector.broadcast %35 : vector<1x32xf32> to vector<32x32xf32>
    %57 = arith.addf %55, %56 : vector<32x32xf32>
    %58 = arith.truncf %57 : vector<32x32xf32> to vector<32x32xbf16>
    %cst_20 = arith.constant 0.000000e+00 : f32
    %59 = vector.broadcast %cst_20 : f32 to vector<32x32xf32>
    %c80 = arith.constant 80 : index
    %c0_21 = arith.constant 0 : index
    %60 = vector.load %arg2[%c80, %c0_21] : memref<880x128xbf16, #tpu.memory_space<vmem>>, vector<32x16xbf16>
    %cst_22 = arith.constant dense<0.000000e+00> : vector<32x16xf32>
    %61 = tpu.matmul %58, %60, %cst_22 {dimension_numbers = #tpu.dot_dimension_numbers<[1], [0], [0], [1], [0, 0, 1, 1], [], []>} : vector<32x32xbf16>, vector<32x16xbf16>, vector<32x16xf32> -> vector<32x16xf32>
    %c4 = arith.constant 4 : index
    %c0_23 = arith.constant 0 : index
    %62 = vector.load %arg3[%c4, %c0_23] : memref<32x128xf32, #tpu.memory_space<vmem>>, vector<1x16xf32>
    %63 = vector.broadcast %62 : vector<1x16xf32> to vector<32x16xf32>
    %64 = arith.addf %61, %63 : vector<32x16xf32>
    %c112 = arith.constant 112 : index
    %c0_24 = arith.constant 0 : index
    %65 = vector.load %arg2[%c112, %c0_24] : memref<880x128xbf16, #tpu.memory_space<vmem>>, vector<32x16xbf16>
    %cst_25 = arith.constant dense<0.000000e+00> : vector<32x16xf32>
    %66 = tpu.matmul %58, %65, %cst_25 {dimension_numbers = #tpu.dot_dimension_numbers<[1], [0], [0], [1], [0, 0, 1, 1], [], []>} : vector<32x32xbf16>, vector<32x16xbf16>, vector<32x16xf32> -> vector<32x16xf32>
    %c5 = arith.constant 5 : index
    %c0_26 = arith.constant 0 : index
    %67 = vector.load %arg3[%c5, %c0_26] : memref<32x128xf32, #tpu.memory_space<vmem>>, vector<1x16xf32>
    %68 = vector.broadcast %67 : vector<1x16xf32> to vector<32x16xf32>
    %69 = arith.addf %66, %68 : vector<32x16xf32>
    %c144 = arith.constant 144 : index
    %c0_27 = arith.constant 0 : index
    %70 = vector.load %arg2[%c144, %c0_27] : memref<880x128xbf16, #tpu.memory_space<vmem>>, vector<32x16xbf16>
    %cst_28 = arith.constant dense<0.000000e+00> : vector<32x16xf32>
    %71 = tpu.matmul %58, %70, %cst_28 {dimension_numbers = #tpu.dot_dimension_numbers<[1], [0], [0], [1], [0, 0, 1, 1], [], []>} : vector<32x32xbf16>, vector<32x16xbf16>, vector<32x16xf32> -> vector<32x16xf32>
    %c6 = arith.constant 6 : index
    %c0_29 = arith.constant 0 : index
    %72 = vector.load %arg3[%c6, %c0_29] : memref<32x128xf32, #tpu.memory_space<vmem>>, vector<1x16xf32>
    %73 = vector.broadcast %72 : vector<1x16xf32> to vector<32x16xf32>
    %74 = arith.addf %71, %73 : vector<32x16xf32>
    %75 = vector.shape_cast %64 : vector<32x16xf32> to vector<2x16x16xf32>
    %76 = arith.truncf %75 : vector<2x16x16xf32> to vector<2x16x16xbf16>
    %77 = vector.shape_cast %69 : vector<32x16xf32> to vector<2x16x16xf32>
    %78 = arith.truncf %77 : vector<2x16x16xf32> to vector<2x16x16xbf16>
    %79 = vector.shape_cast %74 : vector<32x16xf32> to vector<2x16x16xf32>
    %80 = arith.truncf %79 : vector<2x16x16xf32> to vector<2x16x16xbf16>
    "tpu.trace_start"() <{level = 10 : i32, message = "bqd,bkd->bqk"}> : () -> ()
    %cst_30 = arith.constant dense<0.000000e+00> : vector<2x16x16xf32>
    %81 = tpu.matmul %76, %78, %cst_30 {dimension_numbers = #tpu.dot_dimension_numbers<[2], [2], [1], [1], [0, 0, 0, 1, 1, 1], [0], [0]>} : vector<2x16x16xbf16>, vector<2x16x16xbf16>, vector<2x16x16xf32> -> vector<2x16x16xf32>
    "tpu.trace_stop"() : () -> ()
    %cst_31 = arith.constant 2.500000e-01 : f32
    %82 = vector.broadcast %cst_31 : f32 to vector<2x16x16xf32>
    %83 = arith.mulf %81, %82 : vector<2x16x16xf32>
    %84 = vector.shape_cast %5 : vector<16x16xf32> to vector<1x16x16xf32>
    %85 = vector.broadcast %84 : vector<1x16x16xf32> to vector<2x16x16xf32>
    %86 = arith.addf %83, %85 : vector<2x16x16xf32>
    %cst_32 = arith.constant dense<0xFF800000> : vector<2x16xf32>
    %87 = vector.multi_reduction <maximumf>, %86, %cst_32 [2] : vector<2x16x16xf32> to vector<2x16xf32>
    %88 = vector.shape_cast %87 : vector<2x16xf32> to vector<2x16x1xf32>
    %89 = vector.broadcast %88 : vector<2x16x1xf32> to vector<2x16x16xf32>
    %90 = arith.subf %86, %89 : vector<2x16x16xf32>
    %91 = math.exp %90 : vector<2x16x16xf32>
    %cst_33 = arith.constant dense<0.000000e+00> : vector<2x16xf32>
    %92 = vector.multi_reduction <add>, %91, %cst_33 [2] : vector<2x16x16xf32> to vector<2x16xf32>
    %93 = vector.shape_cast %92 : vector<2x16xf32> to vector<2x16x1xf32>
    %94 = tpu.reciprocal %93 {approx = true} : vector<2x16x1xf32> -> vector<2x16x1xf32>
    %95 = vector.broadcast %94 : vector<2x16x1xf32> to vector<2x16x16xf32>
    %96 = arith.mulf %91, %95 : vector<2x16x16xf32>
    %97 = arith.truncf %96 : vector<2x16x16xf32> to vector<2x16x16xbf16>
    "tpu.trace_start"() <{level = 10 : i32, message = "bqk,bkd->bqd"}> : () -> ()
    %cst_34 = arith.constant dense<0.000000e+00> : vector<2x16x16xf32>
    %98 = tpu.matmul %97, %80, %cst_34 {dimension_numbers = #tpu.dot_dimension_numbers<[2], [1], [1], [2], [0, 0, 0, 1, 1, 2], [0], [0]>} : vector<2x16x16xbf16>, vector<2x16x16xbf16>, vector<2x16x16xf32> -> vector<2x16x16xf32>
    "tpu.trace_stop"() : () -> ()
    %99 = vector.shape_cast %98 : vector<2x16x16xf32> to vector<32x16xf32>
    %100 = arith.truncf %99 : vector<32x16xf32> to vector<32x16xbf16>
    %c272 = arith.constant 272 : index
    %c0_35 = arith.constant 0 : index
    %101 = vector.load %arg2[%c272, %c0_35] : memref<880x128xbf16, #tpu.memory_space<vmem>>, vector<16x32xbf16>
    %cst_36 = arith.constant dense<0.000000e+00> : vector<32x32xf32>
    %102 = tpu.matmul %100, %101, %cst_36 {dimension_numbers = #tpu.dot_dimension_numbers<[1], [0], [0], [1], [0, 0, 1, 1], [], []>} : vector<32x16xbf16>, vector<16x32xbf16>, vector<32x32xf32> -> vector<32x32xf32>
    %103 = arith.addf %59, %102 : vector<32x32xf32>
    %c176 = arith.constant 176 : index
    %c0_37 = arith.constant 0 : index
    %104 = vector.load %arg2[%c176, %c0_37] : memref<880x128xbf16, #tpu.memory_space<vmem>>, vector<32x16xbf16>
    %cst_38 = arith.constant dense<0.000000e+00> : vector<32x16xf32>
    %105 = tpu.matmul %58, %104, %cst_38 {dimension_numbers = #tpu.dot_dimension_numbers<[1], [0], [0], [1], [0, 0, 1, 1], [], []>} : vector<32x32xbf16>, vector<32x16xbf16>, vector<32x16xf32> -> vector<32x16xf32>
    %c7 = arith.constant 7 : index
    %c0_39 = arith.constant 0 : index
    %106 = vector.load %arg3[%c7, %c0_39] : memref<32x128xf32, #tpu.memory_space<vmem>>, vector<1x16xf32>
    %107 = vector.broadcast %106 : vector<1x16xf32> to vector<32x16xf32>
    %108 = arith.addf %105, %107 : vector<32x16xf32>
    %c208 = arith.constant 208 : index
    %c0_40 = arith.constant 0 : index
    %109 = vector.load %arg2[%c208, %c0_40] : memref<880x128xbf16, #tpu.memory_space<vmem>>, vector<32x16xbf16>
    %cst_41 = arith.constant dense<0.000000e+00> : vector<32x16xf32>
    %110 = tpu.matmul %58, %109, %cst_41 {dimension_numbers = #tpu.dot_dimension_numbers<[1], [0], [0], [1], [0, 0, 1, 1], [], []>} : vector<32x32xbf16>, vector<32x16xbf16>, vector<32x16xf32> -> vector<32x16xf32>
    %c8 = arith.constant 8 : index
    %c0_42 = arith.constant 0 : index
    %111 = vector.load %arg3[%c8, %c0_42] : memref<32x128xf32, #tpu.memory_space<vmem>>, vector<1x16xf32>
    %112 = vector.broadcast %111 : vector<1x16xf32> to vector<32x16xf32>
    %113 = arith.addf %110, %112 : vector<32x16xf32>
    %c240 = arith.constant 240 : index
    %c0_43 = arith.constant 0 : index
    %114 = vector.load %arg2[%c240, %c0_43] : memref<880x128xbf16, #tpu.memory_space<vmem>>, vector<32x16xbf16>
    %cst_44 = arith.constant dense<0.000000e+00> : vector<32x16xf32>
    %115 = tpu.matmul %58, %114, %cst_44 {dimension_numbers = #tpu.dot_dimension_numbers<[1], [0], [0], [1], [0, 0, 1, 1], [], []>} : vector<32x32xbf16>, vector<32x16xbf16>, vector<32x16xf32> -> vector<32x16xf32>
    %c9 = arith.constant 9 : index
    %c0_45 = arith.constant 0 : index
    %116 = vector.load %arg3[%c9, %c0_45] : memref<32x128xf32, #tpu.memory_space<vmem>>, vector<1x16xf32>
    %117 = vector.broadcast %116 : vector<1x16xf32> to vector<32x16xf32>
    %118 = arith.addf %115, %117 : vector<32x16xf32>
    %119 = vector.shape_cast %108 : vector<32x16xf32> to vector<2x16x16xf32>
    %120 = arith.truncf %119 : vector<2x16x16xf32> to vector<2x16x16xbf16>
    %121 = vector.shape_cast %113 : vector<32x16xf32> to vector<2x16x16xf32>
    %122 = arith.truncf %121 : vector<2x16x16xf32> to vector<2x16x16xbf16>
    %123 = vector.shape_cast %118 : vector<32x16xf32> to vector<2x16x16xf32>
    %124 = arith.truncf %123 : vector<2x16x16xf32> to vector<2x16x16xbf16>
    "tpu.trace_start"() <{level = 10 : i32, message = "bqd,bkd->bqk"}> : () -> ()
    %cst_46 = arith.constant dense<0.000000e+00> : vector<2x16x16xf32>
    %125 = tpu.matmul %120, %122, %cst_46 {dimension_numbers = #tpu.dot_dimension_numbers<[2], [2], [1], [1], [0, 0, 0, 1, 1, 1], [0], [0]>} : vector<2x16x16xbf16>, vector<2x16x16xbf16>, vector<2x16x16xf32> -> vector<2x16x16xf32>
    "tpu.trace_stop"() : () -> ()
    %cst_47 = arith.constant 2.500000e-01 : f32
    %126 = vector.broadcast %cst_47 : f32 to vector<2x16x16xf32>
    %127 = arith.mulf %125, %126 : vector<2x16x16xf32>
    %128 = vector.shape_cast %5 : vector<16x16xf32> to vector<1x16x16xf32>
    %129 = vector.broadcast %128 : vector<1x16x16xf32> to vector<2x16x16xf32>
    %130 = arith.addf %127, %129 : vector<2x16x16xf32>
    %cst_48 = arith.constant dense<0xFF800000> : vector<2x16xf32>
    %131 = vector.multi_reduction <maximumf>, %130, %cst_48 [2] : vector<2x16x16xf32> to vector<2x16xf32>
    %132 = vector.shape_cast %131 : vector<2x16xf32> to vector<2x16x1xf32>
    %133 = vector.broadcast %132 : vector<2x16x1xf32> to vector<2x16x16xf32>
    %134 = arith.subf %130, %133 : vector<2x16x16xf32>
    %135 = math.exp %134 : vector<2x16x16xf32>
    %cst_49 = arith.constant dense<0.000000e+00> : vector<2x16xf32>
    %136 = vector.multi_reduction <add>, %135, %cst_49 [2] : vector<2x16x16xf32> to vector<2x16xf32>
    %137 = vector.shape_cast %136 : vector<2x16xf32> to vector<2x16x1xf32>
    %138 = tpu.reciprocal %137 {approx = true} : vector<2x16x1xf32> -> vector<2x16x1xf32>
    %139 = vector.broadcast %138 : vector<2x16x1xf32> to vector<2x16x16xf32>
    %140 = arith.mulf %135, %139 : vector<2x16x16xf32>
    %141 = arith.truncf %140 : vector<2x16x16xf32> to vector<2x16x16xbf16>
    "tpu.trace_start"() <{level = 10 : i32, message = "bqk,bkd->bqd"}> : () -> ()
    %cst_50 = arith.constant dense<0.000000e+00> : vector<2x16x16xf32>
    %142 = tpu.matmul %141, %124, %cst_50 {dimension_numbers = #tpu.dot_dimension_numbers<[2], [1], [1], [2], [0, 0, 0, 1, 1, 2], [0], [0]>} : vector<2x16x16xbf16>, vector<2x16x16xbf16>, vector<2x16x16xf32> -> vector<2x16x16xf32>
    "tpu.trace_stop"() : () -> ()
    %143 = vector.shape_cast %142 : vector<2x16x16xf32> to vector<32x16xf32>
    %144 = arith.truncf %143 : vector<32x16xf32> to vector<32x16xbf16>
    %c288 = arith.constant 288 : index
    %c0_51 = arith.constant 0 : index
    %145 = vector.load %arg2[%c288, %c0_51] : memref<880x128xbf16, #tpu.memory_space<vmem>>, vector<16x32xbf16>
    %cst_52 = arith.constant dense<0.000000e+00> : vector<32x32xf32>
    %146 = tpu.matmul %144, %145, %cst_52 {dimension_numbers = #tpu.dot_dimension_numbers<[1], [0], [0], [1], [0, 0, 1, 1], [], []>} : vector<32x16xbf16>, vector<16x32xbf16>, vector<32x32xf32> -> vector<32x32xf32>
    %147 = arith.addf %103, %146 : vector<32x32xf32>
    %148 = arith.addf %33, %147 : vector<32x32xf32>
    %c10 = arith.constant 10 : index
    %c0_53 = arith.constant 0 : index
    %149 = vector.load %arg3[%c10, %c0_53] : memref<32x128xf32, #tpu.memory_space<vmem>>, vector<1x32xf32>
    %150 = vector.broadcast %149 : vector<1x32xf32> to vector<32x32xf32>
    %151 = arith.addf %148, %150 : vector<32x32xf32>
    %c11 = arith.constant 11 : index
    %c0_54 = arith.constant 0 : index
    %152 = vector.load %arg3[%c11, %c0_54] : memref<32x128xf32, #tpu.memory_space<vmem>>, vector<1x32xf32>
    %c12 = arith.constant 12 : index
    %c0_55 = arith.constant 0 : index
    %153 = vector.load %arg3[%c12, %c0_55] : memref<32x128xf32, #tpu.memory_space<vmem>>, vector<1x32xf32>
    %cst_56 = arith.constant dense<0.000000e+00> : vector<32xf32>
    %154 = vector.multi_reduction <add>, %151, %cst_56 [1] : vector<32x32xf32> to vector<32xf32>
    %155 = vector.shape_cast %154 : vector<32xf32> to vector<32x1xf32>
    %cst_57 = arith.constant 3.200000e+01 : f32
    %156 = vector.broadcast %cst_57 : f32 to vector<32x1xf32>
    %157 = arith.divf %155, %156 : vector<32x1xf32>
    %158 = vector.broadcast %157 : vector<32x1xf32> to vector<32x32xf32>
    %159 = arith.subf %151, %158 : vector<32x32xf32>
    %160 = arith.mulf %159, %159 : vector<32x32xf32>
    %cst_58 = arith.constant dense<0.000000e+00> : vector<32xf32>
    %161 = vector.multi_reduction <add>, %160, %cst_58 [1] : vector<32x32xf32> to vector<32xf32>
    %162 = vector.shape_cast %161 : vector<32xf32> to vector<32x1xf32>
    %cst_59 = arith.constant 3.200000e+01 : f32
    %163 = vector.broadcast %cst_59 : f32 to vector<32x1xf32>
    %164 = arith.divf %162, %163 : vector<32x1xf32>
    %165 = vector.broadcast %157 : vector<32x1xf32> to vector<32x32xf32>
    %166 = arith.subf %151, %165 : vector<32x32xf32>
    %cst_60 = arith.constant 9.99999974E-6 : f32
    %167 = vector.broadcast %cst_60 : f32 to vector<32x1xf32>
    %168 = arith.addf %164, %167 : vector<32x1xf32>
    %169 = math.rsqrt %168 : vector<32x1xf32>
    %170 = vector.broadcast %169 : vector<32x1xf32> to vector<32x32xf32>
    %171 = arith.mulf %166, %170 : vector<32x32xf32>
    %172 = vector.broadcast %152 : vector<1x32xf32> to vector<32x32xf32>
    %173 = arith.mulf %171, %172 : vector<32x32xf32>
    %174 = vector.broadcast %153 : vector<1x32xf32> to vector<32x32xf32>
    %175 = arith.addf %173, %174 : vector<32x32xf32>
    %176 = arith.truncf %175 : vector<32x32xf32> to vector<32x32xbf16>
    %c304 = arith.constant 304 : index
    %c0_61 = arith.constant 0 : index
    %177 = vector.load %arg2[%c304, %c0_61] : memref<880x128xbf16, #tpu.memory_space<vmem>>, vector<32x128xbf16>
    %cst_62 = arith.constant dense<0.000000e+00> : vector<32x128xf32>
    %178 = tpu.matmul %176, %177, %cst_62 {dimension_numbers = #tpu.dot_dimension_numbers<[1], [0], [0], [1], [0, 0, 1, 1], [], []>} : vector<32x32xbf16>, vector<32x128xbf16>, vector<32x128xf32> -> vector<32x128xf32>
    %c13 = arith.constant 13 : index
    %c0_63 = arith.constant 0 : index
    %179 = vector.load %arg3[%c13, %c0_63] : memref<32x128xf32, #tpu.memory_space<vmem>>, vector<1x128xf32>
    %180 = vector.broadcast %179 : vector<1x128xf32> to vector<32x128xf32>
    %181 = arith.addf %178, %180 : vector<32x128xf32>
    %cst_64 = arith.constant 5.000000e-01 : f32
    %182 = vector.broadcast %cst_64 : f32 to vector<32x128xf32>
    %183 = arith.mulf %182, %181 : vector<32x128xf32>
    %cst_65 = arith.constant 4.471500e-02 : f32
    %184 = vector.broadcast %cst_65 : f32 to vector<32x128xf32>
    %185 = arith.mulf %184, %181 : vector<32x128xf32>
    %186 = arith.mulf %185, %181 : vector<32x128xf32>
    %187 = arith.mulf %186, %181 : vector<32x128xf32>
    %188 = arith.addf %181, %187 : vector<32x128xf32>
    %cst_66 = arith.constant 0.797884583 : f32
    %189 = vector.broadcast %cst_66 : f32 to vector<32x128xf32>
    %190 = arith.mulf %189, %188 : vector<32x128xf32>
    %191 = math.tanh %190 : vector<32x128xf32>
    %cst_67 = arith.constant 1.000000e+00 : f32
    %192 = vector.broadcast %cst_67 : f32 to vector<32x128xf32>
    %193 = arith.addf %192, %191 : vector<32x128xf32>
    %194 = arith.mulf %183, %193 : vector<32x128xf32>
    %195 = arith.truncf %194 : vector<32x128xf32> to vector<32x128xbf16>
    %c336 = arith.constant 336 : index
    %c0_68 = arith.constant 0 : index
    %196 = vector.load %arg2[%c336, %c0_68] : memref<880x128xbf16, #tpu.memory_space<vmem>>, vector<128x32xbf16>
    %cst_69 = arith.constant dense<0.000000e+00> : vector<32x32xf32>
    %197 = tpu.matmul %195, %196, %cst_69 {dimension_numbers = #tpu.dot_dimension_numbers<[1], [0], [0], [1], [0, 0, 1, 1], [], []>} : vector<32x128xbf16>, vector<128x32xbf16>, vector<32x32xf32> -> vector<32x32xf32>
    %198 = arith.addf %151, %197 : vector<32x32xf32>
    %c14 = arith.constant 14 : index
    %c0_70 = arith.constant 0 : index
    %199 = vector.load %arg3[%c14, %c0_70] : memref<32x128xf32, #tpu.memory_space<vmem>>, vector<1x32xf32>
    %200 = vector.broadcast %199 : vector<1x32xf32> to vector<32x32xf32>
    %201 = arith.addf %198, %200 : vector<32x32xf32>
    %c15 = arith.constant 15 : index
    %c0_71 = arith.constant 0 : index
    %202 = vector.load %arg3[%c15, %c0_71] : memref<32x128xf32, #tpu.memory_space<vmem>>, vector<1x32xf32>
    %c16_72 = arith.constant 16 : index
    %c0_73 = arith.constant 0 : index
    %203 = vector.load %arg3[%c16_72, %c0_73] : memref<32x128xf32, #tpu.memory_space<vmem>>, vector<1x32xf32>
    %cst_74 = arith.constant dense<0.000000e+00> : vector<32xf32>
    %204 = vector.multi_reduction <add>, %201, %cst_74 [1] : vector<32x32xf32> to vector<32xf32>
    %205 = vector.shape_cast %204 : vector<32xf32> to vector<32x1xf32>
    %cst_75 = arith.constant 3.200000e+01 : f32
    %206 = vector.broadcast %cst_75 : f32 to vector<32x1xf32>
    %207 = arith.divf %205, %206 : vector<32x1xf32>
    %208 = vector.broadcast %207 : vector<32x1xf32> to vector<32x32xf32>
    %209 = arith.subf %201, %208 : vector<32x32xf32>
    %210 = arith.mulf %209, %209 : vector<32x32xf32>
    %cst_76 = arith.constant dense<0.000000e+00> : vector<32xf32>
    %211 = vector.multi_reduction <add>, %210, %cst_76 [1] : vector<32x32xf32> to vector<32xf32>
    %212 = vector.shape_cast %211 : vector<32xf32> to vector<32x1xf32>
    %cst_77 = arith.constant 3.200000e+01 : f32
    %213 = vector.broadcast %cst_77 : f32 to vector<32x1xf32>
    %214 = arith.divf %212, %213 : vector<32x1xf32>
    %215 = vector.broadcast %207 : vector<32x1xf32> to vector<32x32xf32>
    %216 = arith.subf %201, %215 : vector<32x32xf32>
    %cst_78 = arith.constant 9.99999974E-6 : f32
    %217 = vector.broadcast %cst_78 : f32 to vector<32x1xf32>
    %218 = arith.addf %214, %217 : vector<32x1xf32>
    %219 = math.rsqrt %218 : vector<32x1xf32>
    %220 = vector.broadcast %219 : vector<32x1xf32> to vector<32x32xf32>
    %221 = arith.mulf %216, %220 : vector<32x32xf32>
    %222 = vector.broadcast %202 : vector<1x32xf32> to vector<32x32xf32>
    %223 = arith.mulf %221, %222 : vector<32x32xf32>
    %224 = vector.broadcast %203 : vector<1x32xf32> to vector<32x32xf32>
    %225 = arith.addf %223, %224 : vector<32x32xf32>
    %226 = arith.truncf %225 : vector<32x32xf32> to vector<32x32xbf16>
    %cst_79 = arith.constant 0.000000e+00 : f32
    %227 = vector.broadcast %cst_79 : f32 to vector<32x32xf32>
    %c464 = arith.constant 464 : index
    %c0_80 = arith.constant 0 : index
    %228 = vector.load %arg2[%c464, %c0_80] : memref<880x128xbf16, #tpu.memory_space<vmem>>, vector<32x16xbf16>
    %cst_81 = arith.constant dense<0.000000e+00> : vector<32x16xf32>
    %229 = tpu.matmul %226, %228, %cst_81 {dimension_numbers = #tpu.dot_dimension_numbers<[1], [0], [0], [1], [0, 0, 1, 1], [], []>} : vector<32x32xbf16>, vector<32x16xbf16>, vector<32x16xf32> -> vector<32x16xf32>
    %c17 = arith.constant 17 : index
    %c0_82 = arith.constant 0 : index
    %230 = vector.load %arg3[%c17, %c0_82] : memref<32x128xf32, #tpu.memory_space<vmem>>, vector<1x16xf32>
    %231 = vector.broadcast %230 : vector<1x16xf32> to vector<32x16xf32>
    %232 = arith.addf %229, %231 : vector<32x16xf32>
    %c496 = arith.constant 496 : index
    %c0_83 = arith.constant 0 : index
    %233 = vector.load %arg2[%c496, %c0_83] : memref<880x128xbf16, #tpu.memory_space<vmem>>, vector<32x16xbf16>
    %cst_84 = arith.constant dense<0.000000e+00> : vector<32x16xf32>
    %234 = tpu.matmul %226, %233, %cst_84 {dimension_numbers = #tpu.dot_dimension_numbers<[1], [0], [0], [1], [0, 0, 1, 1], [], []>} : vector<32x32xbf16>, vector<32x16xbf16>, vector<32x16xf32> -> vector<32x16xf32>
    %c18 = arith.constant 18 : index
    %c0_85 = arith.constant 0 : index
    %235 = vector.load %arg3[%c18, %c0_85] : memref<32x128xf32, #tpu.memory_space<vmem>>, vector<1x16xf32>
    %236 = vector.broadcast %235 : vector<1x16xf32> to vector<32x16xf32>
    %237 = arith.addf %234, %236 : vector<32x16xf32>
    %c528 = arith.constant 528 : index
    %c0_86 = arith.constant 0 : index
    %238 = vector.load %arg2[%c528, %c0_86] : memref<880x128xbf16, #tpu.memory_space<vmem>>, vector<32x16xbf16>
    %cst_87 = arith.constant dense<0.000000e+00> : vector<32x16xf32>
    %239 = tpu.matmul %226, %238, %cst_87 {dimension_numbers = #tpu.dot_dimension_numbers<[1], [0], [0], [1], [0, 0, 1, 1], [], []>} : vector<32x32xbf16>, vector<32x16xbf16>, vector<32x16xf32> -> vector<32x16xf32>
    %c19 = arith.constant 19 : index
    %c0_88 = arith.constant 0 : index
    %240 = vector.load %arg3[%c19, %c0_88] : memref<32x128xf32, #tpu.memory_space<vmem>>, vector<1x16xf32>
    %241 = vector.broadcast %240 : vector<1x16xf32> to vector<32x16xf32>
    %242 = arith.addf %239, %241 : vector<32x16xf32>
    %243 = vector.shape_cast %232 : vector<32x16xf32> to vector<2x16x16xf32>
    %244 = arith.truncf %243 : vector<2x16x16xf32> to vector<2x16x16xbf16>
    %245 = vector.shape_cast %237 : vector<32x16xf32> to vector<2x16x16xf32>
    %246 = arith.truncf %245 : vector<2x16x16xf32> to vector<2x16x16xbf16>
    %247 = vector.shape_cast %242 : vector<32x16xf32> to vector<2x16x16xf32>
    %248 = arith.truncf %247 : vector<2x16x16xf32> to vector<2x16x16xbf16>
    "tpu.trace_start"() <{level = 10 : i32, message = "bqd,bkd->bqk"}> : () -> ()
    %cst_89 = arith.constant dense<0.000000e+00> : vector<2x16x16xf32>
    %249 = tpu.matmul %244, %246, %cst_89 {dimension_numbers = #tpu.dot_dimension_numbers<[2], [2], [1], [1], [0, 0, 0, 1, 1, 1], [0], [0]>} : vector<2x16x16xbf16>, vector<2x16x16xbf16>, vector<2x16x16xf32> -> vector<2x16x16xf32>
    "tpu.trace_stop"() : () -> ()
    %cst_90 = arith.constant 2.500000e-01 : f32
    %250 = vector.broadcast %cst_90 : f32 to vector<2x16x16xf32>
    %251 = arith.mulf %249, %250 : vector<2x16x16xf32>
    %252 = vector.shape_cast %5 : vector<16x16xf32> to vector<1x16x16xf32>
    %253 = vector.broadcast %252 : vector<1x16x16xf32> to vector<2x16x16xf32>
    %254 = arith.addf %251, %253 : vector<2x16x16xf32>
    %cst_91 = arith.constant dense<0xFF800000> : vector<2x16xf32>
    %255 = vector.multi_reduction <maximumf>, %254, %cst_91 [2] : vector<2x16x16xf32> to vector<2x16xf32>
    %256 = vector.shape_cast %255 : vector<2x16xf32> to vector<2x16x1xf32>
    %257 = vector.broadcast %256 : vector<2x16x1xf32> to vector<2x16x16xf32>
    %258 = arith.subf %254, %257 : vector<2x16x16xf32>
    %259 = math.exp %258 : vector<2x16x16xf32>
    %cst_92 = arith.constant dense<0.000000e+00> : vector<2x16xf32>
    %260 = vector.multi_reduction <add>, %259, %cst_92 [2] : vector<2x16x16xf32> to vector<2x16xf32>
    %261 = vector.shape_cast %260 : vector<2x16xf32> to vector<2x16x1xf32>
    %262 = tpu.reciprocal %261 {approx = true} : vector<2x16x1xf32> -> vector<2x16x1xf32>
    %263 = vector.broadcast %262 : vector<2x16x1xf32> to vector<2x16x16xf32>
    %264 = arith.mulf %259, %263 : vector<2x16x16xf32>
    %265 = arith.truncf %264 : vector<2x16x16xf32> to vector<2x16x16xbf16>
    "tpu.trace_start"() <{level = 10 : i32, message = "bqk,bkd->bqd"}> : () -> ()
    %cst_93 = arith.constant dense<0.000000e+00> : vector<2x16x16xf32>
    %266 = tpu.matmul %265, %248, %cst_93 {dimension_numbers = #tpu.dot_dimension_numbers<[2], [1], [1], [2], [0, 0, 0, 1, 1, 2], [0], [0]>} : vector<2x16x16xbf16>, vector<2x16x16xbf16>, vector<2x16x16xf32> -> vector<2x16x16xf32>
    "tpu.trace_stop"() : () -> ()
    %267 = vector.shape_cast %266 : vector<2x16x16xf32> to vector<32x16xf32>
    %268 = arith.truncf %267 : vector<32x16xf32> to vector<32x16xbf16>
    %c656 = arith.constant 656 : index
    %c0_94 = arith.constant 0 : index
    %269 = vector.load %arg2[%c656, %c0_94] : memref<880x128xbf16, #tpu.memory_space<vmem>>, vector<16x32xbf16>
    %cst_95 = arith.constant dense<0.000000e+00> : vector<32x32xf32>
    %270 = tpu.matmul %268, %269, %cst_95 {dimension_numbers = #tpu.dot_dimension_numbers<[1], [0], [0], [1], [0, 0, 1, 1], [], []>} : vector<32x16xbf16>, vector<16x32xbf16>, vector<32x32xf32> -> vector<32x32xf32>
    %271 = arith.addf %227, %270 : vector<32x32xf32>
    %c560 = arith.constant 560 : index
    %c0_96 = arith.constant 0 : index
    %272 = vector.load %arg2[%c560, %c0_96] : memref<880x128xbf16, #tpu.memory_space<vmem>>, vector<32x16xbf16>
    %cst_97 = arith.constant dense<0.000000e+00> : vector<32x16xf32>
    %273 = tpu.matmul %226, %272, %cst_97 {dimension_numbers = #tpu.dot_dimension_numbers<[1], [0], [0], [1], [0, 0, 1, 1], [], []>} : vector<32x32xbf16>, vector<32x16xbf16>, vector<32x16xf32> -> vector<32x16xf32>
    %c20 = arith.constant 20 : index
    %c0_98 = arith.constant 0 : index
    %274 = vector.load %arg3[%c20, %c0_98] : memref<32x128xf32, #tpu.memory_space<vmem>>, vector<1x16xf32>
    %275 = vector.broadcast %274 : vector<1x16xf32> to vector<32x16xf32>
    %276 = arith.addf %273, %275 : vector<32x16xf32>
    %c592 = arith.constant 592 : index
    %c0_99 = arith.constant 0 : index
    %277 = vector.load %arg2[%c592, %c0_99] : memref<880x128xbf16, #tpu.memory_space<vmem>>, vector<32x16xbf16>
    %cst_100 = arith.constant dense<0.000000e+00> : vector<32x16xf32>
    %278 = tpu.matmul %226, %277, %cst_100 {dimension_numbers = #tpu.dot_dimension_numbers<[1], [0], [0], [1], [0, 0, 1, 1], [], []>} : vector<32x32xbf16>, vector<32x16xbf16>, vector<32x16xf32> -> vector<32x16xf32>
    %c21 = arith.constant 21 : index
    %c0_101 = arith.constant 0 : index
    %279 = vector.load %arg3[%c21, %c0_101] : memref<32x128xf32, #tpu.memory_space<vmem>>, vector<1x16xf32>
    %280 = vector.broadcast %279 : vector<1x16xf32> to vector<32x16xf32>
    %281 = arith.addf %278, %280 : vector<32x16xf32>
    %c624 = arith.constant 624 : index
    %c0_102 = arith.constant 0 : index
    %282 = vector.load %arg2[%c624, %c0_102] : memref<880x128xbf16, #tpu.memory_space<vmem>>, vector<32x16xbf16>
    %cst_103 = arith.constant dense<0.000000e+00> : vector<32x16xf32>
    %283 = tpu.matmul %226, %282, %cst_103 {dimension_numbers = #tpu.dot_dimension_numbers<[1], [0], [0], [1], [0, 0, 1, 1], [], []>} : vector<32x32xbf16>, vector<32x16xbf16>, vector<32x16xf32> -> vector<32x16xf32>
    %c22 = arith.constant 22 : index
    %c0_104 = arith.constant 0 : index
    %284 = vector.load %arg3[%c22, %c0_104] : memref<32x128xf32, #tpu.memory_space<vmem>>, vector<1x16xf32>
    %285 = vector.broadcast %284 : vector<1x16xf32> to vector<32x16xf32>
    %286 = arith.addf %283, %285 : vector<32x16xf32>
    %287 = vector.shape_cast %276 : vector<32x16xf32> to vector<2x16x16xf32>
    %288 = arith.truncf %287 : vector<2x16x16xf32> to vector<2x16x16xbf16>
    %289 = vector.shape_cast %281 : vector<32x16xf32> to vector<2x16x16xf32>
    %290 = arith.truncf %289 : vector<2x16x16xf32> to vector<2x16x16xbf16>
    %291 = vector.shape_cast %286 : vector<32x16xf32> to vector<2x16x16xf32>
    %292 = arith.truncf %291 : vector<2x16x16xf32> to vector<2x16x16xbf16>
    "tpu.trace_start"() <{level = 10 : i32, message = "bqd,bkd->bqk"}> : () -> ()
    %cst_105 = arith.constant dense<0.000000e+00> : vector<2x16x16xf32>
    %293 = tpu.matmul %288, %290, %cst_105 {dimension_numbers = #tpu.dot_dimension_numbers<[2], [2], [1], [1], [0, 0, 0, 1, 1, 1], [0], [0]>} : vector<2x16x16xbf16>, vector<2x16x16xbf16>, vector<2x16x16xf32> -> vector<2x16x16xf32>
    "tpu.trace_stop"() : () -> ()
    %cst_106 = arith.constant 2.500000e-01 : f32
    %294 = vector.broadcast %cst_106 : f32 to vector<2x16x16xf32>
    %295 = arith.mulf %293, %294 : vector<2x16x16xf32>
    %296 = vector.shape_cast %5 : vector<16x16xf32> to vector<1x16x16xf32>
    %297 = vector.broadcast %296 : vector<1x16x16xf32> to vector<2x16x16xf32>
    %298 = arith.addf %295, %297 : vector<2x16x16xf32>
    %cst_107 = arith.constant dense<0xFF800000> : vector<2x16xf32>
    %299 = vector.multi_reduction <maximumf>, %298, %cst_107 [2] : vector<2x16x16xf32> to vector<2x16xf32>
    %300 = vector.shape_cast %299 : vector<2x16xf32> to vector<2x16x1xf32>
    %301 = vector.broadcast %300 : vector<2x16x1xf32> to vector<2x16x16xf32>
    %302 = arith.subf %298, %301 : vector<2x16x16xf32>
    %303 = math.exp %302 : vector<2x16x16xf32>
    %cst_108 = arith.constant dense<0.000000e+00> : vector<2x16xf32>
    %304 = vector.multi_reduction <add>, %303, %cst_108 [2] : vector<2x16x16xf32> to vector<2x16xf32>
    %305 = vector.shape_cast %304 : vector<2x16xf32> to vector<2x16x1xf32>
    %306 = tpu.reciprocal %305 {approx = true} : vector<2x16x1xf32> -> vector<2x16x1xf32>
    %307 = vector.broadcast %306 : vector<2x16x1xf32> to vector<2x16x16xf32>
    %308 = arith.mulf %303, %307 : vector<2x16x16xf32>
    %309 = arith.truncf %308 : vector<2x16x16xf32> to vector<2x16x16xbf16>
    "tpu.trace_start"() <{level = 10 : i32, message = "bqk,bkd->bqd"}> : () -> ()
    %cst_109 = arith.constant dense<0.000000e+00> : vector<2x16x16xf32>
    %310 = tpu.matmul %309, %292, %cst_109 {dimension_numbers = #tpu.dot_dimension_numbers<[2], [1], [1], [2], [0, 0, 0, 1, 1, 2], [0], [0]>} : vector<2x16x16xbf16>, vector<2x16x16xbf16>, vector<2x16x16xf32> -> vector<2x16x16xf32>
    "tpu.trace_stop"() : () -> ()
    %311 = vector.shape_cast %310 : vector<2x16x16xf32> to vector<32x16xf32>
    %312 = arith.truncf %311 : vector<32x16xf32> to vector<32x16xbf16>
    %c672 = arith.constant 672 : index
    %c0_110 = arith.constant 0 : index
    %313 = vector.load %arg2[%c672, %c0_110] : memref<880x128xbf16, #tpu.memory_space<vmem>>, vector<16x32xbf16>
    %cst_111 = arith.constant dense<0.000000e+00> : vector<32x32xf32>
    %314 = tpu.matmul %312, %313, %cst_111 {dimension_numbers = #tpu.dot_dimension_numbers<[1], [0], [0], [1], [0, 0, 1, 1], [], []>} : vector<32x16xbf16>, vector<16x32xbf16>, vector<32x32xf32> -> vector<32x32xf32>
    %315 = arith.addf %271, %314 : vector<32x32xf32>
    %316 = arith.addf %201, %315 : vector<32x32xf32>
    %c23 = arith.constant 23 : index
    %c0_112 = arith.constant 0 : index
    %317 = vector.load %arg3[%c23, %c0_112] : memref<32x128xf32, #tpu.memory_space<vmem>>, vector<1x32xf32>
    %318 = vector.broadcast %317 : vector<1x32xf32> to vector<32x32xf32>
    %319 = arith.addf %316, %318 : vector<32x32xf32>
    %c24 = arith.constant 24 : index
    %c0_113 = arith.constant 0 : index
    %320 = vector.load %arg3[%c24, %c0_113] : memref<32x128xf32, #tpu.memory_space<vmem>>, vector<1x32xf32>
    %c25 = arith.constant 25 : index
    %c0_114 = arith.constant 0 : index
    %321 = vector.load %arg3[%c25, %c0_114] : memref<32x128xf32, #tpu.memory_space<vmem>>, vector<1x32xf32>
    %cst_115 = arith.constant dense<0.000000e+00> : vector<32xf32>
    %322 = vector.multi_reduction <add>, %319, %cst_115 [1] : vector<32x32xf32> to vector<32xf32>
    %323 = vector.shape_cast %322 : vector<32xf32> to vector<32x1xf32>
    %cst_116 = arith.constant 3.200000e+01 : f32
    %324 = vector.broadcast %cst_116 : f32 to vector<32x1xf32>
    %325 = arith.divf %323, %324 : vector<32x1xf32>
    %326 = vector.broadcast %325 : vector<32x1xf32> to vector<32x32xf32>
    %327 = arith.subf %319, %326 : vector<32x32xf32>
    %328 = arith.mulf %327, %327 : vector<32x32xf32>
    %cst_117 = arith.constant dense<0.000000e+00> : vector<32xf32>
    %329 = vector.multi_reduction <add>, %328, %cst_117 [1] : vector<32x32xf32> to vector<32xf32>
    %330 = vector.shape_cast %329 : vector<32xf32> to vector<32x1xf32>
    %cst_118 = arith.constant 3.200000e+01 : f32
    %331 = vector.broadcast %cst_118 : f32 to vector<32x1xf32>
    %332 = arith.divf %330, %331 : vector<32x1xf32>
    %333 = vector.broadcast %325 : vector<32x1xf32> to vector<32x32xf32>
    %334 = arith.subf %319, %333 : vector<32x32xf32>
    %cst_119 = arith.constant 9.99999974E-6 : f32
    %335 = vector.broadcast %cst_119 : f32 to vector<32x1xf32>
    %336 = arith.addf %332, %335 : vector<32x1xf32>
    %337 = math.rsqrt %336 : vector<32x1xf32>
    %338 = vector.broadcast %337 : vector<32x1xf32> to vector<32x32xf32>
    %339 = arith.mulf %334, %338 : vector<32x32xf32>
    %340 = vector.broadcast %320 : vector<1x32xf32> to vector<32x32xf32>
    %341 = arith.mulf %339, %340 : vector<32x32xf32>
    %342 = vector.broadcast %321 : vector<1x32xf32> to vector<32x32xf32>
    %343 = arith.addf %341, %342 : vector<32x32xf32>
    %344 = arith.truncf %343 : vector<32x32xf32> to vector<32x32xbf16>
    %c688 = arith.constant 688 : index
    %c0_120 = arith.constant 0 : index
    %345 = vector.load %arg2[%c688, %c0_120] : memref<880x128xbf16, #tpu.memory_space<vmem>>, vector<32x128xbf16>
    %cst_121 = arith.constant dense<0.000000e+00> : vector<32x128xf32>
    %346 = tpu.matmul %344, %345, %cst_121 {dimension_numbers = #tpu.dot_dimension_numbers<[1], [0], [0], [1], [0, 0, 1, 1], [], []>} : vector<32x32xbf16>, vector<32x128xbf16>, vector<32x128xf32> -> vector<32x128xf32>
    %c26 = arith.constant 26 : index
    %c0_122 = arith.constant 0 : index
    %347 = vector.load %arg3[%c26, %c0_122] : memref<32x128xf32, #tpu.memory_space<vmem>>, vector<1x128xf32>
    %348 = vector.broadcast %347 : vector<1x128xf32> to vector<32x128xf32>
    %349 = arith.addf %346, %348 : vector<32x128xf32>
    %cst_123 = arith.constant 5.000000e-01 : f32
    %350 = vector.broadcast %cst_123 : f32 to vector<32x128xf32>
    %351 = arith.mulf %350, %349 : vector<32x128xf32>
    %cst_124 = arith.constant 4.471500e-02 : f32
    %352 = vector.broadcast %cst_124 : f32 to vector<32x128xf32>
    %353 = arith.mulf %352, %349 : vector<32x128xf32>
    %354 = arith.mulf %353, %349 : vector<32x128xf32>
    %355 = arith.mulf %354, %349 : vector<32x128xf32>
    %356 = arith.addf %349, %355 : vector<32x128xf32>
    %cst_125 = arith.constant 0.797884583 : f32
    %357 = vector.broadcast %cst_125 : f32 to vector<32x128xf32>
    %358 = arith.mulf %357, %356 : vector<32x128xf32>
    %359 = math.tanh %358 : vector<32x128xf32>
    %cst_126 = arith.constant 1.000000e+00 : f32
    %360 = vector.broadcast %cst_126 : f32 to vector<32x128xf32>
    %361 = arith.addf %360, %359 : vector<32x128xf32>
    %362 = arith.mulf %351, %361 : vector<32x128xf32>
    %363 = arith.truncf %362 : vector<32x128xf32> to vector<32x128xbf16>
    %c720 = arith.constant 720 : index
    %c0_127 = arith.constant 0 : index
    %364 = vector.load %arg2[%c720, %c0_127] : memref<880x128xbf16, #tpu.memory_space<vmem>>, vector<128x32xbf16>
    %cst_128 = arith.constant dense<0.000000e+00> : vector<32x32xf32>
    %365 = tpu.matmul %363, %364, %cst_128 {dimension_numbers = #tpu.dot_dimension_numbers<[1], [0], [0], [1], [0, 0, 1, 1], [], []>} : vector<32x128xbf16>, vector<128x32xbf16>, vector<32x32xf32> -> vector<32x32xf32>
    %366 = arith.addf %319, %365 : vector<32x32xf32>
    %c27 = arith.constant 27 : index
    %c0_129 = arith.constant 0 : index
    %367 = vector.load %arg3[%c27, %c0_129] : memref<32x128xf32, #tpu.memory_space<vmem>>, vector<1x32xf32>
    %368 = vector.broadcast %367 : vector<1x32xf32> to vector<32x32xf32>
    %369 = arith.addf %366, %368 : vector<32x32xf32>
    %c28 = arith.constant 28 : index
    %c0_130 = arith.constant 0 : index
    %370 = vector.load %arg3[%c28, %c0_130] : memref<32x128xf32, #tpu.memory_space<vmem>>, vector<1x32xf32>
    %c29 = arith.constant 29 : index
    %c0_131 = arith.constant 0 : index
    %371 = vector.load %arg3[%c29, %c0_131] : memref<32x128xf32, #tpu.memory_space<vmem>>, vector<1x32xf32>
    %cst_132 = arith.constant dense<0.000000e+00> : vector<32xf32>
    %372 = vector.multi_reduction <add>, %369, %cst_132 [1] : vector<32x32xf32> to vector<32xf32>
    %373 = vector.shape_cast %372 : vector<32xf32> to vector<32x1xf32>
    %cst_133 = arith.constant 3.200000e+01 : f32
    %374 = vector.broadcast %cst_133 : f32 to vector<32x1xf32>
    %375 = arith.divf %373, %374 : vector<32x1xf32>
    %376 = vector.broadcast %375 : vector<32x1xf32> to vector<32x32xf32>
    %377 = arith.subf %369, %376 : vector<32x32xf32>
    %378 = arith.mulf %377, %377 : vector<32x32xf32>
    %cst_134 = arith.constant dense<0.000000e+00> : vector<32xf32>
    %379 = vector.multi_reduction <add>, %378, %cst_134 [1] : vector<32x32xf32> to vector<32xf32>
    %380 = vector.shape_cast %379 : vector<32xf32> to vector<32x1xf32>
    %cst_135 = arith.constant 3.200000e+01 : f32
    %381 = vector.broadcast %cst_135 : f32 to vector<32x1xf32>
    %382 = arith.divf %380, %381 : vector<32x1xf32>
    %383 = vector.broadcast %375 : vector<32x1xf32> to vector<32x32xf32>
    %384 = arith.subf %369, %383 : vector<32x32xf32>
    %cst_136 = arith.constant 9.99999974E-6 : f32
    %385 = vector.broadcast %cst_136 : f32 to vector<32x1xf32>
    %386 = arith.addf %382, %385 : vector<32x1xf32>
    %387 = math.rsqrt %386 : vector<32x1xf32>
    %388 = vector.broadcast %387 : vector<32x1xf32> to vector<32x32xf32>
    %389 = arith.mulf %384, %388 : vector<32x32xf32>
    %390 = vector.broadcast %370 : vector<1x32xf32> to vector<32x32xf32>
    %391 = arith.mulf %389, %390 : vector<32x32xf32>
    %392 = vector.broadcast %371 : vector<1x32xf32> to vector<32x32xf32>
    %393 = arith.addf %391, %392 : vector<32x32xf32>
    %394 = arith.truncf %393 : vector<32x32xf32> to vector<32x32xbf16>
    %c848 = arith.constant 848 : index
    %c0_137 = arith.constant 0 : index
    %395 = vector.load %arg2[%c848, %c0_137] : memref<880x128xbf16, #tpu.memory_space<vmem>>, vector<32x128xbf16>
    %cst_138 = arith.constant dense<0.000000e+00> : vector<32x128xf32>
    %396 = tpu.matmul %394, %395, %cst_138 {dimension_numbers = #tpu.dot_dimension_numbers<[1], [0], [0], [1], [0, 0, 1, 1], [], []>} : vector<32x32xbf16>, vector<32x128xbf16>, vector<32x128xf32> -> vector<32x128xf32>
    %c0_139 = arith.constant 0 : index
    %c0_140 = arith.constant 0 : index
    %397 = vector.load %arg4[%c0_139, %c0_140] : memref<32x128xf32, #tpu.memory_space<vmem>>, vector<32x128xf32>
    tpu.vector_store %arg4[%c0_139, %c0_140], %396 {strides = array<i32>} : memref<32x128xf32, #tpu.memory_space<vmem>>, vector<32x128xf32>,
    return
  }
}

</mosaic_0001>

<bundles_post_ra>
// kernel: tpu_custom_call.1
= control target key start
LH: loop header
LB: loop body
LE: loop exit
PB: predicated region body
PF: predicated region fallthrough
CT: control target
= control target key end

     0   :  { %9 = vsyncpa [#allocation3], 0  ;;  %s4705_s0 = inlined_call_operand.hbm [shape: f32[2,16], index: 0, kind: input, shape index: {}]   ;;  %s4706_s1 = inlined_call_operand.hbm [shape: f32[32,32], index: 1, kind: input, shape index: {}]   ;;  %s4707_s2 = inlined_call_operand.hbm [shape: bf16[880,128], index: 2, kind: input, shape index: {}]   ;;  %s4708_s3 = inlined_call_operand.hbm [shape: f32[32,128], index: 3, kind: input, shape index: {}]   ;;  %s4709_s4 = inlined_call_operand.hbm [shape: f32[32,128], index: 4, kind: output, shape index: {}]  }
   0x1   :  { %10 = vsyncpa [#allocation6], 0 }
   0x2   :  { %11 = vsyncpa [#allocation9], 0 }
   0x3   :  { %12 = vsyncpa [#allocation4], 0  ;;  %s4224_s15 = smov [#allocation5]   ;;  %s4106_s19 = scalar_lea.hbm %s4706_s1, 512 }
   0x4   :  { %s28_s16 = sshll.u32 %s4224_s15, 4  ;;  %p4107_p0 = scmp.ne.s32.totalorder %s4706_s1, %s4106_s19  ;;  %s29_s16 = int_to_ptr.vmem [resolvable:$true] %s28_s16 }
   0x5   :  { %p4110_p1 = scmp.lt.u32.totalorder %s4106_s19, %s4706_s1 }
   0x7   :  { %p4112_p2 = pnand %p4110_p1, %p4107_p0 }
   0x9   :  { %4115 = shalt.err (!%p4112_p2)
}
   0xa   :  { %s4116_s24 = scalar_lea.vmem %s29_s16, 512  ;;  %p4121_p4 = scmp.lt.s32.totalorder %s29_s16, %s29_s16 }
   0xb   :  { %p4117_p3 = scmp.ne.s32.totalorder %s29_s16, %s4116_s24  ;;  %p4122_p5 = scmp.lt.s32.totalorder %s4116_s24, %s4116_s24 }
   0xd   :  { %p4123_p6 = por %p4122_p5, %p4121_p4 }
   0xf   :  { %p4124_p7 = pnand %p4123_p6, %p4117_p3 }
  0x11   :  { %4127 = shalt.err (!%p4124_p7)
}
  0x12   :  { %s4225_s25 = smov 128   ;;  %s4226_s26 = smov 8  }
  0x13   :  { %34 = dma.hbm_to_vmem [thread:$0]  %s4706_s1, 512, %s29_s16, [#allocation6], %s4225_s25, %s4225_s25, %s4226_s26  }
  0x14   :  { %s4227_s29 = smov [#allocation2]   ;;  %s4228_s5 = smov [#allocation7]  }
  0x15   :  { %s19_s30 = sshll.u32 %s4227_s29, 4  ;;  %s40_s6 = sshll.u32 %s4228_s5, 4  ;;  %s20_s30 = int_to_ptr.vmem [resolvable:$true] %s19_s30  ;;  %s41_s6 = int_to_ptr.vmem [resolvable:$true] %s40_s6 }
  0x16   :  { %s4128_s9 = scalar_lea.hbm %s4705_s0, 32 }
  0x17   :  { %p4129_p8 = scmp.ne.s32.totalorder %s4705_s0, %s4128_s9  ;;  %p4132_p9 = scmp.lt.u32.totalorder %s4128_s9, %s4705_s0 }
  0x19   :  { %p4134_p10 = pnand %p4132_p9, %p4129_p8 }
  0x1b   :  { %4137 = shalt.err (!%p4134_p10)
}
  0x1c   :  { %s4138_s1 = scalar_lea.vmem %s20_s30, 32  ;;  %p4143_p12 = scmp.lt.s32.totalorder %s20_s30, %s20_s30 }
  0x1d   :  { %p4139_p11 = scmp.ne.s32.totalorder %s20_s30, %s4138_s1  ;;  %p4144_p13 = scmp.lt.s32.totalorder %s4138_s1, %s4138_s1 }
  0x1f   :  { %p4145_p0 = por %p4144_p13, %p4143_p12 }
  0x21   :  { %p4146_p1 = pnand %p4145_p0, %p4139_p11 }
  0x23   :  { %4149 = shalt.err (!%p4146_p1)
}
  0x24   :  { %22 = dma.hbm_to_vmem [thread:$0]  %s4705_s0, 32, %s20_s30, [#allocation3]  }
  0x25   :  { %s4150_s18 = scalar_lea.hbm %s4707_s2, 7040 }
  0x26   :  { %p4151_p2 = scmp.ne.s32.totalorder %s4707_s2, %s4150_s18  ;;  %p4154_p3 = scmp.lt.u32.totalorder %s4150_s18, %s4707_s2 }
  0x28   :  { %p4156_p4 = pnand %p4154_p3, %p4151_p2 }
  0x2a   :  { %4159 = shalt.err (!%p4156_p4)
}
  0x2b   :  { %s4160_s23 = scalar_lea.vmem %s41_s6, 7040  ;;  %p4165_p6 = scmp.lt.s32.totalorder %s41_s6, %s41_s6 }
  0x2c   :  { %p4161_p5 = scmp.ne.s32.totalorder %s41_s6, %s4160_s23  ;;  %p4166_p7 = scmp.lt.s32.totalorder %s4160_s23, %s4160_s23 }
  0x2e   :  { %p4167_p8 = por %p4166_p7, %p4165_p6 }
  0x30   :  { %p4168_p9 = pnand %p4167_p8, %p4161_p5 }
  0x32   :  { %4171 = shalt.err (!%p4168_p9)
}
  0x33   :  { %s4229_s0 = smov 64   ;;  %s4230_s24 = smov 4  }
  0x34   :  { %46 = dma.hbm_to_vmem [thread:$0]  %s4707_s2, 7040, %s41_s6, [#allocation6], %s4229_s0, %s4229_s0, %s4230_s24  }
  0x35   :  { %s4231_s29 = smov [#allocation8]   ;;  %s4172_s8 = scalar_lea.hbm %s4708_s3, 512 }
  0x36   :  { %s52_s30 = sshll.u32 %s4231_s29, 4  ;;  %p4173_p10 = scmp.ne.s32.totalorder %s4708_s3, %s4172_s8  ;;  %s53_s30 = int_to_ptr.vmem [resolvable:$true] %s52_s30 }
  0x37   :  { %p4176_p11 = scmp.lt.u32.totalorder %s4172_s8, %s4708_s3 }
  0x39   :  { %p4178_p12 = pnand %p4176_p11, %p4173_p10 }
  0x3b   :  { %4181 = shalt.err (!%p4178_p12)
}
  0x3c   :  { %s4182_s13 = scalar_lea.vmem %s53_s30, 512  ;;  %p4187_p0 = scmp.lt.s32.totalorder %s53_s30, %s53_s30 }
  0x3d   :  { %p4183_p13 = scmp.ne.s32.totalorder %s53_s30, %s4182_s13  ;;  %p4188_p1 = scmp.lt.s32.totalorder %s4182_s13, %s4182_s13 }
  0x3f   :  { %p4189_p2 = por %p4188_p1, %p4187_p0 }
  0x41   :  { %p4190_p3 = pnand %p4189_p2, %p4183_p13 }
  0x43   :  { %4193 = shalt.err (!%p4190_p3)
}
  0x44   :  { %58 = dma.hbm_to_vmem [thread:$0]  %s4708_s3, 512, %s53_s30, [#allocation9], %s4225_s25, %s4225_s25, %s4226_s26  }
  0x45   :  { %4216 = dma.done.wait [#allocation3], 32  }
  0x46   :  { %4217 = vsyncadd [#allocation3], 4294967264 }
  0x47   :  { %4218 = dma.done.wait [#allocation6], 7552  }
  0x48   :  { %4219 = vsyncadd [#allocation6], 4294959744 }
  0x49   :  { %4220 = dma.done.wait [#allocation9], 512  }
  0x4a   :  { %4221 = vsyncadd [#allocation9], 4294966784  ;;  %v4232_v0 = vmov 0.0   ;;  %vm4233_vm0 = vmmov 0   ;;  %v3929_v1 = vld [vmem:[#allocation7] sm:$0xff]   ;;  %vm96_vm1 = vcmask 130048   ;;  %v72_v16 = vlaneseq }
  0x4b   :  { %3608 = vmatprep.subr.bf16.mxu0 %v4232_v0  ;;  %3610 = vmatprep.mubr.msk.bf16.mxu0 %vm4233_vm0, %v4232_v0  ;;  %v81_v2 = vld [vmem:[#allocation2] sm:$0x3]  ;;  %v3930_v4 = vld [vmem:[#allocation7 + $0x8] sm:$0xff]   ;;  %v3931_v5 = vld [vmem:[#allocation7 + $0x10] sm:$0xff]   ;;  %vm179_vm2 = vcmask 523264   ;;  %s4235_s3 = smov 96  }
  0x4c   :  { %3614 = vmatprep.subr.bf16.mxu1 %v4232_v0  ;;  %3622 = vmatprep.mubr.msk.bf16.mxu1 %vm4233_vm0, %v4232_v0  ;;  %v82_v3 = vpack.c.bf16 %v81_v2, %v81_v2  ;;  %v3932_v6 = vld [vmem:[#allocation7 + $0x18] sm:$0xff]   ;;  %v3933_v7 = vld [vmem:[#allocation7 + $0x20] sm:$0xff]   ;;  %v4234_v17 = vmov 1966171168   ;;  %v4334_v19 = vshrl.u32 %v72_v16, 7  ;;  %s4236_s1 = smov 32  }
  0x4d   :  { %3609 = vmatpush3.bf16.msra.mxu0 %v3929_v1  ;;  %3615 = vmatpush3.bf16.msra.mxu1 %v3930_v4  ;;  %v3336_v8 = vld [vmem:[#allocation8] ss:$0 sm:$0xff]  ;;  %v225_v18 = vunpack.c.l.s4 %v4234_v17  ;;  %v3339_v21 = vld [vmem:[#allocation8 + $0x1] ss:$0 sm:$0xff]  ;;  %v4340_v35 = vld [vmem:[#allocation5 + $0x8] sm:$0xff]  ;;  %vm296_vm3 = vcmask 261120  }
  0x4e   :  { %3616 = vmatprep.subr.bf16.mxu1 %v4232_v0  ;;  %v250_v29 = vsub.s32 0, %v4334_v19  ;;  %v300_v36 = vsel %vm296_vm3, %v4340_v35, 0.0  ;;  %vm274_vm4 = vcmask 1040384   ;;  %vm277_vm5 = vcmask 1041408   ;;  %v286_v46 = vld [vmem:[#allocation5] sm:$0xff]  ;;  %v288_v50 = vld [vmem:[#allocation5 + $0x10] sm:$0xff] }
  0x4f   :  { %v226_v20 = vunpack.c.0.s8 %v225_v18  ;;  %vm280_vm6 = vcmask 1042432   ;;  %vm283_vm7 = vcmask 1043456   ;;  %v4350_v56 = vld [vmem:[#allocation5 + $0x18] sm:$0xff]  ;;  %v3934_v17 = vld [vmem:[#allocation7 + $0x28] sm:$0xff]   ;;  %v3935_v18 = vld [vmem:[#allocation7 + $0x30] sm:$0xff]   ;;  %s4238_s14 = smov [#allocation10]  }
  0x50   :  { %3611 = vmatmul.mubr.msk.bf16.vlgmr.msra.gmra.mrb[0].mxu0 %vm96_vm1, %v82_v3  ;;  %v306_v58 = vsel %vm296_vm3, %v4350_v56, 0.0  ;;  %3626 = vmatprep.subr.bf16.mxu0 %v3934_v17  ;;  %s3322_s15 = sshll.u32 %s4238_s14, 4  ;;  %s3323_s15 = int_to_ptr.vmem [resolvable:$true] %s3322_s15 }
  0x51   :  { %3617 = vmatpush3.bf16.msra.mxu1 %v3931_v5  ;;  %v229_v22 = vsub.s32 %v226_v20, %v4334_v19  ;;  %3627 = vmatpush3.bf16.msra.mxu0 %v3934_v17  ;;  %v3936_v20 = vld [vmem:[#allocation7 + $0x38] sm:$0xff]   ;;  %s4194_s16 = scalar_lea.vmem %s3323_s15, 512  ;;  %p4199_p5 = scmp.lt.s32.totalorder %s3323_s15, %s3323_s15 }
  0x52   :  { %3618 = vmatprep.subr.bf16.mxu1 %v4232_v0  ;;  %3628 = vmatprep.subr.bf16.mxu0 %v3935_v18  ;;  %p4195_p4 = scmp.ne.s32.totalorder %s3323_s15, %s4194_s16  ;;  %p4200_p6 = scmp.lt.s32.totalorder %s4194_s16, %s4194_s16 }
  0x54   :  { %p4201_p7 = por %p4200_p6, %p4199_p5 }
  0x55   :  { %3619 = vmatpush3.bf16.msra.mxu1 %v3932_v6  ;;  %3629 = vmatpush3.bf16.msra.mxu0 %v3935_v18 }
  0x56   :  { %3620 = vmatprep.subr.bf16.mxu1 %v4232_v0  ;;  %3634 = vmatprep.subr.bf16.mxu0 %v3936_v20  ;;  %p4202_p8 = pnand %p4201_p7, %p4195_p4 }
  0x59   :  { %3621 = vmatpush3.bf16.msra.mxu1 %v3933_v7 }
  0x5a   :  { %3656 = vmatprep.subr.bf16.mxu1 %v4232_v0 }
 0x123   :  { %v134_v9 = vpop.f32.mrb[0].mxu0 }
 0x124   :  { %v135_v10 = vadd.f32 %v3336_v8, %v134_v9  ;;  %v3612_v11 = vpop.f32.mrb[1].mxu0 }
 0x125   :  { %v137_v12 = vpop.f32.mrb[2].mxu0 }
 0x126   :  { %3984 = vtanh.f32 %v135_v10  ;;  %v3613_v13 = vpop.f32.mrb[3].mxu0 }
 0x130   :  { %v3985_v14 = vpop.eup %3984 }
 0x131   :  { %v141_v15 = vpack.c.bf16 %v3985_v14, %v3985_v14 }
 0x133   :  { %3623 = vmatmul.mubr.msk.bf16.vlgmr.msra.gmra.mrb[0].mxu1 %vm179_vm2, %v141_v15 }
 0x134   :  { %3658 = vmatprep.mubr.msk.bf16.mxu1 %vm4233_vm0, %v4232_v0 }
 0x206   :  { %v217_v23 = vpop.f32.mrb[0].mxu1 }
 0x207   :  { %v218_v24 = vadd.f32 %v3339_v21, %v217_v23  ;;  %v3624_v25 = vpop.f32.mrb[1].mxu1 }
 0x208   :  { %v220_v26 = vpop.f32.mrb[2].mxu1 }
 0x209   :  { %v230_v27 = vrot.slane %v218_v24, %v229_v22  ;;  %v3625_v28 = vpop.f32.mrb[3].mxu1 }
 0x20b   :  { %v231_v30 = vcombine.high %v230_v27, %v230_v27  ;;  %v238_v31 = vrot.slane %v230_v27, %v229_v22 }
 0x20d   :  { %v251_v32 = vrot.slane %v238_v31, %v250_v29  ;;  %v245_v33 = vrot.slane %v231_v30, %v229_v22 }
 0x20f   :  { %262 = vrot.lane.b32.xlu1 %v251_v32, %s4229_s0  ;;  %256 = vrot.lane.b32.xlu0 %v251_v32, %s4235_s3  ;;  %v255_v34 = vrot.slane %v245_v33, %v250_v29 }
 0x213   :  { %264 = vrot.lane.b32.xlu1 %v255_v34, %s4229_s0  ;;  %258 = vrot.lane.b32.xlu0 %v255_v34, %s4235_s3 }
 0x217   :  { %270 = vrot.lane.b32.xlu1 %v255_v34, %s4236_s1  ;;  %268 = vrot.lane.b32.xlu0 %v251_v32, %s4236_s1 }
 0x23b   :  { %301 = vadd.xlane.f32.xlu1 %v300_v36  ;;  %v3345_v36 = vld [vmem:[#allocation8 + $0x2] ss:$0 sm:$0xff] }
 0x281   :  { %v263_v37 = vpop.permute.xlu1 %262  ;;  %v257_v38 = vpop.permute.xlu0 %256 }
 0x282   :  { %v275_v41 = vsel %vm274_vm4, %v238_v31, %v257_v38 }
 0x283   :  { %v278_v45 = vsel %vm277_vm5, %v275_v41, %v263_v37 }
 0x285   :  { %v265_v39 = vpop.permute.xlu1 %264  ;;  %v259_v40 = vpop.permute.xlu0 %258 }
 0x286   :  { %v276_v42 = vsel %vm274_vm4, %v245_v33, %v259_v40  ;;  %v3346_v40 = vld [vmem:[#allocation8 + $0x3] ss:$0 sm:$0xff] }
 0x287   :  { %v279_v44 = vsel %vm277_vm5, %v276_v42, %v265_v39 }
 0x289   :  { %v271_v43 = vpop.permute.xlu1 %270  ;;  %v269_v47 = vpop.permute.xlu0 %268 }
 0x28a   :  { %v282_v48 = vsel %vm280_vm6, %v279_v44, %v271_v43  ;;  %v281_v49 = vsel %vm280_vm6, %v278_v45, %v269_v47 }
 0x28b   :  { %v285_v51 = vsel %vm283_vm7, %v282_v48, 0.0  ;;  %v284_v52 = vsel %vm283_vm7, %v281_v49, 0.0 }
 0x28c   :  { %v4344_v53 = vadd.f32 %v286_v46, %v284_v52  ;;  %v4346_v54 = vadd.f32 %v288_v50, %v285_v51 }
 0x28e   :  { %v297_v55 = vsel %vm296_vm3, %v4344_v53, 0.0  ;;  %v303_v57 = vsel %vm296_vm3, %v4346_v54, 0.0 }
 0x28f   :  { %298 = vadd.xlane.f32.xlu0 %v297_v55 }
 0x293   :  { %304 = vadd.xlane.f32.xlu0 %v303_v57  ;;  %v3937_v57 = vld [vmem:[#allocation7 + $0x40] sm:$0xff]  }
 0x297   :  { %307 = vadd.xlane.f32.xlu0 %v306_v58  ;;  %v3938_v58 = vld [vmem:[#allocation7 + $0x48] sm:$0xff]  }
 0x2c8   :  { %v302_v59 = vpop.xlane.xlu1 %301 }
 0x2c9   :  { %v311_v60 = vmul.f32 0.03125, %v302_v59  ;;  %v3939_v59 = vld [vmem:[#allocation7 + $0x50] sm:$0xff]  }
 0x2cb   :  { %v315_v61 = vsub.f32 %v4340_v35, %v311_v60 }
 0x2cd   :  { %v319_v62 = vmul.f32 %v315_v61, %v315_v61 }
 0x2cf   :  { %v325_v63 = vsel %vm296_vm3, %v319_v62, 0.0 }
 0x2d0   :  { %326 = vadd.xlane.f32.xlu0 %v325_v63 }
 0x31c   :  { %v299_v1 = vpop.xlane.xlu0 %298 }
 0x31d   :  { %v310_v2 = vmul.f32 0.03125, %v299_v1 }
 0x31f   :  { %v314_v3 = vsub.f32 %v4344_v53, %v310_v2 }
 0x320   :  { %v305_v4 = vpop.xlane.xlu0 %304 }
 0x321   :  { %v312_v5 = vmul.f32 0.03125, %v305_v4  ;;  %v318_v6 = vmul.f32 %v314_v3, %v314_v3 }
 0x323   :  { %v316_v7 = vsub.f32 %v4346_v54, %v312_v5  ;;  %v322_v8 = vsel %vm296_vm3, %v318_v6, 0.0 }
 0x324   :  { %323 = vadd.xlane.f32.xlu1 %v322_v8  ;;  %v308_v9 = vpop.xlane.xlu0 %307 }
 0x325   :  { %v313_v10 = vmul.f32 0.03125, %v308_v9  ;;  %v320_v11 = vmul.f32 %v316_v7, %v316_v7  ;;  %v3352_v9 = vld [vmem:[#allocation8 + $0x5] ss:$0 sm:$0xff] }
 0x327   :  { %v317_v12 = vsub.f32 %v4350_v56, %v313_v10  ;;  %v328_v13 = vsel %vm296_vm3, %v320_v11, 0.0 }
 0x328   :  { %329 = vadd.xlane.f32.xlu1 %v328_v13 }
 0x329   :  { %v321_v14 = vmul.f32 %v317_v12, %v317_v12 }
 0x32b   :  { %v331_v15 = vsel %vm296_vm3, %v321_v14, 0.0 }
 0x32c   :  { %332 = vadd.xlane.f32.xlu0 %v331_v15 }
 0x35d   :  { %v327_v21 = vpop.xlane.xlu0 %326 }
 0x35e   :  { %v335_v22 = vmul.f32 0.03125, %v327_v21 }
 0x360   :  { %v339_v23 = vadd.f32 1e-05, %v335_v22 }
 0x362   :  { %3986 = vrsqrt.f32 %v339_v23  ;;  %v3357_v23 = vld [vmem:[#allocation8 + $0x6] ss:$0 sm:$0xff] }
 0x36c   :  { %v3987_v31 = vpop.eup %3986 }
 0x36d   :  { %v347_v34 = vmul.f32 %v3987_v31, %v315_v61  ;;  %v3347_v61 = vld [vmem:[#allocation8 + $0x4] ss:$0 sm:$0xff] }
 0x36f   :  { %v355_v38 = vmul.f32 %v3345_v36, %v347_v34  ;;  %v76_v34 = vand.u32 127, %v72_v16 }
 0x371   :  { %v363_v43 = vadd.f32 %v3346_v40, %v355_v38  ;;  %vm77_vm8 = vcmp.le.s32.totalorder %v76_v34, %v4334_v19  ;;  %v4237_v38 = vmov -1e+09  }
 0x3b1   :  { %v324_v24 = vpop.xlane.xlu1 %323 }
 0x3b2   :  { %v334_v25 = vmul.f32 0.03125, %v324_v24 }
 0x3b4   :  { %v338_v26 = vadd.f32 1e-05, %v334_v25 }
 0x3b5   :  { %v330_v27 = vpop.xlane.xlu1 %329 }
 0x3b6   :  { %3988 = vrsqrt.f32 %v338_v26  ;;  %v336_v28 = vmul.f32 0.03125, %v330_v27 }
 0x3b8   :  { %v340_v29 = vadd.f32 1e-05, %v336_v28 }
 0x3b9   :  { %v333_v30 = vpop.xlane.xlu0 %332 }
 0x3ba   :  { %3990 = vrsqrt.f32 %v340_v29  ;;  %v337_v32 = vmul.f32 0.03125, %v333_v30 }
 0x3bc   :  { %v341_v33 = vadd.f32 1e-05, %v337_v32 }
 0x3be   :  { %3992 = vrsqrt.f32 %v341_v33 }
 0x3c0   :  { %v3989_v37 = vpop.eup %3988 }
 0x3c1   :  { %v346_v39 = vmul.f32 %v3989_v37, %v314_v3 }
 0x3c3   :  { %v354_v41 = vmul.f32 %v3345_v36, %v346_v39  ;;  %v4396_v39 = vsel %vm77_vm8, 0.0, %v4237_v38 }
 0x3c4   :  { %v3991_v42 = vpop.eup %3990 }
 0x3c5   :  { %v362_v44 = vadd.f32 %v3346_v40, %v354_v41  ;;  %v348_v45 = vmul.f32 %v3991_v42, %v316_v7 }
 0x3c7   :  { %v4364_v46 = vpack.c.bf16 %v363_v43, %v362_v44  ;;  %v356_v48 = vmul.f32 %v3345_v36, %v348_v45 }
 0x3c8   :  { %v3993_v47 = vpop.eup %3992 }
 0x3c9   :  { %v349_v49 = vmul.f32 %v3993_v47, %v317_v12  ;;  %3630 = vmatprep.mubr.msk.bf16.mxu0 %vm296_vm3, %v4364_v46  ;;  %v364_v51 = vadd.f32 %v3346_v40, %v356_v48 }
 0x3cb   :  { %v357_v50 = vmul.f32 %v3345_v36, %v349_v49  ;;  %v74_v36 = vadd.s32 8, %v4334_v19 }
 0x3cd   :  { %v365_v52 = vadd.f32 %v3346_v40, %v357_v50  ;;  %vm78_vm9 = vcmp.le.s32.totalorder %v76_v34, %v74_v36  ;;  %v3942_v34 = vld [vmem:[#allocation7 + $0x70] sm:$0xff]  }
 0x3ce   :  { %v4398_v47 = vsel %vm78_vm9, 0.0, %v4237_v38 }
 0x3cf   :  { %v4368_v55 = vpack.c.bf16 %v365_v52, %v364_v51 }
 0x3d1   :  { %3631 = vmatmul.mubr.msk.bf16.vlgmr.msra.gmra.mrb[4].mxu0 %vm296_vm3, %v4368_v55 }
 0x3d2   :  { %3635 = vmatpush3.bf16.msra.mxu0 %v3936_v20  ;;  %3638 = vmatprep.mubr.msk.bf16.mxu0 %vm296_vm3, %v4364_v46 }
 0x3d3   :  { %3636 = vmatprep.subr.bf16.mxu0 %v3937_v57 }
 0x3d6   :  { %3637 = vmatpush3.bf16.msra.mxu0 %v3937_v57 }
 0x3d7   :  { %3642 = vmatprep.subr.bf16.mxu0 %v3938_v58 }
 0x3d9   :  { %3639 = vmatmul.mubr.msk.bf16.vlgmr.msra.gmra.mrb[8].mxu0 %vm296_vm3, %v4368_v55 }
 0x3da   :  { %3643 = vmatpush3.bf16.msra.mxu0 %v3938_v58  ;;  %3646 = vmatprep.mubr.msk.bf16.mxu0 %vm296_vm3, %v4364_v46 }
 0x3db   :  { %3644 = vmatprep.subr.bf16.mxu0 %v3939_v59 }
 0x3de   :  { %3645 = vmatpush3.bf16.msra.mxu0 %v3939_v59 }
 0x3df   :  { %3650 = vmatprep.subr.bf16.mxu0 %v4232_v0 }
 0x3e1   :  { %3647 = vmatmul.mubr.msk.bf16.vlgmr.msra.gmra.mrb[12].mxu0 %vm296_vm3, %v4368_v55 }
 0x3e2   :  { %3652 = vmatprep.mubr.msk.bf16.mxu0 %vm4233_vm0, %v4232_v0 }
 0x4a4   :  { %v3632_v60 = vpop.f32.mrb[4].mxu0 }
 0x4a5   :  { %v429_v62 = vpop.f32.mrb[5].mxu0  ;;  %v438_v1 = vadd.f32 %v3632_v60, %v3347_v61 }
 0x4a6   :  { %v3633_v63 = vpop.f32.mrb[6].mxu0  ;;  %v430_v4 = vadd.f32 %v3347_v61, %v429_v62 }
 0x4a7   :  { %v441_v2 = vadd.f32 %v3633_v63, %v3347_v61  ;;  %v432_v3 = vpop.f32.mrb[7].mxu0 }
 0x4a8   :  { %v433_v5 = vadd.f32 %v3347_v61, %v432_v3 }
 0x4a9   :  { %v585_v6 = vpack.c.bf16 %v441_v2, %v438_v1 }
 0x4aa   :  { %v584_v7 = vpack.c.bf16 %v433_v5, %v430_v4 }
 0x4ac   :  { %v3640_v8 = vpop.f32.mrb[8].mxu0 }
 0x4ad   :  { %v499_v10 = vpop.f32.mrb[9].mxu0  ;;  %v508_v12 = vadd.f32 %v3640_v8, %v3352_v9 }
 0x4ae   :  { %v3641_v11 = vpop.f32.mrb[10].mxu0  ;;  %v500_v15 = vadd.f32 %v3352_v9, %v499_v10 }
 0x4af   :  { %v511_v13 = vadd.f32 %v3641_v11, %v3352_v9  ;;  %v502_v14 = vpop.f32.mrb[11].mxu0 }
 0x4b0   :  { %v503_v17 = vadd.f32 %v3352_v9, %v502_v14 }
 0x4b1   :  { %v587_v18 = vpack.c.bf16 %v511_v13, %v508_v12 }
 0x4b2   :  { %v586_v20 = vpack.c.bf16 %v503_v17, %v500_v15 }
 0x4b3   :  { %v641_v21 = vsel %vm96_vm1, %v587_v18, 0 }
 0x4b4   :  { %v3648_v22 = vpop.f32.mrb[12].mxu0  ;;  %3657 = vmatpush3.bf16.xpose.msra.mxu1 %v641_v21  ;;  %v594_v24 = vsel %vm96_vm1, %v586_v20, 0 }
 0x4b5   :  { %v569_v25 = vpop.f32.mrb[13].mxu0  ;;  %3651 = vmatpush3.bf16.xpose.msra.mxu0 %v594_v24  ;;  %3668 = vmatprep.subr.bf16.mxu1 %v4232_v0  ;;  %v578_v27 = vadd.f32 %v3648_v22, %v3357_v23  ;;  %v3940_v22 = vld [vmem:[#allocation7 + $0x68] sm:$0xff]  }
 0x4b6   :  { %v3649_v26 = vpop.f32.mrb[14].mxu0  ;;  %3662 = vmatprep.subr.bf16.mxu0 %v4232_v0  ;;  %v570_v30 = vadd.f32 %v3357_v23, %v569_v25 }
 0x4b7   :  { %v581_v28 = vadd.f32 %v3649_v26, %v3357_v23  ;;  %v572_v29 = vpop.f32.mrb[15].mxu0 }
 0x4b8   :  { %v573_v31 = vadd.f32 %v3357_v23, %v572_v29  ;;  %v3941_v23 = vld [vmem:[#allocation7 + $0x58] sm:$0xff]  }
 0x4b9   :  { %v589_v32 = vpack.c.bf16 %v581_v28, %v578_v27 }
 0x4ba   :  { %v588_v33 = vpack.c.bf16 %v573_v31, %v570_v30 }
 0x4bb   :  { %3659 = vmatmul.mubr.msk.bf16.vlgmr.msra.gmra.mrb[4].mxu1 %vm96_vm1, %v585_v6 }
 0x4bc   :  { %3653 = vmatmul.mubr.msk.bf16.vlgmr.msra.gmra.mrb[16].mxu0 %vm96_vm1, %v584_v7  ;;  %3669 = vmatpush3.bf16.msra.mxu1 %v589_v32 }
 0x4bd   :  { %3663 = vmatpush3.bf16.msra.mxu0 %v588_v33  ;;  %3670 = vmatprep.mubr.msk.bf16.mxu1 %vm4233_vm0, %v4232_v0 }
 0x4be   :  { %3664 = vmatprep.mubr.msk.bf16.mxu0 %vm4233_vm0, %v4232_v0  ;;  %3682 = vmatprep.subr.bf16.mxu1 %v3940_v22 }
 0x4bf   :  { %3674 = vmatprep.subr.bf16.mxu0 %v3941_v23 }
 0x58e   :  { %v677_v37 = vpop.f32.mrb[4].mxu1 }
 0x58f   :  { %v686_v40 = vmul.f32 0.25, %v677_v37  ;;  %v630_v41 = vpop.f32.mrb[16].mxu0  ;;  %v3660_v42 = vpop.f32.mrb[5].mxu1 }
 0x590   :  { %v684_v43 = vmul.f32 0.25, %v630_v41  ;;  %v3654_v44 = vpop.f32.mrb[17].mxu0  ;;  %v680_v45 = vpop.f32.mrb[6].mxu1  ;;  %v3943_v41 = vld [vmem:[#allocation7 + $0x60] sm:$0xff]   ;;  %v3944_v42 = vld [vmem:[#allocation7 + $0x78] sm:$0xff]  }
 0x591   :  { %v687_v48 = vmul.f32 0.25, %v680_v45  ;;  %v633_v49 = vpop.f32.mrb[18].mxu0  ;;  %v3661_v16 = vpop.f32.mrb[7].mxu1  ;;  %v690_v50 = vadd.f32 %v686_v40, %v4396_v39 }
 0x592   :  { %v685_v51 = vmul.f32 0.25, %v633_v49  ;;  %v3655_v19 = vpop.f32.mrb[19].mxu0  ;;  %v688_v58 = vadd.f32 %v684_v43, %v4396_v39  ;;  %v3945_v43 = vld [vmem:[#allocation7 + $0x80] sm:$0xff]  }
 0x593   :  { %v698_v52 = vsel %vm96_vm1, %v690_v50, -inf  ;;  %v691_v57 = vadd.f32 %v687_v48, %v4398_v47 }
 0x594   :  { %699 = vmax.xlane.f32.xlu1 %v698_v52  ;;  %v689_v60 = vadd.f32 %v685_v51, %v4398_v47  ;;  %v692_v61 = vsel %vm96_vm1, %v688_v58, -inf }
 0x595   :  { %v701_v59 = vsel %vm96_vm1, %v691_v57, -inf }
 0x596   :  { %702 = vmax.xlane.f32.xlu0 %v701_v59  ;;  %v695_v62 = vsel %vm96_vm1, %v689_v60, -inf }
 0x598   :  { %693 = vmax.xlane.f32.xlu1 %v692_v61 }
 0x59a   :  { %696 = vmax.xlane.f32.xlu0 %v695_v62 }
 0x621   :  { %v700_v63 = vpop.xlane.xlu1 %699 }
 0x622   :  { %v706_v1 = vsub.f32 %v690_v50, %v700_v63 }
 0x623   :  { %v703_v2 = vpop.xlane.xlu0 %702 }
 0x624   :  { %v712_v3 = vmul.f32 1.442695, %v706_v1  ;;  %v707_v4 = vsub.f32 %v691_v57, %v703_v2  ;;  %v3371_v57 = vld [vmem:[#allocation8 + $0x8] ss:$0 sm:$0xff]  ;;  %v3366_v1 = vld [vmem:[#allocation8 + $0x7] ss:$0 sm:$0xff] }
 0x625   :  { %v694_v5 = vpop.xlane.xlu1 %693 }
 0x626   :  { %3994 = vpow2.f32 %v712_v3  ;;  %v714_v6 = vmul.f32 1.442695, %v707_v4  ;;  %v704_v7 = vsub.f32 %v688_v58, %v694_v5 }
 0x627   :  { %v697_v8 = vpop.xlane.xlu0 %696 }
 0x628   :  { %3996 = vpow2.f32 %v714_v6  ;;  %v708_v9 = vmul.f32 1.442695, %v704_v7  ;;  %v705_v10 = vsub.f32 %v689_v60, %v697_v8 }
 0x62a   :  { %3998 = vpow2.f32 %v708_v9  ;;  %v710_v11 = vmul.f32 1.442695, %v705_v10 }
 0x62c   :  { %4000 = vpow2.f32 %v710_v11 }
 0x630   :  { %v3995_v12 = vpop.eup %3994 }
 0x631   :  { %v722_v13 = vsel %vm96_vm1, %v3995_v12, 0.0 }
 0x632   :  { %v3997_v14 = vpop.eup %3996  ;;  %723 = vadd.xlane.f32.xlu1 %v722_v13 }
 0x633   :  { %v725_v15 = vsel %vm96_vm1, %v3997_v14, 0.0 }
 0x634   :  { %v3999_v17 = vpop.eup %3998  ;;  %726 = vadd.xlane.f32.xlu0 %v725_v15 }
 0x635   :  { %v716_v18 = vsel %vm96_vm1, %v3999_v17, 0.0 }
 0x636   :  { %v4001_v20 = vpop.eup %4000  ;;  %717 = vadd.xlane.f32.xlu1 %v716_v18 }
 0x637   :  { %v719_v21 = vsel %vm96_vm1, %v4001_v20, 0.0 }
 0x638   :  { %720 = vadd.xlane.f32.xlu0 %v719_v21 }
 0x6bf   :  { %v724_v24 = vpop.xlane.xlu1 %723 }
 0x6c0   :  { %4002 = vrcp.f32 %v724_v24 }
 0x6c1   :  { %v727_v25 = vpop.xlane.xlu0 %726 }
 0x6c2   :  { %4004 = vrcp.f32 %v727_v25 }
 0x6c3   :  { %v718_v26 = vpop.xlane.xlu1 %717 }
 0x6c4   :  { %4006 = vrcp.f32 %v718_v26 }
 0x6c5   :  { %v721_v27 = vpop.xlane.xlu0 %720 }
 0x6c6   :  { %4008 = vrcp.f32 %v721_v27 }
 0x6ca   :  { %v4003_v28 = vpop.eup %4002 }
 0x6cb   :  { %v734_v30 = vmul.f32 %v4003_v28, %v3995_v12 }
 0x6cc   :  { %v4005_v29 = vpop.eup %4004 }
 0x6cd   :  { %v735_v31 = vmul.f32 %v4005_v29, %v3997_v14 }
 0x6ce   :  { %v4007_v32 = vpop.eup %4006 }
 0x6cf   :  { %v737_v33 = vpack.c.bf16 %v735_v31, %v734_v30  ;;  %v732_v37 = vmul.f32 %v4007_v32, %v3999_v17 }
 0x6d0   :  { %v4009_v36 = vpop.eup %4008 }
 0x6d1   :  { %v733_v38 = vmul.f32 %v4009_v36, %v4001_v20  ;;  %3671 = vmatmul.mubr.msk.bf16.vlgmr.msra.gmra.mrb[8].mxu1 %vm96_vm1, %v737_v33  ;;  %v3376_v20 = vld [vmem:[#allocation8 + $0x9] ss:$0 sm:$0xff] }
 0x6d2   :  { %3683 = vmatpush3.bf16.msra.mxu1 %v3940_v22  ;;  %3686 = vmatprep.mubr.msk.bf16.mxu1 %vm296_vm3, %v4364_v46 }
 0x6d3   :  { %v736_v40 = vpack.c.bf16 %v733_v38, %v732_v37  ;;  %3684 = vmatprep.subr.bf16.mxu1 %v3942_v34 }
 0x6d5   :  { %3665 = vmatmul.mubr.msk.bf16.vlgmr.msra.gmra.mrb[20].mxu0 %vm96_vm1, %v736_v40 }
 0x6d6   :  { %3675 = vmatpush3.bf16.msra.mxu0 %v3941_v23  ;;  %3678 = vmatprep.mubr.msk.bf16.mxu0 %vm296_vm3, %v4364_v46 }
 0x6d7   :  { %3685 = vmatpush3.bf16.msra.mxu1 %v3942_v34  ;;  %3676 = vmatprep.subr.bf16.mxu0 %v3943_v41 }
 0x6d8   :  { %3698 = vmatprep.subr.bf16.mxu1 %v4232_v0 }
 0x6da   :  { %3687 = vmatmul.mubr.msk.bf16.vlgmr.msra.gmra.mrb[12].mxu1 %vm296_vm3, %v4368_v55  ;;  %3677 = vmatpush3.bf16.msra.mxu0 %v3943_v41 }
 0x6db   :  { %3690 = vmatprep.subr.bf16.mxu0 %v3944_v42  ;;  %3700 = vmatprep.mubr.msk.bf16.mxu1 %vm4233_vm0, %v4232_v0 }
 0x6dd   :  { %3679 = vmatmul.mubr.msk.bf16.vlgmr.msra.gmra.mrb[24].mxu0 %vm296_vm3, %v4368_v55 }
 0x6de   :  { %3691 = vmatpush3.bf16.msra.mxu0 %v3944_v42  ;;  %3694 = vmatprep.mubr.msk.bf16.mxu0 %vm296_vm3, %v4364_v46 }
 0x6df   :  { %3692 = vmatprep.subr.bf16.mxu0 %v3945_v43 }
 0x6e2   :  { %3693 = vmatpush3.bf16.msra.mxu0 %v3945_v43 }
 0x6e3   :  { %3704 = vmatprep.subr.bf16.mxu0 %v4232_v0 }
 0x6e5   :  { %3695 = vmatmul.mubr.msk.bf16.vlgmr.msra.gmra.mrb[28].mxu0 %vm296_vm3, %v4368_v55 }
 0x6e6   :  { %3706 = vmatprep.mubr.msk.bf16.mxu0 %vm4233_vm0, %v4232_v0 }
 0x7a4   :  { %v4432_v44 = vpop.f32.mrb[8].mxu1 }
 0x7a5   :  { %v3672_v45 = vpop.f32.mrb[9].mxu1 }
 0x7a6   :  { %v4434_v48 = vpop.f32.mrb[10].mxu1 }
 0x7a7   :  { %v827_v49 = vpack.c.bf16 %v4434_v48, %v4432_v44  ;;  %v3673_v16 = vpop.f32.mrb[11].mxu1 }
 0x7a8   :  { %v4438_v46 = vpop.f32.mrb[20].mxu0 }
 0x7a9   :  { %v3666_v50 = vpop.f32.mrb[21].mxu0 }
 0x7aa   :  { %v4440_v51 = vpop.f32.mrb[22].mxu0 }
 0x7ab   :  { %v826_v55 = vpack.c.bf16 %v4440_v51, %v4438_v46  ;;  %v3667_v19 = vpop.f32.mrb[23].mxu0 }
 0x7ad   :  { %v3688_v52 = vpop.f32.mrb[12].mxu1 }
 0x7ae   :  { %v955_v58 = vpop.f32.mrb[13].mxu1  ;;  %v964_v60 = vadd.f32 %v3688_v52, %v3371_v57 }
 0x7af   :  { %v3689_v59 = vpop.f32.mrb[14].mxu1  ;;  %v956_v2 = vadd.f32 %v3371_v57, %v955_v58 }
 0x7b0   :  { %v967_v61 = vadd.f32 %v3689_v59, %v3371_v57  ;;  %v958_v62 = vpop.f32.mrb[15].mxu1  ;;  %v3680_v63 = vpop.f32.mrb[24].mxu0 }
 0x7b1   :  { %v959_v3 = vadd.f32 %v3371_v57, %v958_v62  ;;  %v885_v4 = vpop.f32.mrb[25].mxu0  ;;  %v894_v8 = vadd.f32 %v3680_v63, %v3366_v1 }
 0x7b2   :  { %v1043_v5 = vpack.c.bf16 %v967_v61, %v964_v60  ;;  %v3681_v6 = vpop.f32.mrb[26].mxu0  ;;  %v886_v11 = vadd.f32 %v3366_v1, %v885_v4 }
 0x7b3   :  { %v1042_v7 = vpack.c.bf16 %v959_v3, %v956_v2  ;;  %v897_v9 = vadd.f32 %v3681_v6, %v3366_v1  ;;  %v888_v10 = vpop.f32.mrb[27].mxu0 }
 0x7b4   :  { %v889_v12 = vadd.f32 %v3366_v1, %v888_v10  ;;  %v1097_v13 = vsel %vm96_vm1, %v1043_v5, 0 }
 0x7b5   :  { %v1041_v14 = vpack.c.bf16 %v897_v9, %v894_v8  ;;  %3705 = vmatpush3.bf16.xpose.msra.mxu0 %v1097_v13  ;;  %v1050_v15 = vsel %vm96_vm1, %v1042_v7, 0 }
 0x7b6   :  { %v1040_v17 = vpack.c.bf16 %v889_v12, %v886_v11  ;;  %3699 = vmatpush3.bf16.xpose.msra.mxu1 %v1050_v15  ;;  %3716 = vmatprep.subr.bf16.mxu0 %v4232_v0 }
 0x7b7   :  { %3710 = vmatprep.subr.bf16.mxu1 %v4232_v0 }
 0x7b8   :  { %v3696_v18 = vpop.f32.mrb[28].mxu0 }
 0x7b9   :  { %v1025_v21 = vpop.f32.mrb[29].mxu0  ;;  %v1034_v23 = vadd.f32 %v3696_v18, %v3376_v20 }
 0x7ba   :  { %v3697_v22 = vpop.f32.mrb[30].mxu0  ;;  %v1026_v26 = vadd.f32 %v3376_v20, %v1025_v21 }
 0x7bb   :  { %v1037_v24 = vadd.f32 %v3697_v22, %v3376_v20  ;;  %v1028_v25 = vpop.f32.mrb[31].mxu0 }
 0x7bc   :  { %v1029_v27 = vadd.f32 %v3376_v20, %v1028_v25  ;;  %3707 = vmatmul.mubr.msk.bf16.vlgmr.msra.gmra.mrb[32].mxu0 %vm96_vm1, %v1041_v14 }
 0x7bd   :  { %v1045_v28 = vpack.c.bf16 %v1037_v24, %v1034_v23  ;;  %3701 = vmatmul.mubr.msk.bf16.vlgmr.msra.gmra.mrb[16].mxu1 %vm96_vm1, %v1040_v17  ;;  %3718 = vmatprep.mubr.msk.bf16.mxu0 %vm4233_vm0, %v4232_v0 }
 0x7be   :  { %v1044_v29 = vpack.c.bf16 %v1029_v27, %v1026_v26  ;;  %3712 = vmatprep.mubr.msk.bf16.mxu1 %vm4233_vm0, %v4232_v0 }
 0x7bf   :  { %3717 = vmatpush3.bf16.msra.mxu0 %v1045_v28 }
 0x7c0   :  { %3711 = vmatpush3.bf16.msra.mxu1 %v1044_v29 }
 0x88f   :  { %v1133_v30 = vpop.f32.mrb[32].mxu0 }
 0x890   :  { %v1086_v31 = vpop.f32.mrb[16].mxu1  ;;  %v3708_v32 = vpop.f32.mrb[33].mxu0  ;;  %v1142_v33 = vmul.f32 0.25, %v1133_v30 }
 0x891   :  { %v1140_v34 = vmul.f32 0.25, %v1086_v31  ;;  %v3702_v36 = vpop.f32.mrb[17].mxu1  ;;  %v1136_v37 = vpop.f32.mrb[34].mxu0 }
 0x892   :  { %v1089_v38 = vpop.f32.mrb[18].mxu1  ;;  %v3709_v40 = vpop.f32.mrb[35].mxu0  ;;  %v1143_v41 = vmul.f32 0.25, %v1136_v37  ;;  %v1146_v19 = vadd.f32 %v1142_v33, %v4396_v39  ;;  %v3946_v33 = vld [vmem:[#allocation7 + $0x90] sm:$0xff]  }
 0x893   :  { %v1141_v42 = vmul.f32 0.25, %v1089_v38  ;;  %v3703_v43 = vpop.f32.mrb[19].mxu1  ;;  %v1144_v45 = vadd.f32 %v1140_v34, %v4396_v39  ;;  %3722 = vmatprep.subr.bf16.mxu1 %v3946_v33  ;;  %v3947_v34 = vld [vmem:[#allocation7 + $0x88] sm:$0xff]  }
 0x894   :  { %v1147_v57 = vadd.f32 %v1143_v41, %v4398_v47  ;;  %v1154_v58 = vsel %vm96_vm1, %v1146_v19, -inf }
 0x895   :  { %v1148_v16 = vsel %vm96_vm1, %v1144_v45, -inf  ;;  %v1145_v50 = vadd.f32 %v1141_v42, %v4398_v47 }
 0x896   :  { %1149 = vmax.xlane.f32.xlu1 %v1148_v16  ;;  %v1157_v59 = vsel %vm96_vm1, %v1147_v57, -inf }
 0x897   :  { %v1151_v52 = vsel %vm96_vm1, %v1145_v50, -inf }
 0x898   :  { %1152 = vmax.xlane.f32.xlu0 %v1151_v52  ;;  %v3391_v52 = vld [vmem:[#allocation8 + $0xa] ss:$0 sm:$0xff] }
 0x89a   :  { %1155 = vmax.xlane.f32.xlu1 %v1154_v58 }
 0x89c   :  { %1158 = vmax.xlane.f32.xlu0 %v1157_v59 }
 0x923   :  { %v1150_v60 = vpop.xlane.xlu1 %1149 }
 0x924   :  { %v1160_v61 = vsub.f32 %v1144_v45, %v1150_v60 }
 0x925   :  { %v1153_v62 = vpop.xlane.xlu0 %1152 }
 0x926   :  { %v1164_v63 = vmul.f32 1.442695, %v1160_v61  ;;  %v1161_v1 = vsub.f32 %v1145_v50, %v1153_v62 }
 0x927   :  { %v1156_v2 = vpop.xlane.xlu1 %1155 }
 0x928   :  { %4010 = vpow2.f32 %v1164_v63  ;;  %v1166_v3 = vmul.f32 1.442695, %v1161_v1  ;;  %v1162_v4 = vsub.f32 %v1146_v19, %v1156_v2 }
 0x929   :  { %v1159_v5 = vpop.xlane.xlu0 %1158 }
 0x92a   :  { %4012 = vpow2.f32 %v1166_v3  ;;  %v1168_v6 = vmul.f32 1.442695, %v1162_v4  ;;  %v1163_v7 = vsub.f32 %v1147_v57, %v1159_v5 }
 0x92c   :  { %4014 = vpow2.f32 %v1168_v6  ;;  %v1170_v8 = vmul.f32 1.442695, %v1163_v7 }
 0x92e   :  { %4016 = vpow2.f32 %v1170_v8 }
 0x932   :  { %v4011_v9 = vpop.eup %4010 }
 0x933   :  { %v1172_v10 = vsel %vm96_vm1, %v4011_v9, 0.0 }
 0x934   :  { %v4013_v11 = vpop.eup %4012  ;;  %1173 = vadd.xlane.f32.xlu1 %v1172_v10 }
 0x935   :  { %v1175_v12 = vsel %vm96_vm1, %v4013_v11, 0.0 }
 0x936   :  { %v4015_v13 = vpop.eup %4014  ;;  %1176 = vadd.xlane.f32.xlu0 %v1175_v12 }
 0x937   :  { %v1178_v14 = vsel %vm96_vm1, %v4015_v13, 0.0 }
 0x938   :  { %v4017_v15 = vpop.eup %4016  ;;  %1179 = vadd.xlane.f32.xlu1 %v1178_v14 }
 0x939   :  { %v1181_v17 = vsel %vm96_vm1, %v4017_v15, 0.0 }
 0x93a   :  { %1182 = vadd.xlane.f32.xlu0 %v1181_v17 }
 0x9c1   :  { %v1174_v18 = vpop.xlane.xlu1 %1173 }
 0x9c2   :  { %4018 = vrcp.f32 %v1174_v18 }
 0x9c3   :  { %v1177_v20 = vpop.xlane.xlu0 %1176 }
 0x9c4   :  { %4020 = vrcp.f32 %v1177_v20 }
 0x9c5   :  { %v1180_v21 = vpop.xlane.xlu1 %1179 }
 0x9c6   :  { %4022 = vrcp.f32 %v1180_v21  ;;  %v3948_v21 = vld [vmem:[#allocation7 + $0x98] sm:$0xff]  }
 0x9c7   :  { %v1183_v22 = vpop.xlane.xlu0 %1182  ;;  %3734 = vmatprep.subr.bf16.mxu0 %v3948_v21 }
 0x9c8   :  { %4024 = vrcp.f32 %v1183_v22  ;;  %v3949_v22 = vld [vmem:[#allocation7 + $0xa0] sm:$0xff]  }
 0x9cc   :  { %v4019_v23 = vpop.eup %4018 }
 0x9cd   :  { %v1188_v25 = vmul.f32 %v4019_v23, %v4011_v9 }
 0x9ce   :  { %v4021_v24 = vpop.eup %4020 }
 0x9cf   :  { %v1189_v26 = vmul.f32 %v4021_v24, %v4013_v11 }
 0x9d0   :  { %v4023_v27 = vpop.eup %4022 }
 0x9d1   :  { %v1192_v28 = vpack.c.bf16 %v1189_v26, %v1188_v25  ;;  %v1190_v30 = vmul.f32 %v4023_v27, %v4015_v13 }
 0x9d2   :  { %v4025_v29 = vpop.eup %4024 }
 0x9d3   :  { %v1191_v31 = vmul.f32 %v4025_v29, %v4017_v15  ;;  %3713 = vmatmul.mubr.msk.bf16.vlgmr.msra.gmra.mrb[20].mxu1 %vm96_vm1, %v1192_v28 }
 0x9d4   :  { %3723 = vmatpush3.bf16.msra.mxu1 %v3946_v33 }
 0x9d5   :  { %v1193_v32 = vpack.c.bf16 %v1191_v31, %v1190_v30  ;;  %3728 = vmatprep.subr.bf16.mxu1 %v3947_v34 }
 0x9d7   :  { %3719 = vmatmul.mubr.msk.bf16.vlgmr.msra.gmra.mrb[36].mxu0 %vm96_vm1, %v1193_v32 }
 0x9d8   :  { %3735 = vmatpush3.bf16.msra.mxu0 %v3948_v21 }
 0x9d9   :  { %3736 = vmatprep.subr.bf16.mxu0 %v3949_v22 }
 0x9dc   :  { %3737 = vmatpush3.bf16.msra.mxu0 %v3949_v22 }
 0xaa6   :  { %v1231_v36 = vpop.f32.mrb[20].mxu1 }
 0xaa7   :  { %v3714_v37 = vpop.f32.mrb[21].mxu1 }
 0xaa8   :  { %v1234_v38 = vpop.f32.mrb[22].mxu1  ;;  %v3392_v37 = vld [vmem:[#allocation8 + $0xb] ss:$0 sm:$0xff] }
 0xaa9   :  { %v1282_v40 = vpack.c.bf16 %v1234_v38, %v1231_v36  ;;  %v3715_v41 = vpop.f32.mrb[23].mxu1 }
 0xaaa   :  { %v1275_v42 = vpop.f32.mrb[36].mxu0 }
 0xaab   :  { %v3720_v43 = vpop.f32.mrb[37].mxu0  ;;  %3724 = vmatprep.mubr.msk.bf16.mxu1 %vm96_vm1, %v1282_v40 }
 0xaac   :  { %v1278_v45 = vpop.f32.mrb[38].mxu0 }
 0xaad   :  { %v1283_v16 = vpack.c.bf16 %v1278_v45, %v1275_v42  ;;  %v3721_v50 = vpop.f32.mrb[39].mxu0  ;;  %v3393_v45 = vld [vmem:[#allocation8 + $0xc] ss:$0 sm:$0xff] }
 0xaaf   :  { %3725 = vmatmul.mubr.msk.bf16.vlgmr.msra.gmra.mrb[24].mxu1 %vm96_vm1, %v1283_v16 }
 0xab0   :  { %3729 = vmatpush3.bf16.msra.mxu1 %v3947_v34  ;;  %3730 = vmatprep.mubr.msk.bf16.mxu1 %vm96_vm1, %v826_v55 }
 0xabb   :  { %3731 = vmatmul.mubr.msk.bf16.vlgmr.msra.gmra.mrb[24].mxu1 %vm96_vm1, %v827_v49 }
 0xb8e   :  { %v3732_v19 = vpop.f32.mrb[24].mxu1 }
 0xb8f   :  { %v1393_v57 = vpop.f32.mrb[25].mxu1  ;;  %v1410_v58 = vadd.f32 %v3732_v19, %v4346_v54 }
 0xb90   :  { %v1408_v59 = vadd.f32 %v1393_v57, %v4344_v53  ;;  %v3733_v60 = vpop.f32.mrb[26].mxu1 }
 0xb91   :  { %v1396_v61 = vpop.f32.mrb[27].mxu1  ;;  %v1411_v46 = vadd.f32 %v3733_v60, %v4350_v56  ;;  %v4484_v55 = vadd.f32 %v3391_v52, %v1410_v58 }
 0xb92   :  { %v4480_v62 = vadd.f32 %v3391_v52, %v1408_v59  ;;  %v1409_v51 = vadd.f32 %v1396_v61, %v4340_v35 }
 0xb93   :  { %v4490_v49 = vadd.f32 %v3391_v52, %v1411_v46  ;;  %v1429_v54 = vsel %vm296_vm3, %v4484_v55, 0.0 }
 0xb94   :  { %v4486_v44 = vadd.f32 %v3391_v52, %v1409_v51  ;;  %v1423_v48 = vsel %vm296_vm3, %v4480_v62, 0.0 }
 0xb95   :  { %1424 = vadd.xlane.f32.xlu1 %v1423_v48  ;;  %v1432_v35 = vsel %vm296_vm3, %v4490_v49, 0.0 }
 0xb96   :  { %v1426_v53 = vsel %vm296_vm3, %v4486_v44, 0.0 }
 0xb97   :  { %1427 = vadd.xlane.f32.xlu0 %v1426_v53  ;;  %v3950_v53 = vld [vmem:[#allocation7 + $0xa8] sm:$0xff]  }
 0xb98   :  { %3742 = vmatprep.subr.bf16.mxu0 %v3950_v53 }
 0xb99   :  { %1430 = vadd.xlane.f32.xlu1 %v1429_v54  ;;  %v3951_v54 = vld [vmem:[#allocation7 + $0xb0] sm:$0xff]  }
 0xb9b   :  { %1433 = vadd.xlane.f32.xlu0 %v1432_v35  ;;  %v3952_v35 = vld [vmem:[#allocation7 + $0xb8] sm:$0xff]  }
 0xc22   :  { %v1425_v56 = vpop.xlane.xlu1 %1424 }
 0xc23   :  { %v1435_v63 = vmul.f32 0.03125, %v1425_v56  ;;  %v3953_v56 = vld [vmem:[#allocation7 + $0xc0] sm:$0xff]  }
 0xc24   :  { %v1428_v1 = vpop.xlane.xlu0 %1427 }
 0xc25   :  { %v1439_v2 = vsub.f32 %v4480_v62, %v1435_v63  ;;  %v1436_v3 = vmul.f32 0.03125, %v1428_v1  ;;  %v3954_v63 = vld [vmem:[#allocation7 + $0xc8] sm:$0xff]   ;;  %v3955_v1 = vld [vmem:[#allocation7 + $0xd0] sm:$0xff]  }
 0xc26   :  { %v1431_v4 = vpop.xlane.xlu1 %1430 }
 0xc27   :  { %v1440_v5 = vsub.f32 %v4486_v44, %v1436_v3  ;;  %v1437_v6 = vmul.f32 0.03125, %v1431_v4  ;;  %v1443_v7 = vmul.f32 %v1439_v2, %v1439_v2  ;;  %v3957_v3 = vld [vmem:[#allocation7 + $0xe0] sm:$0xff]  }
 0xc28   :  { %v1434_v8 = vpop.xlane.xlu0 %1433  ;;  %v3394_v4 = vld [vmem:[#allocation8 + $0xd] ss:$0 sm:$0xff] }
 0xc29   :  { %v1441_v9 = vsub.f32 %v4484_v55, %v1437_v6  ;;  %v1438_v10 = vmul.f32 0.03125, %v1434_v8  ;;  %v1447_v11 = vsel %vm296_vm3, %v1443_v7, 0.0  ;;  %v1444_v12 = vmul.f32 %v1440_v5, %v1440_v5 }
 0xc2a   :  { %1448 = vadd.xlane.f32.xlu1 %v1447_v11 }
 0xc2b   :  { %v1442_v13 = vsub.f32 %v4490_v49, %v1438_v10  ;;  %v1450_v14 = vsel %vm296_vm3, %v1444_v12, 0.0  ;;  %v1445_v15 = vmul.f32 %v1441_v9, %v1441_v9 }
 0xc2c   :  { %1451 = vadd.xlane.f32.xlu0 %v1450_v14 }
 0xc2d   :  { %v1453_v17 = vsel %vm296_vm3, %v1445_v15, 0.0  ;;  %v1446_v18 = vmul.f32 %v1442_v13, %v1442_v13 }
 0xc2e   :  { %1454 = vadd.xlane.f32.xlu1 %v1453_v17 }
 0xc2f   :  { %v1456_v20 = vsel %vm296_vm3, %v1446_v18, 0.0 }
 0xc30   :  { %1457 = vadd.xlane.f32.xlu0 %v1456_v20 }
 0xcb7   :  { %v1449_v23 = vpop.xlane.xlu1 %1448 }
 0xcb8   :  { %v1459_v24 = vmul.f32 0.03125, %v1449_v23 }
 0xcb9   :  { %v1452_v25 = vpop.xlane.xlu0 %1451 }
 0xcba   :  { %v1463_v26 = vadd.f32 1e-05, %v1459_v24  ;;  %v1460_v27 = vmul.f32 0.03125, %v1452_v25 }
 0xcbb   :  { %v1455_v28 = vpop.xlane.xlu1 %1454 }
 0xcbc   :  { %4026 = vrsqrt.f32 %v1463_v26  ;;  %v1464_v29 = vadd.f32 1e-05, %v1460_v27  ;;  %v1461_v30 = vmul.f32 0.03125, %v1455_v28 }
 0xcbd   :  { %v1458_v31 = vpop.xlane.xlu0 %1457 }
 0xcbe   :  { %4028 = vrsqrt.f32 %v1464_v29  ;;  %v1465_v32 = vadd.f32 1e-05, %v1461_v30  ;;  %v1462_v33 = vmul.f32 0.03125, %v1458_v31 }
 0xcc0   :  { %4030 = vrsqrt.f32 %v1465_v32  ;;  %v1466_v34 = vadd.f32 1e-05, %v1462_v33 }
 0xcc2   :  { %4032 = vrsqrt.f32 %v1466_v34 }
 0xcc6   :  { %v4027_v36 = vpop.eup %4026 }
 0xcc7   :  { %v1471_v38 = vmul.f32 %v4027_v36, %v1439_v2  ;;  %v3956_v2 = vld [vmem:[#allocation7 + $0xd8] sm:$0xff]  }
 0xcc8   :  { %v4029_v40 = vpop.eup %4028 }
 0xcc9   :  { %v1472_v41 = vmul.f32 %v4029_v40, %v1440_v5  ;;  %v1479_v42 = vmul.f32 %v3392_v37, %v1471_v38 }
 0xcca   :  { %v4031_v43 = vpop.eup %4030 }
 0xccb   :  { %v1473_v16 = vmul.f32 %v4031_v43, %v1441_v9  ;;  %v1480_v50 = vmul.f32 %v3392_v37, %v1472_v41  ;;  %v1487_v58 = vadd.f32 %v3393_v45, %v1479_v42 }
 0xccc   :  { %v4033_v19 = vpop.eup %4032 }
 0xccd   :  { %v1481_v52 = vmul.f32 %v3392_v37, %v1473_v16  ;;  %v1474_v57 = vmul.f32 %v4033_v19, %v1442_v13  ;;  %v1488_v59 = vadd.f32 %v3393_v45, %v1480_v50 }
 0xccf   :  { %v1482_v60 = vmul.f32 %v3392_v37, %v1474_v57  ;;  %v1491_v61 = vpack.c.bf16 %v1488_v59, %v1487_v58  ;;  %v1489_v46 = vadd.f32 %v3393_v45, %v1481_v52 }
 0xcd1   :  { %3738 = vmatprep.mubr.msk.bf16.mxu0 %vm296_vm3, %v1491_v61  ;;  %v1490_v51 = vadd.f32 %v3393_v45, %v1482_v60 }
 0xcd3   :  { %v1492_v48 = vpack.c.bf16 %v1490_v51, %v1489_v46 }
 0xcd5   :  { %3739 = vmatmul.mubr.msk.bf16.vlgmr.msra.gmra.mrb[40].mxu0 %vm296_vm3, %v1492_v48  ;;  %v3407_v48 = vld [vmem:[#allocation8 + $0xe] ss:$0 sm:$0xff] }
 0xcd6   :  { %3743 = vmatpush3.bf16.msra.mxu0 %v3950_v53 }
 0xcd7   :  { %3744 = vmatprep.subr.bf16.mxu0 %v3951_v54 }
 0xcda   :  { %3745 = vmatpush3.bf16.msra.mxu0 %v3951_v54 }
 0xcdb   :  { %3746 = vmatprep.subr.bf16.mxu0 %v3952_v35 }
 0xcde   :  { %3747 = vmatpush3.bf16.msra.mxu0 %v3952_v35 }
 0xcdf   :  { %3748 = vmatprep.subr.bf16.mxu0 %v3953_v56 }
 0xce2   :  { %3749 = vmatpush3.bf16.msra.mxu0 %v3953_v56 }
 0xce3   :  { %3750 = vmatprep.subr.bf16.mxu0 %v3954_v63 }
 0xce6   :  { %3751 = vmatpush3.bf16.msra.mxu0 %v3954_v63 }
 0xce7   :  { %3752 = vmatprep.subr.bf16.mxu0 %v3955_v1 }
 0xcea   :  { %3753 = vmatpush3.bf16.msra.mxu0 %v3955_v1 }
 0xceb   :  { %3754 = vmatprep.subr.bf16.mxu0 %v3956_v2 }
 0xcee   :  { %3755 = vmatpush3.bf16.msra.mxu0 %v3956_v2 }
 0xcef   :  { %3756 = vmatprep.subr.bf16.mxu0 %v3957_v3 }
 0xcf2   :  { %3757 = vmatpush3.bf16.msra.mxu0 %v3957_v3 }
 0xcf3   :  { %3792 = vmatprep.subr.bf16.mxu0 %v4232_v0 }
 0xda8   :  { %v3740_v5 = vpop.f32.mrb[40].mxu0 }
 0xda9   :  { %v1563_v6 = vadd.f32 %v3740_v5, %v3394_v4  ;;  %v1554_v7 = vpop.f32.mrb[41].mxu0 }
 0xdaa   :  { %v1555_v8 = vadd.f32 %v3394_v4, %v1554_v7  ;;  %v3741_v9 = vpop.f32.mrb[42].mxu0 }
 0xdab   :  { %v1575_v10 = vmul.f32 0.044715, %v1563_v6  ;;  %v1566_v11 = vadd.f32 %v3741_v9, %v3394_v4  ;;  %v1557_v12 = vpop.f32.mrb[43].mxu0  ;;  %v1571_v43 = vmul.f32 0.5, %v1563_v6 }
 0xdac   :  { %v1573_v13 = vmul.f32 0.044715, %v1555_v8  ;;  %v1558_v14 = vadd.f32 %v3394_v4, %v1557_v12  ;;  %v1569_v50 = vmul.f32 0.5, %v1555_v8 }
 0xdad   :  { %v1579_v15 = vmul.f32 %v1575_v10, %v1563_v6  ;;  %v1576_v17 = vmul.f32 0.044715, %v1566_v11  ;;  %v1572_v45 = vmul.f32 0.5, %v1566_v11 }
 0xdae   :  { %v1577_v18 = vmul.f32 %v1573_v13, %v1555_v8  ;;  %v1574_v20 = vmul.f32 0.044715, %v1558_v14  ;;  %v1570_v19 = vmul.f32 0.5, %v1558_v14 }
 0xdaf   :  { %v1583_v21 = vmul.f32 %v1579_v15, %v1563_v6  ;;  %v1580_v22 = vmul.f32 %v1576_v17, %v1566_v11 }
 0xdb0   :  { %v1581_v23 = vmul.f32 %v1577_v18, %v1555_v8  ;;  %v1578_v24 = vmul.f32 %v1574_v20, %v1558_v14 }
 0xdb1   :  { %v1587_v25 = vadd.f32 %v1583_v21, %v1563_v6  ;;  %v1584_v26 = vmul.f32 %v1580_v22, %v1566_v11 }
 0xdb2   :  { %v1582_v27 = vmul.f32 %v1578_v24, %v1558_v14  ;;  %v1585_v28 = vadd.f32 %v1581_v23, %v1555_v8 }
 0xdb3   :  { %v1591_v29 = vmul.f32 0.7978846, %v1587_v25  ;;  %v1588_v30 = vadd.f32 %v1584_v26, %v1566_v11 }
 0xdb4   :  { %v1586_v31 = vadd.f32 %v1582_v27, %v1558_v14  ;;  %v1589_v32 = vmul.f32 0.7978846, %v1585_v28 }
 0xdb5   :  { %4034 = vtanh.f32 %v1591_v29  ;;  %v1592_v33 = vmul.f32 0.7978846, %v1588_v30  ;;  %v3958_v29 = vld [vmem:[#allocation7 + $0xe8] sm:$0xff]   ;;  %v3959_v30 = vld [vmem:[#allocation7 + $0xf0] sm:$0xff]  }
 0xdb6   :  { %v1590_v34 = vmul.f32 0.7978846, %v1586_v31  ;;  %4036 = vtanh.f32 %v1589_v32  ;;  %3762 = vmatprep.subr.bf16.mxu1 %v3958_v29  ;;  %v3960_v31 = vld [vmem:[#allocation7 + $0xf8] sm:$0xff]  }
 0xdb7   :  { %4038 = vtanh.f32 %v1592_v33  ;;  %3763 = vmatpush3.bf16.msra.mxu1 %v3958_v29 }
 0xdb8   :  { %4040 = vtanh.f32 %v1590_v34  ;;  %3764 = vmatprep.subr.bf16.mxu1 %v3959_v30 }
 0xdbb   :  { %3765 = vmatpush3.bf16.msra.mxu1 %v3959_v30 }
 0xdbc   :  { %3770 = vmatprep.subr.bf16.mxu1 %v3960_v31 }
 0xdbf   :  { %v4035_v36 = vpop.eup %4034 }
 0xdc0   :  { %v4037_v37 = vpop.eup %4036  ;;  %v1599_v38 = vadd.f32 1.0, %v4035_v36 }
 0xdc1   :  { %v4039_v40 = vpop.eup %4038  ;;  %v1597_v41 = vadd.f32 1.0, %v4037_v37 }
 0xdc2   :  { %v4041_v42 = vpop.eup %4040  ;;  %v1600_v16 = vadd.f32 1.0, %v4039_v40  ;;  %v1603_v57 = vmul.f32 %v1599_v38, %v1571_v43 }
 0xdc3   :  { %v1598_v52 = vadd.f32 1.0, %v4041_v42  ;;  %v1601_v59 = vmul.f32 %v1597_v41, %v1569_v50 }
 0xdc4   :  { %v1604_v58 = vmul.f32 %v1600_v16, %v1572_v45 }
 0xdc5   :  { %v1602_v60 = vmul.f32 %v1598_v52, %v1570_v19  ;;  %v3408_v19 = vld [vmem:[#allocation8 + $0xf] ss:$0 sm:$0xff] }
 0xdc6   :  { %v1606_v61 = vpack.c.bf16 %v1604_v58, %v1603_v57 }
 0xdc7   :  { %v1605_v46 = vpack.c.bf16 %v1602_v60, %v1601_v59 }
 0xdc9   :  { %3758 = vmatprep.mubr.bf16.mxu0 %v1605_v46 }
 0xdca   :  { %3759 = vmatmul.mubr.bf16.vlgmr.msra.gmra.mrb[44].mxu0 %v1606_v61  ;;  %v3409_v61 = vld [vmem:[#allocation8 + $0x10] ss:$0 sm:$0xff] }
 0xdcb   :  { %3794 = vmatprep.mubr.msk.bf16.mxu0 %vm4233_vm0, %v4232_v0 }
 0xe9d   :  { %v3760_v51 = vpop.f32.mrb[44].mxu0 }
 0xe9e   :  { %v1705_v53 = vpop.f32.mrb[45].mxu0  ;;  %v1722_v54 = vadd.f32 %v3760_v51, %v4484_v55 }
 0xe9f   :  { %v1720_v35 = vadd.f32 %v1705_v53, %v4480_v62  ;;  %v3761_v56 = vpop.f32.mrb[46].mxu0 }
 0xea0   :  { %v1708_v63 = vpop.f32.mrb[47].mxu0  ;;  %v1723_v2 = vadd.f32 %v3761_v56, %v4490_v49  ;;  %v4517_v4 = vadd.f32 %v3407_v48, %v1722_v54 }
 0xea1   :  { %v4513_v1 = vadd.f32 %v3407_v48, %v1720_v35  ;;  %v1721_v3 = vadd.f32 %v1708_v63, %v4486_v44 }
 0xea2   :  { %v4523_v7 = vadd.f32 %v3407_v48, %v1723_v2  ;;  %v1741_v55 = vsel %vm296_vm3, %v4517_v4, 0.0 }
 0xea3   :  { %v4519_v5 = vadd.f32 %v3407_v48, %v1721_v3  ;;  %v1735_v6 = vsel %vm296_vm3, %v4513_v1, 0.0 }
 0xea4   :  { %1736 = vadd.xlane.f32.xlu1 %v1735_v6  ;;  %v1744_v44 = vsel %vm296_vm3, %v4523_v7, 0.0 }
 0xea5   :  { %v1738_v62 = vsel %vm296_vm3, %v4519_v5, 0.0 }
 0xea6   :  { %1739 = vadd.xlane.f32.xlu0 %v1738_v62 }
 0xea8   :  { %1742 = vadd.xlane.f32.xlu1 %v1741_v55  ;;  %v3961_v55 = vld [vmem:[#allocation7 + $0x100] sm:$0xff]  }
 0xeaa   :  { %1745 = vadd.xlane.f32.xlu0 %v1744_v44  ;;  %v3962_v44 = vld [vmem:[#allocation7 + $0x108] sm:$0xff]  }
 0xf31   :  { %v1737_v49 = vpop.xlane.xlu1 %1736 }
 0xf32   :  { %v1747_v8 = vmul.f32 0.03125, %v1737_v49  ;;  %v3963_v49 = vld [vmem:[#allocation7 + $0x110] sm:$0xff]  }
 0xf33   :  { %v1740_v9 = vpop.xlane.xlu0 %1739 }
 0xf34   :  { %v1751_v10 = vsub.f32 %v4513_v1, %v1747_v8  ;;  %v1748_v11 = vmul.f32 0.03125, %v1740_v9  ;;  %v3410_v9 = vld [vmem:[#allocation8 + $0x11] ss:$0 sm:$0xff] }
 0xf35   :  { %v1743_v12 = vpop.xlane.xlu1 %1742 }
 0xf36   :  { %v1752_v13 = vsub.f32 %v4519_v5, %v1748_v11  ;;  %v1749_v14 = vmul.f32 0.03125, %v1743_v12  ;;  %v1755_v15 = vmul.f32 %v1751_v10, %v1751_v10 }
 0xf37   :  { %v1746_v17 = vpop.xlane.xlu0 %1745 }
 0xf38   :  { %v1753_v18 = vsub.f32 %v4517_v4, %v1749_v14  ;;  %v1750_v20 = vmul.f32 0.03125, %v1746_v17  ;;  %v1759_v21 = vsel %vm296_vm3, %v1755_v15, 0.0  ;;  %v1756_v22 = vmul.f32 %v1752_v13, %v1752_v13 }
 0xf39   :  { %1760 = vadd.xlane.f32.xlu1 %v1759_v21 }
 0xf3a   :  { %v1754_v23 = vsub.f32 %v4523_v7, %v1750_v20  ;;  %v1762_v24 = vsel %vm296_vm3, %v1756_v22, 0.0  ;;  %v1757_v25 = vmul.f32 %v1753_v18, %v1753_v18  ;;  %v3415_v22 = vld [vmem:[#allocation8 + $0x12] ss:$0 sm:$0xff] }
 0xf3b   :  { %1763 = vadd.xlane.f32.xlu0 %v1762_v24 }
 0xf3c   :  { %v1765_v26 = vsel %vm296_vm3, %v1757_v25, 0.0  ;;  %v1758_v27 = vmul.f32 %v1754_v23, %v1754_v23 }
 0xf3d   :  { %1766 = vadd.xlane.f32.xlu1 %v1765_v26 }
 0xf3e   :  { %v1768_v28 = vsel %vm296_vm3, %v1758_v27, 0.0 }
 0xf3f   :  { %1769 = vadd.xlane.f32.xlu0 %v1768_v28 }
 0xfc6   :  { %v1761_v32 = vpop.xlane.xlu1 %1760 }
 0xfc7   :  { %v1771_v33 = vmul.f32 0.03125, %v1761_v32 }
 0xfc8   :  { %v1764_v34 = vpop.xlane.xlu0 %1763 }
 0xfc9   :  { %v1775_v36 = vadd.f32 1e-05, %v1771_v33  ;;  %v1772_v37 = vmul.f32 0.03125, %v1764_v34  ;;  %v3420_v34 = vld [vmem:[#allocation8 + $0x13] ss:$0 sm:$0xff] }
 0xfca   :  { %v1767_v38 = vpop.xlane.xlu1 %1766 }
 0xfcb   :  { %4042 = vrsqrt.f32 %v1775_v36  ;;  %v1776_v40 = vadd.f32 1e-05, %v1772_v37  ;;  %v1773_v41 = vmul.f32 0.03125, %v1767_v38 }
 0xfcc   :  { %v1770_v42 = vpop.xlane.xlu0 %1769 }
 0xfcd   :  { %4044 = vrsqrt.f32 %v1776_v40  ;;  %v1777_v43 = vadd.f32 1e-05, %v1773_v41  ;;  %v1774_v45 = vmul.f32 0.03125, %v1770_v42 }
 0xfcf   :  { %4046 = vrsqrt.f32 %v1777_v43  ;;  %v1778_v16 = vadd.f32 1e-05, %v1774_v45 }
 0xfd1   :  { %4048 = vrsqrt.f32 %v1778_v16 }
 0xfd5   :  { %v4043_v50 = vpop.eup %4042 }
 0xfd6   :  { %v1783_v52 = vmul.f32 %v4043_v50, %v1751_v10 }
 0xfd7   :  { %v4045_v57 = vpop.eup %4044 }
 0xfd8   :  { %v1791_v58 = vmul.f32 %v3408_v19, %v1783_v52  ;;  %v1784_v59 = vmul.f32 %v4045_v57, %v1752_v13 }
 0xfd9   :  { %v4047_v60 = vpop.eup %4046 }
 0xfda   :  { %v1792_v46 = vmul.f32 %v3408_v19, %v1784_v59  ;;  %v1785_v51 = vmul.f32 %v4047_v60, %v1753_v18  ;;  %v1799_v53 = vadd.f32 %v3409_v61, %v1791_v58 }
 0xfdb   :  { %v4049_v48 = vpop.eup %4048 }
 0xfdc   :  { %v1800_v54 = vadd.f32 %v3409_v61, %v1792_v46  ;;  %v1793_v35 = vmul.f32 %v3408_v19, %v1785_v51  ;;  %v1786_v56 = vmul.f32 %v4049_v48, %v1754_v23 }
 0xfde   :  { %v1794_v63 = vmul.f32 %v3408_v19, %v1786_v56  ;;  %v4539_v2 = vpack.c.bf16 %v1800_v54, %v1799_v53  ;;  %v1801_v3 = vadd.f32 %v3409_v61, %v1793_v35 }
 0xfe0   :  { %v1802_v6 = vadd.f32 %v3409_v61, %v1794_v63  ;;  %3766 = vmatprep.mubr.msk.bf16.mxu1 %vm296_vm3, %v4539_v2 }
 0xfe2   :  { %v4543_v62 = vpack.c.bf16 %v1802_v6, %v1801_v3 }
 0xfe4   :  { %3767 = vmatmul.mubr.msk.bf16.vlgmr.msra.gmra.mrb[28].mxu1 %vm296_vm3, %v4543_v62 }
 0xfe5   :  { %3771 = vmatpush3.bf16.msra.mxu1 %v3960_v31  ;;  %3774 = vmatprep.mubr.msk.bf16.mxu1 %vm296_vm3, %v4539_v2 }
 0xfe6   :  { %3772 = vmatprep.subr.bf16.mxu1 %v3961_v55 }
 0xfe9   :  { %3773 = vmatpush3.bf16.msra.mxu1 %v3961_v55 }
 0xfea   :  { %3778 = vmatprep.subr.bf16.mxu1 %v3962_v44 }
 0xfec   :  { %3775 = vmatmul.mubr.msk.bf16.vlgmr.msra.gmra.mrb[32].mxu1 %vm296_vm3, %v4543_v62 }
 0xfed   :  { %3779 = vmatpush3.bf16.msra.mxu1 %v3962_v44  ;;  %3782 = vmatprep.mubr.msk.bf16.mxu1 %vm296_vm3, %v4539_v2 }
 0xfee   :  { %3780 = vmatprep.subr.bf16.mxu1 %v3963_v49 }
 0xff1   :  { %3781 = vmatpush3.bf16.msra.mxu1 %v3963_v49 }
 0xff2   :  { %3786 = vmatprep.subr.bf16.mxu1 %v4232_v0 }
 0xff4   :  { %3783 = vmatmul.mubr.msk.bf16.vlgmr.msra.gmra.mrb[36].mxu1 %vm296_vm3, %v4543_v62 }
 0xff5   :  { %3788 = vmatprep.mubr.msk.bf16.mxu1 %vm4233_vm0, %v4232_v0 }
0x10b7   :  { %v3768_v8 = vpop.f32.mrb[28].mxu1 }
0x10b8   :  { %v1866_v10 = vpop.f32.mrb[29].mxu1  ;;  %v1875_v12 = vadd.f32 %v3768_v8, %v3410_v9 }
0x10b9   :  { %v3769_v11 = vpop.f32.mrb[30].mxu1  ;;  %v1867_v15 = vadd.f32 %v3410_v9, %v1866_v10 }
0x10ba   :  { %v1878_v13 = vadd.f32 %v3769_v11, %v3410_v9  ;;  %v1869_v14 = vpop.f32.mrb[31].mxu1 }
0x10bb   :  { %v1870_v17 = vadd.f32 %v3410_v9, %v1869_v14 }
0x10bc   :  { %v2022_v18 = vpack.c.bf16 %v1878_v13, %v1875_v12 }
0x10bd   :  { %v2021_v20 = vpack.c.bf16 %v1870_v17, %v1867_v15 }
0x10bf   :  { %v3776_v21 = vpop.f32.mrb[32].mxu1 }
0x10c0   :  { %v1936_v23 = vpop.f32.mrb[33].mxu1  ;;  %v1945_v25 = vadd.f32 %v3776_v21, %v3415_v22 }
0x10c1   :  { %v3777_v24 = vpop.f32.mrb[34].mxu1  ;;  %v1937_v28 = vadd.f32 %v3415_v22, %v1936_v23 }
0x10c2   :  { %v1948_v26 = vadd.f32 %v3777_v24, %v3415_v22  ;;  %v1939_v27 = vpop.f32.mrb[35].mxu1 }
0x10c3   :  { %v1940_v29 = vadd.f32 %v3415_v22, %v1939_v27 }
0x10c4   :  { %v2024_v30 = vpack.c.bf16 %v1948_v26, %v1945_v25 }
0x10c5   :  { %v2023_v31 = vpack.c.bf16 %v1940_v29, %v1937_v28 }
0x10c6   :  { %v2078_v32 = vsel %vm96_vm1, %v2024_v30, 0  ;;  %v3964_v30 = vld [vmem:[#allocation7 + $0x128] sm:$0xff]  }
0x10c7   :  { %v3784_v33 = vpop.f32.mrb[36].mxu1  ;;  %3793 = vmatpush3.bf16.xpose.msra.mxu0 %v2078_v32  ;;  %v2031_v36 = vsel %vm96_vm1, %v2023_v31, 0  ;;  %v3965_v31 = vld [vmem:[#allocation7 + $0x118] sm:$0xff]  }
0x10c8   :  { %v2006_v37 = vpop.f32.mrb[37].mxu1  ;;  %3787 = vmatpush3.bf16.xpose.msra.mxu1 %v2031_v36  ;;  %3804 = vmatprep.subr.bf16.mxu0 %v4232_v0  ;;  %v2015_v40 = vadd.f32 %v3784_v33, %v3420_v34 }
0x10c9   :  { %v3785_v38 = vpop.f32.mrb[38].mxu1  ;;  %3798 = vmatprep.subr.bf16.mxu1 %v4232_v0  ;;  %v2007_v43 = vadd.f32 %v3420_v34, %v2006_v37 }
0x10ca   :  { %v2018_v41 = vadd.f32 %v3785_v38, %v3420_v34  ;;  %v2009_v42 = vpop.f32.mrb[39].mxu1 }
0x10cb   :  { %v2010_v45 = vadd.f32 %v3420_v34, %v2009_v42 }
0x10cc   :  { %v2026_v16 = vpack.c.bf16 %v2018_v41, %v2015_v40 }
0x10cd   :  { %v2025_v50 = vpack.c.bf16 %v2010_v45, %v2007_v43  ;;  %v3966_v45 = vld [vmem:[#allocation7 + $0x130] sm:$0xff]  }
0x10ce   :  { %3795 = vmatmul.mubr.msk.bf16.vlgmr.msra.gmra.mrb[48].mxu0 %vm96_vm1, %v2022_v18 }
0x10cf   :  { %3789 = vmatmul.mubr.msk.bf16.vlgmr.msra.gmra.mrb[40].mxu1 %vm96_vm1, %v2021_v20  ;;  %3805 = vmatpush3.bf16.msra.mxu0 %v2026_v16 }
0x10d0   :  { %3799 = vmatpush3.bf16.msra.mxu1 %v2025_v50  ;;  %3806 = vmatprep.mubr.msk.bf16.mxu0 %vm4233_vm0, %v4232_v0 }
0x10d1   :  { %3800 = vmatprep.mubr.msk.bf16.mxu1 %vm4233_vm0, %v4232_v0  ;;  %3818 = vmatprep.subr.bf16.mxu0 %v3964_v30 }
0x10d2   :  { %3810 = vmatprep.subr.bf16.mxu1 %v3965_v31 }
0x11a1   :  { %v2114_v19 = vpop.f32.mrb[48].mxu0 }
0x11a2   :  { %v2123_v52 = vmul.f32 0.25, %v2114_v19  ;;  %v2067_v57 = vpop.f32.mrb[40].mxu1  ;;  %v3796_v58 = vpop.f32.mrb[49].mxu0 }
0x11a3   :  { %v2121_v59 = vmul.f32 0.25, %v2067_v57  ;;  %v3790_v60 = vpop.f32.mrb[41].mxu1  ;;  %v2117_v61 = vpop.f32.mrb[50].mxu0  ;;  %v3967_v57 = vld [vmem:[#allocation7 + $0x120] sm:$0xff]   ;;  %v3968_v58 = vld [vmem:[#allocation7 + $0x138] sm:$0xff]  }
0x11a4   :  { %v2124_v46 = vmul.f32 0.25, %v2117_v61  ;;  %v2070_v51 = vpop.f32.mrb[42].mxu1  ;;  %v3797_v48 = vpop.f32.mrb[51].mxu0  ;;  %v2127_v53 = vadd.f32 %v2123_v52, %v4396_v39 }
0x11a5   :  { %v2122_v54 = vmul.f32 0.25, %v2070_v51  ;;  %v3791_v35 = vpop.f32.mrb[43].mxu1  ;;  %v2125_v3 = vadd.f32 %v2121_v59, %v4396_v39  ;;  %v3969_v59 = vld [vmem:[#allocation7 + $0x140] sm:$0xff]  }
0x11a6   :  { %v2135_v56 = vsel %vm96_vm1, %v2127_v53, -inf  ;;  %v2128_v63 = vadd.f32 %v2124_v46, %v4398_v47 }
0x11a7   :  { %2136 = vmax.xlane.f32.xlu1 %v2135_v56  ;;  %v2126_v55 = vadd.f32 %v2122_v54, %v4398_v47  ;;  %v2129_v44 = vsel %vm96_vm1, %v2125_v3, -inf }
0x11a8   :  { %v2138_v6 = vsel %vm96_vm1, %v2128_v63, -inf }
0x11a9   :  { %2139 = vmax.xlane.f32.xlu0 %v2138_v6  ;;  %v2132_v49 = vsel %vm96_vm1, %v2126_v55, -inf }
0x11ab   :  { %2130 = vmax.xlane.f32.xlu1 %v2129_v44 }
0x11ad   :  { %2133 = vmax.xlane.f32.xlu0 %v2132_v49 }
0x1234   :  { %v2137_v8 = vpop.xlane.xlu1 %2136 }
0x1235   :  { %v2143_v9 = vsub.f32 %v2127_v53, %v2137_v8 }
0x1236   :  { %v2140_v10 = vpop.xlane.xlu0 %2139 }
0x1237   :  { %v2149_v11 = vmul.f32 1.442695, %v2143_v9  ;;  %v2144_v12 = vsub.f32 %v2128_v63, %v2140_v10  ;;  %v3434_v63 = vld [vmem:[#allocation8 + $0x15] ss:$0 sm:$0xff]  ;;  %v3429_v9 = vld [vmem:[#allocation8 + $0x14] ss:$0 sm:$0xff] }
0x1238   :  { %v2131_v13 = vpop.xlane.xlu1 %2130 }
0x1239   :  { %4050 = vpow2.f32 %v2149_v11  ;;  %v2151_v14 = vmul.f32 1.442695, %v2144_v12  ;;  %v2141_v15 = vsub.f32 %v2125_v3, %v2131_v13 }
0x123a   :  { %v2134_v17 = vpop.xlane.xlu0 %2133 }
0x123b   :  { %4052 = vpow2.f32 %v2151_v14  ;;  %v2145_v18 = vmul.f32 1.442695, %v2141_v15  ;;  %v2142_v20 = vsub.f32 %v2126_v55, %v2134_v17 }
0x123d   :  { %4054 = vpow2.f32 %v2145_v18  ;;  %v2147_v21 = vmul.f32 1.442695, %v2142_v20 }
0x123f   :  { %4056 = vpow2.f32 %v2147_v21 }
0x1243   :  { %v4051_v22 = vpop.eup %4050 }
0x1244   :  { %v2159_v23 = vsel %vm96_vm1, %v4051_v22, 0.0 }
0x1245   :  { %v4053_v24 = vpop.eup %4052  ;;  %2160 = vadd.xlane.f32.xlu1 %v2159_v23 }
0x1246   :  { %v2162_v25 = vsel %vm96_vm1, %v4053_v24, 0.0 }
0x1247   :  { %v4055_v26 = vpop.eup %4054  ;;  %2163 = vadd.xlane.f32.xlu0 %v2162_v25 }
0x1248   :  { %v2153_v27 = vsel %vm96_vm1, %v4055_v26, 0.0 }
0x1249   :  { %v4057_v28 = vpop.eup %4056  ;;  %2154 = vadd.xlane.f32.xlu1 %v2153_v27 }
0x124a   :  { %v2156_v29 = vsel %vm96_vm1, %v4057_v28, 0.0 }
0x124b   :  { %2157 = vadd.xlane.f32.xlu0 %v2156_v29 }
0x12d2   :  { %v2161_v32 = vpop.xlane.xlu1 %2160 }
0x12d3   :  { %4058 = vrcp.f32 %v2161_v32 }
0x12d4   :  { %v2164_v33 = vpop.xlane.xlu0 %2163 }
0x12d5   :  { %4060 = vrcp.f32 %v2164_v33 }
0x12d6   :  { %v2155_v34 = vpop.xlane.xlu1 %2154 }
0x12d7   :  { %4062 = vrcp.f32 %v2155_v34 }
0x12d8   :  { %v2158_v36 = vpop.xlane.xlu0 %2157 }
0x12d9   :  { %4064 = vrcp.f32 %v2158_v36 }
0x12dd   :  { %v4059_v37 = vpop.eup %4058 }
0x12de   :  { %v2171_v40 = vmul.f32 %v4059_v37, %v4051_v22 }
0x12df   :  { %v4061_v38 = vpop.eup %4060 }
0x12e0   :  { %v2172_v41 = vmul.f32 %v4061_v38, %v4053_v24 }
0x12e1   :  { %v4063_v42 = vpop.eup %4062 }
0x12e2   :  { %v2174_v43 = vpack.c.bf16 %v2172_v41, %v2171_v40  ;;  %v2169_v50 = vmul.f32 %v4063_v42, %v4055_v26 }
0x12e3   :  { %v4065_v16 = vpop.eup %4064 }
0x12e4   :  { %v2170_v19 = vmul.f32 %v4065_v16, %v4057_v28  ;;  %3807 = vmatmul.mubr.msk.bf16.vlgmr.msra.gmra.mrb[52].mxu0 %vm96_vm1, %v2174_v43  ;;  %v3439_v28 = vld [vmem:[#allocation8 + $0x16] ss:$0 sm:$0xff] }
0x12e5   :  { %3819 = vmatpush3.bf16.msra.mxu0 %v3964_v30  ;;  %3822 = vmatprep.mubr.msk.bf16.mxu0 %vm296_vm3, %v4539_v2 }
0x12e6   :  { %v2173_v52 = vpack.c.bf16 %v2170_v19, %v2169_v50  ;;  %3820 = vmatprep.subr.bf16.mxu0 %v3966_v45 }
0x12e8   :  { %3801 = vmatmul.mubr.msk.bf16.vlgmr.msra.gmra.mrb[44].mxu1 %vm96_vm1, %v2173_v52 }
0x12e9   :  { %3811 = vmatpush3.bf16.msra.mxu1 %v3965_v31  ;;  %3814 = vmatprep.mubr.msk.bf16.mxu1 %vm296_vm3, %v4539_v2 }
0x12ea   :  { %3821 = vmatpush3.bf16.msra.mxu0 %v3966_v45  ;;  %3812 = vmatprep.subr.bf16.mxu1 %v3967_v57 }
0x12eb   :  { %3834 = vmatprep.subr.bf16.mxu0 %v4232_v0 }
0x12ed   :  { %3823 = vmatmul.mubr.msk.bf16.vlgmr.msra.gmra.mrb[56].mxu0 %vm296_vm3, %v4543_v62  ;;  %3813 = vmatpush3.bf16.msra.mxu1 %v3967_v57 }
0x12ee   :  { %3826 = vmatprep.subr.bf16.mxu1 %v3968_v58  ;;  %3836 = vmatprep.mubr.msk.bf16.mxu0 %vm4233_vm0, %v4232_v0 }
0x12f0   :  { %3815 = vmatmul.mubr.msk.bf16.vlgmr.msra.gmra.mrb[48].mxu1 %vm296_vm3, %v4543_v62 }
0x12f1   :  { %3827 = vmatpush3.bf16.msra.mxu1 %v3968_v58  ;;  %3830 = vmatprep.mubr.msk.bf16.mxu1 %vm296_vm3, %v4539_v2 }
0x12f2   :  { %3828 = vmatprep.subr.bf16.mxu1 %v3969_v59 }
0x12f5   :  { %3829 = vmatpush3.bf16.msra.mxu1 %v3969_v59 }
0x12f6   :  { %3840 = vmatprep.subr.bf16.mxu1 %v4232_v0 }
0x12f8   :  { %3831 = vmatmul.mubr.msk.bf16.vlgmr.msra.gmra.mrb[52].mxu1 %vm296_vm3, %v4543_v62 }
0x12f9   :  { %3842 = vmatprep.mubr.msk.bf16.mxu1 %vm4233_vm0, %v4232_v0 }
0x13b7   :  { %v4600_v60 = vpop.f32.mrb[52].mxu0 }
0x13b8   :  { %v3808_v61 = vpop.f32.mrb[53].mxu0 }
0x13b9   :  { %v4602_v46 = vpop.f32.mrb[54].mxu0 }
0x13ba   :  { %v2264_v51 = vpack.c.bf16 %v4602_v46, %v4600_v60  ;;  %v3809_v48 = vpop.f32.mrb[55].mxu0 }
0x13bb   :  { %v4606_v2 = vpop.f32.mrb[44].mxu1 }
0x13bc   :  { %v3802_v53 = vpop.f32.mrb[45].mxu1 }
0x13bd   :  { %v4608_v54 = vpop.f32.mrb[46].mxu1 }
0x13be   :  { %v2263_v62 = vpack.c.bf16 %v4608_v54, %v4606_v2  ;;  %v3803_v35 = vpop.f32.mrb[47].mxu1 }
0x13c0   :  { %v3824_v56 = vpop.f32.mrb[56].mxu0 }
0x13c1   :  { %v2392_v3 = vpop.f32.mrb[57].mxu0  ;;  %v2401_v55 = vadd.f32 %v3824_v56, %v3434_v63 }
0x13c2   :  { %v3825_v6 = vpop.f32.mrb[58].mxu0  ;;  %v2393_v10 = vadd.f32 %v3434_v63, %v2392_v3 }
0x13c3   :  { %v2404_v44 = vadd.f32 %v3825_v6, %v3434_v63  ;;  %v2395_v49 = vpop.f32.mrb[59].mxu0  ;;  %v3816_v8 = vpop.f32.mrb[48].mxu1 }
0x13c4   :  { %v2396_v11 = vadd.f32 %v3434_v63, %v2395_v49  ;;  %v2322_v12 = vpop.f32.mrb[49].mxu1  ;;  %v2331_v17 = vadd.f32 %v3816_v8, %v3429_v9 }
0x13c5   :  { %v2480_v13 = vpack.c.bf16 %v2404_v44, %v2401_v55  ;;  %v3817_v14 = vpop.f32.mrb[50].mxu1  ;;  %v2323_v21 = vadd.f32 %v3429_v9, %v2322_v12 }
0x13c6   :  { %v2479_v15 = vpack.c.bf16 %v2396_v11, %v2393_v10  ;;  %v2334_v18 = vadd.f32 %v3817_v14, %v3429_v9  ;;  %v2325_v20 = vpop.f32.mrb[51].mxu1 }
0x13c7   :  { %v2326_v22 = vadd.f32 %v3429_v9, %v2325_v20  ;;  %v2534_v23 = vsel %vm96_vm1, %v2480_v13, 0 }
0x13c8   :  { %v2478_v24 = vpack.c.bf16 %v2334_v18, %v2331_v17  ;;  %3841 = vmatpush3.bf16.xpose.msra.mxu1 %v2534_v23  ;;  %v2487_v25 = vsel %vm96_vm1, %v2479_v15, 0 }
0x13c9   :  { %v2477_v26 = vpack.c.bf16 %v2326_v22, %v2323_v21  ;;  %3835 = vmatpush3.bf16.xpose.msra.mxu0 %v2487_v25  ;;  %3852 = vmatprep.subr.bf16.mxu1 %v4232_v0 }
0x13ca   :  { %3846 = vmatprep.subr.bf16.mxu0 %v4232_v0 }
0x13cb   :  { %v3832_v27 = vpop.f32.mrb[52].mxu1 }
0x13cc   :  { %v2462_v29 = vpop.f32.mrb[53].mxu1  ;;  %v2471_v31 = vadd.f32 %v3832_v27, %v3439_v28 }
0x13cd   :  { %v3833_v30 = vpop.f32.mrb[54].mxu1  ;;  %v2463_v34 = vadd.f32 %v3439_v28, %v2462_v29 }
0x13ce   :  { %v2474_v32 = vadd.f32 %v3833_v30, %v3439_v28  ;;  %v2465_v33 = vpop.f32.mrb[55].mxu1 }
0x13cf   :  { %v2466_v36 = vadd.f32 %v3439_v28, %v2465_v33  ;;  %3843 = vmatmul.mubr.msk.bf16.vlgmr.msra.gmra.mrb[56].mxu1 %vm96_vm1, %v2478_v24 }
0x13d0   :  { %v2482_v37 = vpack.c.bf16 %v2474_v32, %v2471_v31  ;;  %3837 = vmatmul.mubr.msk.bf16.vlgmr.msra.gmra.mrb[60].mxu0 %vm96_vm1, %v2477_v26  ;;  %3854 = vmatprep.mubr.msk.bf16.mxu1 %vm4233_vm0, %v4232_v0 }
0x13d1   :  { %v2481_v38 = vpack.c.bf16 %v2466_v36, %v2463_v34  ;;  %3848 = vmatprep.mubr.msk.bf16.mxu0 %vm4233_vm0, %v4232_v0 }
0x13d2   :  { %3853 = vmatpush3.bf16.msra.mxu1 %v2482_v37 }
0x13d3   :  { %3847 = vmatpush3.bf16.msra.mxu0 %v2481_v38 }
0x14a2   :  { %v2570_v40 = vpop.f32.mrb[56].mxu1 }
0x14a3   :  { %v2523_v41 = vpop.f32.mrb[60].mxu0  ;;  %v3844_v42 = vpop.f32.mrb[57].mxu1  ;;  %v2579_v43 = vmul.f32 0.25, %v2570_v40  ;;  %v3970_v40 = vld [vmem:[#allocation7 + $0x150] sm:$0xff]  }
0x14a4   :  { %v2577_v45 = vmul.f32 0.25, %v2523_v41  ;;  %v3838_v16 = vpop.f32.mrb[61].mxu0  ;;  %v2573_v50 = vpop.f32.mrb[58].mxu1  ;;  %3858 = vmatprep.subr.bf16.mxu0 %v3970_v40  ;;  %v3971_v41 = vld [vmem:[#allocation7 + $0x148] sm:$0xff]  }
0x14a5   :  { %v2526_v19 = vpop.f32.mrb[62].mxu0  ;;  %v3845_v52 = vpop.f32.mrb[59].mxu1  ;;  %v2580_v57 = vmul.f32 0.25, %v2573_v50  ;;  %v2583_v53 = vadd.f32 %v2579_v43, %v4396_v39 }
0x14a6   :  { %v2578_v58 = vmul.f32 0.25, %v2526_v19  ;;  %v3839_v59 = vpop.f32.mrb[63].mxu0  ;;  %v2581_v61 = vadd.f32 %v2577_v45, %v4396_v39 }
0x14a7   :  { %v2584_v56 = vadd.f32 %v2580_v57, %v4398_v47  ;;  %v2591_v63 = vsel %vm96_vm1, %v2583_v53, -inf }
0x14a8   :  { %v2585_v48 = vsel %vm96_vm1, %v2581_v61, -inf  ;;  %v2582_v0 = vadd.f32 %v2578_v58, %v4398_v47 }
0x14a9   :  { %2586 = vmax.xlane.f32.xlu1 %v2585_v48  ;;  %v2594_v3 = vsel %vm96_vm1, %v2584_v56, -inf  ;;  %v3454_v48 = vld [vmem:[#allocation8 + $0x17] ss:$0 sm:$0xff] }
0x14aa   :  { %v2588_v35 = vsel %vm96_vm1, %v2582_v0, -inf }
0x14ab   :  { %2589 = vmax.xlane.f32.xlu0 %v2588_v35 }
0x14ad   :  { %2592 = vmax.xlane.f32.xlu1 %v2591_v63 }
0x14af   :  { %2595 = vmax.xlane.f32.xlu0 %v2594_v3 }
0x1536   :  { %v2587_v6 = vpop.xlane.xlu1 %2586 }
0x1537   :  { %v2597_v55 = vsub.f32 %v2581_v61, %v2587_v6 }
0x1538   :  { %v2590_v44 = vpop.xlane.xlu0 %2589 }
0x1539   :  { %v2601_v49 = vmul.f32 1.442695, %v2597_v55  ;;  %v2598_v8 = vsub.f32 %v2582_v0, %v2590_v44 }
0x153a   :  { %v2593_v9 = vpop.xlane.xlu1 %2592 }
0x153b   :  { %4066 = vpow2.f32 %v2601_v49  ;;  %v2603_v39 = vmul.f32 1.442695, %v2598_v8  ;;  %v2599_v10 = vsub.f32 %v2583_v53, %v2593_v9 }
0x153c   :  { %v2596_v11 = vpop.xlane.xlu0 %2595 }
0x153d   :  { %4068 = vpow2.f32 %v2603_v39  ;;  %v2605_v12 = vmul.f32 1.442695, %v2599_v10  ;;  %v2600_v47 = vsub.f32 %v2584_v56, %v2596_v11 }
0x153f   :  { %4070 = vpow2.f32 %v2605_v12  ;;  %v2607_v13 = vmul.f32 1.442695, %v2600_v47 }
0x1541   :  { %4072 = vpow2.f32 %v2607_v13 }
0x1545   :  { %v4067_v14 = vpop.eup %4066 }
0x1546   :  { %v2609_v15 = vsel %vm96_vm1, %v4067_v14, 0.0 }
0x1547   :  { %v4069_v17 = vpop.eup %4068  ;;  %2610 = vadd.xlane.f32.xlu1 %v2609_v15 }
0x1548   :  { %v2612_v18 = vsel %vm96_vm1, %v4069_v17, 0.0 }
0x1549   :  { %v4071_v20 = vpop.eup %4070  ;;  %2613 = vadd.xlane.f32.xlu0 %v2612_v18 }
0x154a   :  { %v2615_v21 = vsel %vm96_vm1, %v4071_v20, 0.0 }
0x154b   :  { %v4073_v22 = vpop.eup %4072  ;;  %2616 = vadd.xlane.f32.xlu1 %v2615_v21 }
0x154c   :  { %v2618_v23 = vsel %vm96_vm1, %v4073_v22, 0.0 }
0x154d   :  { %2619 = vadd.xlane.f32.xlu0 %v2618_v23  ;;  %v3972_v23 = vld [vmem:[#allocation7 + $0x158] sm:$0xff]  }
0x154e   :  { %3870 = vmatprep.subr.bf16.mxu1 %v3972_v23 }
0x15d4   :  { %v2611_v24 = vpop.xlane.xlu1 %2610 }
0x15d5   :  { %4074 = vrcp.f32 %v2611_v24  ;;  %v3973_v24 = vld [vmem:[#allocation7 + $0x160] sm:$0xff]  }
0x15d6   :  { %v2614_v25 = vpop.xlane.xlu0 %2613 }
0x15d7   :  { %4076 = vrcp.f32 %v2614_v25 }
0x15d8   :  { %v2617_v26 = vpop.xlane.xlu1 %2616 }
0x15d9   :  { %4078 = vrcp.f32 %v2617_v26 }
0x15da   :  { %v2620_v27 = vpop.xlane.xlu0 %2619 }
0x15db   :  { %4080 = vrcp.f32 %v2620_v27 }
0x15df   :  { %v4075_v28 = vpop.eup %4074 }
0x15e0   :  { %v2625_v30 = vmul.f32 %v4075_v28, %v4067_v14 }
0x15e1   :  { %v4077_v29 = vpop.eup %4076 }
0x15e2   :  { %v2626_v31 = vmul.f32 %v4077_v29, %v4069_v17 }
0x15e3   :  { %v4079_v32 = vpop.eup %4078 }
0x15e4   :  { %v2629_v33 = vpack.c.bf16 %v2626_v31, %v2625_v30  ;;  %v2627_v36 = vmul.f32 %v4079_v32, %v4071_v20 }
0x15e5   :  { %v4081_v34 = vpop.eup %4080 }
0x15e6   :  { %v2628_v37 = vmul.f32 %v4081_v34, %v4073_v22  ;;  %3849 = vmatmul.mubr.msk.bf16.vlgmr.msra.gmra.mrb[64].mxu0 %vm96_vm1, %v2629_v33 }
0x15e7   :  { %3859 = vmatpush3.bf16.msra.mxu0 %v3970_v40  ;;  %v3455_v40 = vld [vmem:[#allocation8 + $0x18] ss:$0 sm:$0xff] }
0x15e8   :  { %v2630_v38 = vpack.c.bf16 %v2628_v37, %v2627_v36  ;;  %3864 = vmatprep.subr.bf16.mxu0 %v3971_v41 }
0x15ea   :  { %3855 = vmatmul.mubr.msk.bf16.vlgmr.msra.gmra.mrb[60].mxu1 %vm96_vm1, %v2630_v38 }
0x15eb   :  { %3871 = vmatpush3.bf16.msra.mxu1 %v3972_v23 }
0x15ec   :  { %3872 = vmatprep.subr.bf16.mxu1 %v3973_v24 }
0x15ef   :  { %3873 = vmatpush3.bf16.msra.mxu1 %v3973_v24 }
0x16b9   :  { %v2668_v42 = vpop.f32.mrb[64].mxu0 }
0x16ba   :  { %v3850_v43 = vpop.f32.mrb[65].mxu0 }
0x16bb   :  { %v2671_v45 = vpop.f32.mrb[66].mxu0 }
0x16bc   :  { %v2719_v16 = vpack.c.bf16 %v2671_v45, %v2668_v42  ;;  %v3851_v50 = vpop.f32.mrb[67].mxu0 }
0x16bd   :  { %v2712_v19 = vpop.f32.mrb[60].mxu1  ;;  %v3456_v50 = vld [vmem:[#allocation8 + $0x19] ss:$0 sm:$0xff] }
0x16be   :  { %v3856_v52 = vpop.f32.mrb[61].mxu1  ;;  %3860 = vmatprep.mubr.msk.bf16.mxu0 %vm96_vm1, %v2719_v16 }
0x16bf   :  { %v2715_v57 = vpop.f32.mrb[62].mxu1 }
0x16c0   :  { %v2720_v58 = vpack.c.bf16 %v2715_v57, %v2712_v19  ;;  %v3857_v59 = vpop.f32.mrb[63].mxu1 }
0x16c2   :  { %3861 = vmatmul.mubr.msk.bf16.vlgmr.msra.gmra.mrb[68].mxu0 %vm96_vm1, %v2720_v58 }
0x16c3   :  { %3865 = vmatpush3.bf16.msra.mxu0 %v3971_v41  ;;  %3866 = vmatprep.mubr.msk.bf16.mxu0 %vm96_vm1, %v2263_v62 }
0x16ce   :  { %3867 = vmatmul.mubr.msk.bf16.vlgmr.msra.gmra.mrb[68].mxu0 %vm96_vm1, %v2264_v51 }
0x17a1   :  { %v3868_v61 = vpop.f32.mrb[68].mxu0 }
0x17a2   :  { %v2830_v0 = vpop.f32.mrb[69].mxu0  ;;  %v2847_v53 = vadd.f32 %v3868_v61, %v4517_v4 }
0x17a3   :  { %v2845_v35 = vadd.f32 %v2830_v0, %v4513_v1  ;;  %v3869_v56 = vpop.f32.mrb[70].mxu0 }
0x17a4   :  { %v2833_v63 = vpop.f32.mrb[71].mxu0  ;;  %v2848_v2 = vadd.f32 %v3869_v56, %v4523_v7  ;;  %v4652_v62 = vadd.f32 %v3454_v48, %v2847_v53 }
0x17a5   :  { %v4648_v3 = vadd.f32 %v3454_v48, %v2845_v35  ;;  %v2846_v54 = vadd.f32 %v2833_v63, %v4519_v5 }
0x17a6   :  { %v4658_v51 = vadd.f32 %v3454_v48, %v2848_v2  ;;  %v2866_v4 = vsel %vm296_vm3, %v4652_v62, 0.0  ;;  %v3974_v2 = vld [vmem:[#allocation7 + $0x168] sm:$0xff]  }
0x17a7   :  { %v4654_v60 = vadd.f32 %v3454_v48, %v2846_v54  ;;  %v2860_v46 = vsel %vm296_vm3, %v4648_v3, 0.0  ;;  %3878 = vmatprep.subr.bf16.mxu1 %v3974_v2  ;;  %v3975_v54 = vld [vmem:[#allocation7 + $0x170] sm:$0xff]  }
0x17a8   :  { %2861 = vadd.xlane.f32.xlu1 %v2860_v46  ;;  %v2869_v5 = vsel %vm296_vm3, %v4658_v51, 0.0  ;;  %v3976_v46 = vld [vmem:[#allocation7 + $0x178] sm:$0xff]  }
0x17a9   :  { %v2863_v1 = vsel %vm296_vm3, %v4654_v60, 0.0 }
0x17aa   :  { %2864 = vadd.xlane.f32.xlu0 %v2863_v1  ;;  %v3977_v1 = vld [vmem:[#allocation7 + $0x180] sm:$0xff]  }
0x17ac   :  { %2867 = vadd.xlane.f32.xlu1 %v2866_v4  ;;  %v3978_v4 = vld [vmem:[#allocation7 + $0x188] sm:$0xff]  }
0x17ae   :  { %2870 = vadd.xlane.f32.xlu0 %v2869_v5  ;;  %v3979_v5 = vld [vmem:[#allocation7 + $0x190] sm:$0xff]  }
0x1835   :  { %v2862_v7 = vpop.xlane.xlu1 %2861 }
0x1836   :  { %v2872_v6 = vmul.f32 0.03125, %v2862_v7  ;;  %v3980_v7 = vld [vmem:[#allocation7 + $0x198] sm:$0xff]  }
0x1837   :  { %v2865_v55 = vpop.xlane.xlu0 %2864 }
0x1838   :  { %v2876_v44 = vsub.f32 %v4648_v3, %v2872_v6  ;;  %v2873_v49 = vmul.f32 0.03125, %v2865_v55  ;;  %v3981_v6 = vld [vmem:[#allocation7 + $0x1a0] sm:$0xff]   ;;  %v3457_v55 = vld [vmem:[#allocation8 + $0x1a] ss:$0 sm:$0xff] }
0x1839   :  { %v2868_v8 = vpop.xlane.xlu1 %2867 }
0x183a   :  { %v2877_v9 = vsub.f32 %v4654_v60, %v2873_v49  ;;  %v2874_v39 = vmul.f32 0.03125, %v2868_v8  ;;  %v2880_v10 = vmul.f32 %v2876_v44, %v2876_v44 }
0x183b   :  { %v2871_v11 = vpop.xlane.xlu0 %2870 }
0x183c   :  { %v2878_v12 = vsub.f32 %v4652_v62, %v2874_v39  ;;  %v2875_v47 = vmul.f32 0.03125, %v2871_v11  ;;  %v2884_v13 = vsel %vm296_vm3, %v2880_v10, 0.0  ;;  %v2881_v14 = vmul.f32 %v2877_v9, %v2877_v9 }
0x183d   :  { %2885 = vadd.xlane.f32.xlu1 %v2884_v13 }
0x183e   :  { %v2879_v15 = vsub.f32 %v4658_v51, %v2875_v47  ;;  %v2887_v17 = vsel %vm296_vm3, %v2881_v14, 0.0  ;;  %v2882_v18 = vmul.f32 %v2878_v12, %v2878_v12 }
0x183f   :  { %2888 = vadd.xlane.f32.xlu0 %v2887_v17 }
0x1840   :  { %v2890_v20 = vsel %vm296_vm3, %v2882_v18, 0.0  ;;  %v2883_v21 = vmul.f32 %v2879_v15, %v2879_v15 }
0x1841   :  { %2891 = vadd.xlane.f32.xlu1 %v2890_v20 }
0x1842   :  { %v2893_v22 = vsel %vm296_vm3, %v2883_v21, 0.0 }
0x1843   :  { %2894 = vadd.xlane.f32.xlu0 %v2893_v22 }
0x18ca   :  { %v2886_v25 = vpop.xlane.xlu1 %2885 }
0x18cb   :  { %v2896_v26 = vmul.f32 0.03125, %v2886_v25 }
0x18cc   :  { %v2889_v27 = vpop.xlane.xlu0 %2888 }
0x18cd   :  { %v2900_v28 = vadd.f32 1e-05, %v2896_v26  ;;  %v2897_v29 = vmul.f32 0.03125, %v2889_v27 }
0x18ce   :  { %v2892_v30 = vpop.xlane.xlu1 %2891 }
0x18cf   :  { %4082 = vrsqrt.f32 %v2900_v28  ;;  %v2901_v31 = vadd.f32 1e-05, %v2897_v29  ;;  %v2898_v32 = vmul.f32 0.03125, %v2892_v30 }
0x18d0   :  { %v2895_v33 = vpop.xlane.xlu0 %2894 }
0x18d1   :  { %4084 = vrsqrt.f32 %v2901_v31  ;;  %v2902_v34 = vadd.f32 1e-05, %v2898_v32  ;;  %v2899_v36 = vmul.f32 0.03125, %v2895_v33 }
0x18d3   :  { %4086 = vrsqrt.f32 %v2902_v34  ;;  %v2903_v37 = vadd.f32 1e-05, %v2899_v36 }
0x18d5   :  { %4088 = vrsqrt.f32 %v2903_v37 }
0x18d9   :  { %v4083_v38 = vpop.eup %4082 }
0x18da   :  { %v2908_v41 = vmul.f32 %v4083_v38, %v2876_v44 }
0x18db   :  { %v4085_v42 = vpop.eup %4084 }
0x18dc   :  { %v2909_v43 = vmul.f32 %v4085_v42, %v2877_v9  ;;  %v2916_v45 = vmul.f32 %v3455_v40, %v2908_v41 }
0x18dd   :  { %v4087_v16 = vpop.eup %4086 }
0x18de   :  { %v2910_v19 = vmul.f32 %v4087_v16, %v2878_v12  ;;  %v2917_v52 = vmul.f32 %v3455_v40, %v2909_v43  ;;  %v2924_v61 = vadd.f32 %v3456_v50, %v2916_v45 }
0x18df   :  { %v4089_v57 = vpop.eup %4088 }
0x18e0   :  { %v2918_v58 = vmul.f32 %v3455_v40, %v2910_v19  ;;  %v2911_v59 = vmul.f32 %v4089_v57, %v2879_v15  ;;  %v2925_v48 = vadd.f32 %v3456_v50, %v2917_v52 }
0x18e2   :  { %v2919_v0 = vmul.f32 %v3455_v40, %v2911_v59  ;;  %v2928_v53 = vpack.c.bf16 %v2925_v48, %v2924_v61  ;;  %v2926_v35 = vadd.f32 %v3456_v50, %v2918_v58 }
0x18e4   :  { %3874 = vmatprep.mubr.msk.bf16.mxu1 %vm296_vm3, %v2928_v53  ;;  %v2927_v56 = vadd.f32 %v3456_v50, %v2919_v0 }
0x18e6   :  { %v2929_v63 = vpack.c.bf16 %v2927_v56, %v2926_v35  ;;  %v3470_v35 = vld [vmem:[#allocation8 + $0x1b] ss:$0 sm:$0xff] }
0x18e8   :  { %3875 = vmatmul.mubr.msk.bf16.vlgmr.msra.gmra.mrb[64].mxu1 %vm296_vm3, %v2929_v63 }
0x18e9   :  { %3879 = vmatpush3.bf16.msra.mxu1 %v3974_v2 }
0x18ea   :  { %3880 = vmatprep.subr.bf16.mxu1 %v3975_v54 }
0x18ed   :  { %3881 = vmatpush3.bf16.msra.mxu1 %v3975_v54 }
0x18ee   :  { %3882 = vmatprep.subr.bf16.mxu1 %v3976_v46 }
0x18f1   :  { %3883 = vmatpush3.bf16.msra.mxu1 %v3976_v46 }
0x18f2   :  { %3884 = vmatprep.subr.bf16.mxu1 %v3977_v1 }
0x18f5   :  { %3885 = vmatpush3.bf16.msra.mxu1 %v3977_v1 }
0x18f6   :  { %3886 = vmatprep.subr.bf16.mxu1 %v3978_v4 }
0x18f9   :  { %3887 = vmatpush3.bf16.msra.mxu1 %v3978_v4 }
0x18fa   :  { %3888 = vmatprep.subr.bf16.mxu1 %v3979_v5 }
0x18fd   :  { %3889 = vmatpush3.bf16.msra.mxu1 %v3979_v5 }
0x18fe   :  { %3890 = vmatprep.subr.bf16.mxu1 %v3980_v7 }
0x1901   :  { %3891 = vmatpush3.bf16.msra.mxu1 %v3980_v7 }
0x1902   :  { %3892 = vmatprep.subr.bf16.mxu1 %v3981_v6 }
0x1905   :  { %3893 = vmatpush3.bf16.msra.mxu1 %v3981_v6 }
0x19bb   :  { %v3876_v44 = vpop.f32.mrb[64].mxu1 }
0x19bc   :  { %v3000_v49 = vadd.f32 %v3876_v44, %v3457_v55  ;;  %v2991_v8 = vpop.f32.mrb[65].mxu1 }
0x19bd   :  { %v2992_v9 = vadd.f32 %v3457_v55, %v2991_v8  ;;  %v3877_v39 = vpop.f32.mrb[66].mxu1 }
0x19be   :  { %v3012_v10 = vmul.f32 0.044715, %v3000_v49  ;;  %v3003_v11 = vadd.f32 %v3877_v39, %v3457_v55  ;;  %v2994_v12 = vpop.f32.mrb[67].mxu1  ;;  %v3008_v42 = vmul.f32 0.5, %v3000_v49 }
0x19bf   :  { %v3010_v47 = vmul.f32 0.044715, %v2992_v9  ;;  %v2995_v13 = vadd.f32 %v3457_v55, %v2994_v12  ;;  %v3006_v16 = vmul.f32 0.5, %v2992_v9 }
0x19c0   :  { %v3016_v14 = vmul.f32 %v3012_v10, %v3000_v49  ;;  %v3013_v15 = vmul.f32 0.044715, %v3003_v11  ;;  %v3009_v43 = vmul.f32 0.5, %v3003_v11 }
0x19c1   :  { %v3014_v17 = vmul.f32 %v3010_v47, %v2992_v9  ;;  %v3011_v18 = vmul.f32 0.044715, %v2995_v13  ;;  %v3007_v50 = vmul.f32 0.5, %v2995_v13 }
0x19c2   :  { %v3020_v20 = vmul.f32 %v3016_v14, %v3000_v49  ;;  %v3017_v21 = vmul.f32 %v3013_v15, %v3003_v11 }
0x19c3   :  { %v3018_v22 = vmul.f32 %v3014_v17, %v2992_v9  ;;  %v3015_v23 = vmul.f32 %v3011_v18, %v2995_v13 }
0x19c4   :  { %v3024_v24 = vadd.f32 %v3020_v20, %v3000_v49  ;;  %v3021_v25 = vmul.f32 %v3017_v21, %v3003_v11 }
0x19c5   :  { %v3019_v26 = vmul.f32 %v3015_v23, %v2995_v13  ;;  %v3022_v27 = vadd.f32 %v3018_v22, %v2992_v9 }
0x19c6   :  { %v3028_v28 = vmul.f32 0.7978846, %v3024_v24  ;;  %v3025_v29 = vadd.f32 %v3021_v25, %v3003_v11  ;;  %v3982_v25 = vld [vmem:[#allocation7 + $0x1a8] sm:$0xff]  }
0x19c7   :  { %v3023_v30 = vadd.f32 %v3019_v26, %v2995_v13  ;;  %v3026_v31 = vmul.f32 0.7978846, %v3022_v27  ;;  %3898 = vmatprep.subr.bf16.mxu0 %v3982_v25  ;;  %v3983_v26 = vld [vmem:[#allocation7 + $0x1b0] sm:$0xff]  }
0x19c8   :  { %4090 = vtanh.f32 %v3028_v28  ;;  %v3029_v32 = vmul.f32 0.7978846, %v3025_v29  ;;  %3899 = vmatpush3.bf16.msra.mxu0 %v3982_v25 }
0x19c9   :  { %v3027_v33 = vmul.f32 0.7978846, %v3023_v30  ;;  %4092 = vtanh.f32 %v3026_v31  ;;  %3900 = vmatprep.subr.bf16.mxu0 %v3983_v26 }
0x19ca   :  { %4094 = vtanh.f32 %v3029_v32 }
0x19cb   :  { %4096 = vtanh.f32 %v3027_v33 }
0x19cc   :  { %3901 = vmatpush3.bf16.msra.mxu0 %v3983_v26 }
0x19d2   :  { %v4091_v34 = vpop.eup %4090 }
0x19d3   :  { %v4093_v36 = vpop.eup %4092  ;;  %v3036_v37 = vadd.f32 1.0, %v4091_v34 }
0x19d4   :  { %v4095_v38 = vpop.eup %4094  ;;  %v3034_v40 = vadd.f32 1.0, %v4093_v36 }
0x19d5   :  { %v4097_v41 = vpop.eup %4096  ;;  %v3037_v45 = vadd.f32 1.0, %v4095_v38  ;;  %v3040_v52 = vmul.f32 %v3036_v37, %v3008_v42  ;;  %v3471_v42 = vld [vmem:[#allocation8 + $0x1c] ss:$0 sm:$0xff] }
0x19d6   :  { %v3035_v19 = vadd.f32 1.0, %v4097_v41  ;;  %v3038_v58 = vmul.f32 %v3034_v40, %v3006_v16 }
0x19d7   :  { %v3041_v57 = vmul.f32 %v3037_v45, %v3009_v43 }
0x19d8   :  { %v3039_v59 = vmul.f32 %v3035_v19, %v3007_v50 }
0x19d9   :  { %v3043_v61 = vpack.c.bf16 %v3041_v57, %v3040_v52  ;;  %v3472_v52 = vld [vmem:[#allocation8 + $0x1d] ss:$0 sm:$0xff] }
0x19da   :  { %v3042_v48 = vpack.c.bf16 %v3039_v59, %v3038_v58 }
0x19dc   :  { %3894 = vmatprep.mubr.bf16.mxu1 %v3042_v48 }
0x19dd   :  { %3895 = vmatmul.mubr.bf16.vlgmr.msra.gmra.mrb[68].mxu1 %v3043_v61 }
0x1ab0   :  { %v3896_v0 = vpop.f32.mrb[68].mxu1 }
0x1ab1   :  { %v3142_v53 = vpop.f32.mrb[69].mxu1  ;;  %v3159_v56 = vadd.f32 %v3896_v0, %v4652_v62 }
0x1ab2   :  { %v3157_v63 = vadd.f32 %v3142_v53, %v4648_v3  ;;  %v3897_v2 = vpop.f32.mrb[70].mxu1 }
0x1ab3   :  { %v3145_v54 = vpop.f32.mrb[71].mxu1  ;;  %v3160_v46 = vadd.f32 %v3897_v2, %v4658_v51  ;;  %v3168_v6 = vadd.f32 %v3470_v35, %v3159_v56 }
0x1ab4   :  { %v3158_v1 = vadd.f32 %v3145_v54, %v4654_v60  ;;  %v3166_v4 = vadd.f32 %v3470_v35, %v3157_v63 }
0x1ab5   :  { %v3169_v44 = vadd.f32 %v3470_v35, %v3160_v46  ;;  %v3178_v62 = vsel %vm296_vm3, %v3168_v6, 0.0 }
0x1ab6   :  { %v3172_v5 = vsel %vm296_vm3, %v3166_v4, 0.0  ;;  %v3167_v7 = vadd.f32 %v3470_v35, %v3158_v1 }
0x1ab7   :  { %3173 = vadd.xlane.f32.xlu1 %v3172_v5  ;;  %v3181_v3 = vsel %vm296_vm3, %v3169_v44, 0.0 }
0x1ab8   :  { %v3175_v55 = vsel %vm296_vm3, %v3167_v7, 0.0 }
0x1ab9   :  { %3176 = vadd.xlane.f32.xlu0 %v3175_v55 }
0x1abb   :  { %3179 = vadd.xlane.f32.xlu1 %v3178_v62 }
0x1abd   :  { %3182 = vadd.xlane.f32.xlu0 %v3181_v3 }
0x1b44   :  { %v3174_v49 = vpop.xlane.xlu1 %3173 }
0x1b45   :  { %v3184_v51 = vmul.f32 0.03125, %v3174_v49 }
0x1b46   :  { %v3177_v8 = vpop.xlane.xlu0 %3176 }
0x1b47   :  { %v3188_v60 = vsub.f32 %v3166_v4, %v3184_v51  ;;  %v3185_v9 = vmul.f32 0.03125, %v3177_v8 }
0x1b48   :  { %v3180_v39 = vpop.xlane.xlu1 %3179 }
0x1b49   :  { %v3189_v10 = vsub.f32 %v3167_v7, %v3185_v9  ;;  %v3186_v11 = vmul.f32 0.03125, %v3180_v39  ;;  %v3192_v12 = vmul.f32 %v3188_v60, %v3188_v60 }
0x1b4a   :  { %v3183_v47 = vpop.xlane.xlu0 %3182 }
0x1b4b   :  { %v3190_v13 = vsub.f32 %v3168_v6, %v3186_v11  ;;  %v3187_v14 = vmul.f32 0.03125, %v3183_v47  ;;  %v3196_v15 = vsel %vm296_vm3, %v3192_v12, 0.0  ;;  %v3193_v17 = vmul.f32 %v3189_v10, %v3189_v10 }
0x1b4c   :  { %3197 = vadd.xlane.f32.xlu1 %v3196_v15 }
0x1b4d   :  { %v3191_v18 = vsub.f32 %v3169_v44, %v3187_v14  ;;  %v3199_v20 = vsel %vm296_vm3, %v3193_v17, 0.0  ;;  %v3194_v21 = vmul.f32 %v3190_v13, %v3190_v13 }
0x1b4e   :  { %3200 = vadd.xlane.f32.xlu0 %v3199_v20 }
0x1b4f   :  { %v3202_v22 = vsel %vm296_vm3, %v3194_v21, 0.0  ;;  %v3195_v23 = vmul.f32 %v3191_v18, %v3191_v18 }
0x1b50   :  { %3203 = vadd.xlane.f32.xlu1 %v3202_v22 }
0x1b51   :  { %v3205_v24 = vsel %vm296_vm3, %v3195_v23, 0.0 }
0x1b52   :  { %3206 = vadd.xlane.f32.xlu0 %v3205_v24 }
0x1bd9   :  { %v3198_v27 = vpop.xlane.xlu1 %3197 }
0x1bda   :  { %v3208_v28 = vmul.f32 0.03125, %v3198_v27 }
0x1bdb   :  { %v3201_v29 = vpop.xlane.xlu0 %3200 }
0x1bdc   :  { %v3212_v30 = vadd.f32 1e-05, %v3208_v28  ;;  %v3209_v31 = vmul.f32 0.03125, %v3201_v29 }
0x1bdd   :  { %v3204_v32 = vpop.xlane.xlu1 %3203 }
0x1bde   :  { %4098 = vrsqrt.f32 %v3212_v30  ;;  %v3213_v33 = vadd.f32 1e-05, %v3209_v31  ;;  %v3210_v34 = vmul.f32 0.03125, %v3204_v32 }
0x1bdf   :  { %v3207_v36 = vpop.xlane.xlu0 %3206 }
0x1be0   :  { %4100 = vrsqrt.f32 %v3213_v33  ;;  %v3214_v37 = vadd.f32 1e-05, %v3210_v34  ;;  %v3211_v38 = vmul.f32 0.03125, %v3207_v36 }
0x1be2   :  { %4102 = vrsqrt.f32 %v3214_v37  ;;  %v3215_v40 = vadd.f32 1e-05, %v3211_v38 }
0x1be4   :  { %4104 = vrsqrt.f32 %v3215_v40 }
0x1be8   :  { %v4099_v41 = vpop.eup %4098 }
0x1be9   :  { %v3220_v43 = vmul.f32 %v4099_v41, %v3188_v60 }
0x1bea   :  { %v4101_v45 = vpop.eup %4100 }
0x1beb   :  { %v3221_v16 = vmul.f32 %v4101_v45, %v3189_v10  ;;  %v3228_v50 = vmul.f32 %v3471_v42, %v3220_v43 }
0x1bec   :  { %v4103_v19 = vpop.eup %4102 }
0x1bed   :  { %v3222_v57 = vmul.f32 %v4103_v19, %v3190_v13  ;;  %v3229_v58 = vmul.f32 %v3471_v42, %v3221_v16  ;;  %v3236_v0 = vadd.f32 %v3472_v52, %v3228_v50 }
0x1bee   :  { %v4105_v59 = vpop.eup %4104 }
0x1bef   :  { %v3230_v61 = vmul.f32 %v3471_v42, %v3222_v57  ;;  %v3223_v48 = vmul.f32 %v4105_v59, %v3191_v18  ;;  %v3237_v53 = vadd.f32 %v3472_v52, %v3229_v58 }
0x1bf1   :  { %v3231_v35 = vmul.f32 %v3471_v42, %v3223_v48  ;;  %v3240_v56 = vpack.c.bf16 %v3237_v53, %v3236_v0  ;;  %v3238_v63 = vadd.f32 %v3472_v52, %v3230_v61 }
0x1bf3   :  { %3902 = vmatprep.mubr.msk.bf16.mxu0 %vm296_vm3, %v3240_v56  ;;  %v3239_v2 = vadd.f32 %v3472_v52, %v3231_v35 }
0x1bf5   :  { %v3241_v54 = vpack.c.bf16 %v3239_v2, %v3238_v63 }
0x1bf7   :  { %3903 = vmatmul.mubr.msk.bf16.vlgmr.msra.gmra.mrb[72].mxu0 %vm296_vm3, %v3241_v54 }
0x1cca   :  { %v3904_v46 = vpop.f32.mrb[72].mxu0 }
0x1ccb   :  { %3315 = vst [vmem:[#allocation10 + $0x10] sm:$0xff] %v3904_v46  ;;  %v3298_v1 = vpop.f32.mrb[73].mxu0 }
0x1ccc   :  { %3313 = vst [vmem:[#allocation10] sm:$0xff] %v3298_v1  ;;  %v3905_v4 = vpop.f32.mrb[74].mxu0 }
0x1ccd   :  { %3316 = vst [vmem:[#allocation10 + $0x18] sm:$0xff] %v3905_v4  ;;  %v3301_v5 = vpop.f32.mrb[75].mxu0 }
0x1cce   :  { %3314 = vst [vmem:[#allocation10 + $0x8] sm:$0xff] %v3301_v5 }
0x1ccf   :  { %4205 = shalt.err (!%p4202_p8)
}
0x1cd0   :  { %s4206_s19 = scalar_lea.hbm %s4709_s4, 512 }
0x1cd1   :  { %p4207_p9 = scmp.ne.s32.totalorder %s4709_s4, %s4206_s19  ;;  %p4210_p10 = scmp.lt.u32.totalorder %s4206_s19, %s4709_s4 }
0x1cd3   :  { %p4212_p11 = pnand %p4210_p10, %p4207_p9 }
0x1cd5   :  { %4215 = shalt.err (!%p4212_p11)
}
0x1cd6   :  { %3328 = dma.vmem_to_hbm [thread:$0]  %s3323_s15, 512, %s4709_s4, [#allocation4], %s4225_s25, %s4225_s25, %s4226_s26  }
0x1cd7   :  { %4222 = dma.done.wait [#allocation4], 512  }
0x1cd8   :  { %4223 = vsyncadd [#allocation4], 4294966784 }
0x1cd9   :  { %3332 = vsyncpa [#allocation3], 1 }
0x1cda   :  { %3333 = vsyncpa [#allocation6], 1 }
0x1cdb   :  { %3334 = vsyncpa [#allocation9], 1 }
0x1cdc   :  { %3335 = vsyncpa [#allocation4], 1 }

</bundles_post_ra>
